<compile_context>
chip_gen: v7x
topology: tpu7x:2x2x1
jax: 0.10.0
libtpu: 0.0.40
codegen_flags: <defaults>
</compile_context>

<pallas_src>
import jax
import jax.numpy as jnp
import numpy as np
from jax.experimental import pallas as pl
from jax.experimental.pallas import tpu as pltpu

EPS = 1e-5


def _round_up(x, m):
    return (x + m - 1) // m * m


# ----------------------------- fused kernel ----------------------------------

def _bottleneck_kernel(x_ref, w1_ref, b1_ref, w2_ref, b2_ref, w3_ref, b3_ref,
                       o_ref, z1_ref, acc_ref):
    """One batch image per grid step (NHWC, channels on the lane axis).

    x_ref  : (1, H, W, Cin)  f32   input (also the exact residual)
    w1_ref : (Cin, Pp)       bf16  1x1 conv1 weight, bn1 scale folded in
    w2_ref : (3, 3, Pp, Pp)  bf16  3x3 conv2 weight (HWIO), bn2 scale folded in
    w3_ref : (Pp, Cout)      bf16  1x1 conv3 weight, bn3 scale folded in
    b*_ref : (1, C)          f32   folded BN biases
    o_ref  : (1, H, W, Cout) f32
    z1_ref : VMEM (H+2, Wp, Pp) f32  conv1 output; zero halo rows + right pad
    acc_ref: VMEM (H, Wp, Pp)   f32  3x3 accumulator over the padded width
    """
    _, H, W, Cin = x_ref.shape
    _, Wp, Pp = acc_ref.shape
    Cout = o_ref.shape[3]
    L = H * Wp

    # ---- conv1 (1x1) + bias + ReLU -> VMEM scratch ---------------------------
    x2d = x_ref[0, :, :, :].reshape(H * W, Cin)
    z1 = jnp.dot(x2d.astype(jnp.bfloat16), w1_ref[...],
                 preferred_element_type=jnp.float32)
    z1 = jnp.maximum(z1 + b1_ref[...], 0.0)

    # Zero only the halo rows and the right-pad columns (no full-buffer fill;
    # not gated on program_id -- scratch is per-core under parallel semantics).
    zero_row = jnp.zeros((Wp, Pp), jnp.float32)
    z1_ref[0, :, :] = zero_row
    z1_ref[H + 1, :, :] = zero_row
    if Wp > W:
        z1_ref[pl.ds(1, H), pl.ds(W, Wp - W), :] = jnp.zeros(
            (H, Wp - W, Pp), jnp.float32)
    # Interior at column offset 0 (asymmetric padding) -> sublane-aligned store.
    z1_ref[pl.ds(1, H), pl.ds(0, W), :] = z1.reshape(H, W, Pp)

    # ---- conv2 (3x3, stride 1, pad 1) + bias + ReLU --------------------------
    # 9 full-width MXU taps.  dx alignment is a +/-1 sublane rotation of the
    # flattened tap (XLU slot); the wrap-around lands only in discarded zero
    # pad/halo columns because Wp >= W + 1.  The 3 dx taps of each dy are
    # summed in registers -> acc_ref does 1 store + 2 RMW passes total.
    for dy in range(3):                                   # unrolled taps
        rows = z1_ref[pl.ds(dy, H), :, :].reshape(L, Pp).astype(jnp.bfloat16)
        part = None
        for dx in range(3):
            tap = jnp.dot(rows, w2_ref[dy, dx, :, :],
                          preferred_element_type=jnp.float32)
            shift = (1 - dx) % L                          # +1 / 0 / -1 rotate
            if shift:
                tap = pltpu.roll(tap, shift=shift, axis=0)
            part = tap if part is None else part + tap
        if dy == 0:
            acc_ref[...] = part.reshape(H, Wp, Pp)
        else:
            acc_ref[...] += part.reshape(H, Wp, Pp)

    z2 = acc_ref[:, pl.ds(0, W), :].reshape(H * W, Pp)    # aligned (offset-0) read
    z2 = jnp.maximum(z2 + b2_ref[...], 0.0)

    # ---- conv3 (1x1) + bias + residual + ReLU --------------------------------
    y = jnp.dot(z2.astype(jnp.bfloat16), w3_ref[...],
                preferred_element_type=jnp.float32)
    res = x_ref[0, :, :, :].reshape(H * W, Cin)           # exact f32 residual
    y = jnp.maximum(y + b3_ref[...] + res, 0.0)
    o_ref[0, :, :, :] = y.reshape(H, W, Cout).astype(o_ref.dtype)


# ----------------------------- wrapper ----------------------------------------

def _fold_bn_into_conv(w, gamma, beta, mean, var):
    """Fold inference-mode BN into the conv weight (out-channels = last axis)."""
    scale = gamma / jnp.sqrt(var + EPS)
    bias = beta - mean * scale
    shape = [1] * w.ndim
    shape[-1] = w.shape[-1]
    return w * scale.reshape(shape), bias[None, :]


def _pad_axis(a, axis, new_size):
    pad = new_size - a.shape[axis]
    if pad <= 0:
        return a
    widths = [(0, 0)] * a.ndim
    widths[axis] = (0, pad)
    return jnp.pad(a, widths)


def bottleneck_forward(x_nchw, params):
    """Fused Bottleneck forward (stride=1, downsample=None, use_bn=True,
    BN in inference mode).  Input/output are NCHW like the PyTorch module."""
    # TODO(synk): stride>1 / downsample branch and training-mode BatchNorm
    # (batch-statistics) are not implemented -- module defaults only.
    x = jnp.transpose(x_nchw, (0, 2, 3, 1)).astype(jnp.float32)   # NCHW -> NHWC
    N, H, W, Cin = x.shape
    P = params["w1"].shape[1]
    Cout = params["w3"].shape[1]
    assert Cout == Cin, "residual add requires expansion*planes == in_planes"

    # Fold BN into the convs, pad mid channels to a lane-dense multiple of 128
    # (padded lanes stay exactly zero through the whole chain), cast MXU
    # weights to bf16.  Biases stay f32.
    w1f, b1f = _fold_bn_into_conv(params["w1"], *params["bn1"])
    w2f, b2f = _fold_bn_into_conv(params["w2"], *params["bn2"])
    w3f, b3f = _fold_bn_into_conv(params["w3"], *params["bn3"])

    Pp = _round_up(P, 128)
    w1p = _pad_axis(w1f, 1, Pp).astype(jnp.bfloat16)
    b1p = _pad_axis(b1f, 1, Pp)
    w2p = _pad_axis(_pad_axis(w2f, 2, Pp), 3, Pp).astype(jnp.bfloat16)
    b2p = _pad_axis(b2f, 1, Pp)
    w3p = _pad_axis(w3f, 0, Pp).astype(jnp.bfloat16)
    b3p = b3f

    # Asymmetric horizontal padding: interior at column 0, right-pad only.
    # Wp >= W+1 keeps the roll wrap-around inside discarded zero columns.
    # TODO(synk): W % 8 != 0 stages (7/14/28) still pay a reshape relayout on
    # the (H*W, C) <-> (H, W, C) reshapes; stage x through a width-padded
    # buffer if those stages matter.
    Wp = _round_up(W + 1, 8)

    # VMEM budget (lane-padded): 2x-buffered x/out blocks + resident weights.
    lane = lambda c: _round_up(c, 128)
    x_blk = H * _round_up(W, 8) * lane(Cin) * 4
    o_blk = H * _round_up(W, 8) * lane(Cout) * 4
    wts = (_round_up(Cin, 8) * Pp + 9 * Pp * Pp + Pp * lane(Cout)) * 2 \
        + 8 * (2 * Pp + lane(Cout)) * 4
    scratch = ((H + 2) * Wp * Pp + H * Wp * Pp) * 4
    needed = 2 * (x_blk + o_blk) + 2 * wts + scratch + (8 << 20)
    try:
        vmem_cap = int(pltpu.get_tpu_info().vmem_capacity_bytes)
    except Exception:                      # conservative, v7x-safe fallback
        vmem_cap = 64 << 20
    vmem_limit = int(min(max(needed, 32 << 20), vmem_cap))

    flops = 2 * N * H * (W * Cin * Pp + 9 * Wp * Pp * Pp + W * Pp * Cout)
    bytes_accessed = N * (x_blk + o_blk) + wts

    # TODO(synk): for v7x add an H row-tile "parallel" grid axis (overlapping
    # halo row blocks) when N < 2 or the per-image block is too large; the
    # largest stages may also want pipeline_mode=pl.Buffered(1) on the weights.
    out = pl.pallas_call(
        _bottleneck_kernel,
        out_shape=jax.ShapeDtypeStruct((N, H, W, Cout), jnp.float32),
        grid_spec=pltpu.PrefetchScalarGridSpec(
            num_scalar_prefetch=0,
            grid=(N,),
            in_specs=[
                pl.BlockSpec((1, H, W, Cin), lambda n: (n, 0, 0, 0)),
                # weights / biases: constant index_map -> stay VMEM-resident
                pl.BlockSpec((Cin, Pp), lambda n: (0, 0)),
                pl.BlockSpec((1, Pp), lambda n: (0, 0)),
                pl.BlockSpec((3, 3, Pp, Pp), lambda n: (0, 0, 0, 0)),
                pl.BlockSpec((1, Pp), lambda n: (0, 0)),
                pl.BlockSpec((Pp, Cout), lambda n: (0, 0)),
                pl.BlockSpec((1, Cout), lambda n: (0, 0)),
            ],
            out_specs=pl.BlockSpec((1, H, W, Cout), lambda n: (n, 0, 0, 0)),
            scratch_shapes=[
                pltpu.VMEM((H + 2, Wp, Pp), jnp.float32),   # padded conv1 out
                pltpu.VMEM((H, Wp, Pp), jnp.float32),       # 3x3 accumulator
            ],
        ),
        compiler_params=pltpu.CompilerParams(
            dimension_semantics=("parallel",),
            vmem_limit_bytes=vmem_limit,
        ),
        cost_estimate=pl.CostEstimate(
            flops=flops, transcendentals=0, bytes_accessed=bytes_accessed),
    )(x, w1p, b1p, w2p, b2p, w3p, b3p)

    return jnp.transpose(out, (0, 3, 1, 2))                # NHWC -> NCHW


# ----------------------------- reference (pure JAX, f32) ----------------------

def reference_forward(x_nchw, params):
    x = jnp.transpose(x_nchw, (0, 2, 3, 1)).astype(jnp.float32)

    def bn(y, p):
        gamma, beta, mean, var = p
        return (y - mean) / jnp.sqrt(var + EPS) * gamma + beta

    dn = ("NHWC", "HWIO", "NHWC")
    y = jax.lax.conv_general_dilated(x, params["w1"][None, None], (1, 1),
                                     "VALID", dimension_numbers=dn)
    y = jax.nn.relu(bn(y, params["bn1"]))
    y = jax.lax.conv_general_dilated(y, params["w2"], (1, 1), "SAME",
                                     dimension_numbers=dn)
    y = jax.nn.relu(bn(y, params["bn2"]))
    y = jax.lax.conv_general_dilated(y, params["w3"][None, None], (1, 1),
                                     "VALID", dimension_numbers=dn)
    y = jax.nn.relu(bn(y, params["bn3"]) + x)
    return jnp.transpose(y, (0, 3, 1, 2))


# ----------------------------- main -------------------------------------------

if __name__ == "__main__":
    key = jax.random.PRNGKey(0)
    ks = jax.random.split(key, 16)

    N, planes, H, W = 2, 4, 16, 16
    in_planes = 4 * planes          # expansion = 4; residual requires equality
    out_planes = 4 * planes

    def bn_params(k0, k1, k2, k3, c):
        return (1.0 + 0.1 * jax.random.normal(ks[k0], (c,), jnp.float32),   # gamma
                0.1 * jax.random.normal(ks[k1], (c,), jnp.float32),         # beta
                0.1 * jax.random.normal(ks[k2], (c,), jnp.float32),         # running_mean
                1.0 + 0.1 * jnp.abs(jax.random.normal(ks[k3], (c,), jnp.float32)))  # running_var

    params = {
        # conv weights stored in matmul/HWIO layout (in-channels, out-channels)
        "w1": 0.1 * jax.random.normal(ks[0], (in_planes, planes), jnp.float32),
        "w2": 0.1 * jax.random.normal(ks[1], (3, 3, planes, planes), jnp.float32),
        "w3": 0.1 * jax.random.normal(ks[2], (planes, out_planes), jnp.float32),
        "bn1": bn_params(3, 4, 5, 6, planes),
        "bn2": bn_params(7, 8, 9, 10, planes),
        "bn3": bn_params(11, 12, 13, 14, out_planes),
    }

    x = jax.random.normal(ks[15], (N, in_planes, H, W), jnp.float32)   # NCHW input

    out = jax.block_until_ready(bottleneck_forward(x, params))
    ref = jax.block_until_ready(reference_forward(x, params))

    assert out.shape == (N, out_planes, H, W)
    # bf16 MXU operands (f32 accumulate/epilogue) vs f32 reference -> ~1e-3
    # level differences; 2e-2 gives ample margin while still catching bugs.
    np.testing.assert_allclose(np.asarray(out), np.asarray(ref),
                               atol=2e-2, rtol=2e-2)
    print("KERNEL_OK")
</pallas_src>

<mosaic_0001>
module attributes {stable_mosaic.version = 11 : i64} {
  func.func @_bottleneck_kernel(%arg0: i32, %arg1: memref<1x16x16x16xf32, #tpu.memory_space<vmem>>, %arg2: memref<16x128xbf16, #tpu.memory_space<vmem>>, %arg3: memref<1x128xf32, #tpu.memory_space<vmem>>, %arg4: memref<3x3x128x128xbf16, #tpu.memory_space<vmem>>, %arg5: memref<1x128xf32, #tpu.memory_space<vmem>>, %arg6: memref<128x16xbf16, #tpu.memory_space<vmem>>, %arg7: memref<1x16xf32, #tpu.memory_space<vmem>>, %arg8: memref<1x16x16x16xf32, #tpu.memory_space<vmem>>, %arg9: memref<18x24x128xf32, #tpu.memory_space<vmem>>, %arg10: memref<16x24x128xf32, #tpu.memory_space<vmem>>) attributes {dimension_semantics = [#tpu.dimension_semantics<parallel>], iteration_bounds = array<i64: 2>, scalar_prefetch = 0 : i64, scratch_operands = 2 : i64, tpu.core_type = #tpu.core_type<tc>, window_params = [{transform_indices = @transform_0, window_bounds = array<i64: 1, 16, 16, 16>}, {pipeline_mode = #tpu.pipeline_mode<synchronous>, transform_indices = @transform_1, window_bounds = array<i64: 16, 128>}, {pipeline_mode = #tpu.pipeline_mode<synchronous>, transform_indices = @transform_2, window_bounds = array<i64: 1, 128>}, {pipeline_mode = #tpu.pipeline_mode<synchronous>, transform_indices = @transform_3, window_bounds = array<i64: 3, 3, 128, 128>}, {pipeline_mode = #tpu.pipeline_mode<synchronous>, transform_indices = @transform_4, window_bounds = array<i64: 1, 128>}, {pipeline_mode = #tpu.pipeline_mode<synchronous>, transform_indices = @transform_5, window_bounds = array<i64: 128, 16>}, {pipeline_mode = #tpu.pipeline_mode<synchronous>, transform_indices = @transform_6, window_bounds = array<i64: 1, 16>}, {transform_indices = @transform_7, window_bounds = array<i64: 1, 16, 16, 16>}]} {
    %c0 = arith.constant 0 : index
    %c0_0 = arith.constant 0 : index
    %c0_1 = arith.constant 0 : index
    %c0_2 = arith.constant 0 : index
    %0 = vector.load %arg1[%c0, %c0_0, %c0_1, %c0_2] : memref<1x16x16x16xf32, #tpu.memory_space<vmem>>, vector<1x16x16x16xf32>
    %1 = vector.shape_cast %0 : vector<1x16x16x16xf32> to vector<16x16x16xf32>
    %2 = vector.shape_cast %1 : vector<16x16x16xf32> to vector<256x16xf32>
    %3 = arith.truncf %2 : vector<256x16xf32> to vector<256x16xbf16>
    %c0_3 = arith.constant 0 : index
    %c0_4 = arith.constant 0 : index
    %4 = vector.load %arg2[%c0_3, %c0_4] : memref<16x128xbf16, #tpu.memory_space<vmem>>, vector<16x128xbf16>
    %cst = arith.constant dense<0.000000e+00> : vector<256x128xf32>
    %5 = tpu.matmul %3, %4, %cst {dimension_numbers = #tpu.dot_dimension_numbers<[1], [0], [0], [1], [0, 0, 1, 1], [], []>} : vector<256x16xbf16>, vector<16x128xbf16>, vector<256x128xf32> -> vector<256x128xf32>
    %c0_5 = arith.constant 0 : index
    %c0_6 = arith.constant 0 : index
    %6 = vector.load %arg3[%c0_5, %c0_6] : memref<1x128xf32, #tpu.memory_space<vmem>>, vector<1x128xf32>
    %7 = vector.broadcast %6 : vector<1x128xf32> to vector<256x128xf32>
    %8 = arith.addf %5, %7 : vector<256x128xf32>
    %cst_7 = arith.constant 0.000000e+00 : f32
    %9 = vector.broadcast %cst_7 : f32 to vector<256x128xf32>
    %10 = arith.maximumf %8, %9 : vector<256x128xf32>
    %cst_8 = arith.constant 0.000000e+00 : f32
    %11 = vector.broadcast %cst_8 : f32 to vector<24x128xf32>
    %c0_9 = arith.constant 0 : index
    %c0_10 = arith.constant 0 : index
    %c0_11 = arith.constant 0 : index
    %12 = vector.load %arg9[%c0_9, %c0_10, %c0_11] : memref<18x24x128xf32, #tpu.memory_space<vmem>>, vector<1x24x128xf32>
    %13 = vector.shape_cast %12 : vector<1x24x128xf32> to vector<24x128xf32>
    %14 = vector.shape_cast %11 : vector<24x128xf32> to vector<1x24x128xf32>
    tpu.vector_store %arg9[%c0_9, %c0_10, %c0_11], %14 {strides = array<i32>} : memref<18x24x128xf32, #tpu.memory_space<vmem>>, vector<1x24x128xf32>,
    %c17 = arith.constant 17 : index
    %c0_12 = arith.constant 0 : index
    %c0_13 = arith.constant 0 : index
    %15 = vector.load %arg9[%c17, %c0_12, %c0_13] : memref<18x24x128xf32, #tpu.memory_space<vmem>>, vector<1x24x128xf32>
    %16 = vector.shape_cast %15 : vector<1x24x128xf32> to vector<24x128xf32>
    %17 = vector.shape_cast %11 : vector<24x128xf32> to vector<1x24x128xf32>
    tpu.vector_store %arg9[%c17, %c0_12, %c0_13], %17 {strides = array<i32>} : memref<18x24x128xf32, #tpu.memory_space<vmem>>, vector<1x24x128xf32>,
    %cst_14 = arith.constant 0.000000e+00 : f32
    %18 = vector.broadcast %cst_14 : f32 to vector<16x8x128xf32>
    %c1 = arith.constant 1 : index
    %c16 = arith.constant 16 : index
    %c0_15 = arith.constant 0 : index
    %19 = vector.load %arg9[%c1, %c16, %c0_15] : memref<18x24x128xf32, #tpu.memory_space<vmem>>, vector<16x8x128xf32>
    tpu.vector_store %arg9[%c1, %c16, %c0_15], %18 {strides = array<i32>} : memref<18x24x128xf32, #tpu.memory_space<vmem>>, vector<16x8x128xf32>,
    %20 = vector.shape_cast %10 : vector<256x128xf32> to vector<16x16x128xf32>
    %c1_16 = arith.constant 1 : index
    %c0_17 = arith.constant 0 : index
    %c0_18 = arith.constant 0 : index
    %21 = vector.load %arg9[%c1_16, %c0_17, %c0_18] : memref<18x24x128xf32, #tpu.memory_space<vmem>>, vector<16x16x128xf32>
    tpu.vector_store %arg9[%c1_16, %c0_17, %c0_18], %20 {strides = array<i32>} : memref<18x24x128xf32, #tpu.memory_space<vmem>>, vector<16x16x128xf32>,
    %c0_19 = arith.constant 0 : index
    %c0_20 = arith.constant 0 : index
    %c0_21 = arith.constant 0 : index
    %22 = vector.load %arg9[%c0_19, %c0_20, %c0_21] : memref<18x24x128xf32, #tpu.memory_space<vmem>>, vector<16x24x128xf32>
    %23 = vector.shape_cast %22 : vector<16x24x128xf32> to vector<384x128xf32>
    %24 = arith.truncf %23 : vector<384x128xf32> to vector<384x128xbf16>
    %c0_22 = arith.constant 0 : index
    %c0_23 = arith.constant 0 : index
    %c0_24 = arith.constant 0 : index
    %c0_25 = arith.constant 0 : index
    %25 = vector.load %arg4[%c0_22, %c0_23, %c0_24, %c0_25] : memref<3x3x128x128xbf16, #tpu.memory_space<vmem>>, vector<1x1x128x128xbf16>
    %26 = vector.shape_cast %25 : vector<1x1x128x128xbf16> to vector<128x128xbf16>
    %cst_26 = arith.constant dense<0.000000e+00> : vector<384x128xf32>
    %27 = tpu.matmul %24, %26, %cst_26 {dimension_numbers = #tpu.dot_dimension_numbers<[1], [0], [0], [1], [0, 0, 1, 1], [], []>} : vector<384x128xbf16>, vector<128x128xbf16>, vector<384x128xf32> -> vector<384x128xf32>
    %c1_i32 = arith.constant 1 : i32
    %28 = tpu.dynamic_rotate %27 by %c1_i32 dim 0 : vector<384x128xf32>, i32 -> vector<384x128xf32>
    %c0_27 = arith.constant 0 : index
    %c1_28 = arith.constant 1 : index
    %c0_29 = arith.constant 0 : index
    %c0_30 = arith.constant 0 : index
    %29 = vector.load %arg4[%c0_27, %c1_28, %c0_29, %c0_30] : memref<3x3x128x128xbf16, #tpu.memory_space<vmem>>, vector<1x1x128x128xbf16>
    %30 = vector.shape_cast %29 : vector<1x1x128x128xbf16> to vector<128x128xbf16>
    %cst_31 = arith.constant dense<0.000000e+00> : vector<384x128xf32>
    %31 = tpu.matmul %24, %30, %cst_31 {dimension_numbers = #tpu.dot_dimension_numbers<[1], [0], [0], [1], [0, 0, 1, 1], [], []>} : vector<384x128xbf16>, vector<128x128xbf16>, vector<384x128xf32> -> vector<384x128xf32>
    %32 = arith.addf %28, %31 : vector<384x128xf32>
    %c0_32 = arith.constant 0 : index
    %c2 = arith.constant 2 : index
    %c0_33 = arith.constant 0 : index
    %c0_34 = arith.constant 0 : index
    %33 = vector.load %arg4[%c0_32, %c2, %c0_33, %c0_34] : memref<3x3x128x128xbf16, #tpu.memory_space<vmem>>, vector<1x1x128x128xbf16>
    %34 = vector.shape_cast %33 : vector<1x1x128x128xbf16> to vector<128x128xbf16>
    %cst_35 = arith.constant dense<0.000000e+00> : vector<384x128xf32>
    %35 = tpu.matmul %24, %34, %cst_35 {dimension_numbers = #tpu.dot_dimension_numbers<[1], [0], [0], [1], [0, 0, 1, 1], [], []>} : vector<384x128xbf16>, vector<128x128xbf16>, vector<384x128xf32> -> vector<384x128xf32>
    %c383_i32 = arith.constant 383 : i32
    %36 = tpu.dynamic_rotate %35 by %c383_i32 dim 0 : vector<384x128xf32>, i32 -> vector<384x128xf32>
    %37 = arith.addf %32, %36 : vector<384x128xf32>
    %38 = vector.shape_cast %37 : vector<384x128xf32> to vector<16x24x128xf32>
    %c0_36 = arith.constant 0 : index
    %c0_37 = arith.constant 0 : index
    %c0_38 = arith.constant 0 : index
    %39 = vector.load %arg10[%c0_36, %c0_37, %c0_38] : memref<16x24x128xf32, #tpu.memory_space<vmem>>, vector<16x24x128xf32>
    tpu.vector_store %arg10[%c0_36, %c0_37, %c0_38], %38 {strides = array<i32>} : memref<16x24x128xf32, #tpu.memory_space<vmem>>, vector<16x24x128xf32>,
    %c1_39 = arith.constant 1 : index
    %c0_40 = arith.constant 0 : index
    %c0_41 = arith.constant 0 : index
    %40 = vector.load %arg9[%c1_39, %c0_40, %c0_41] : memref<18x24x128xf32, #tpu.memory_space<vmem>>, vector<16x24x128xf32>
    %41 = vector.shape_cast %40 : vector<16x24x128xf32> to vector<384x128xf32>
    %42 = arith.truncf %41 : vector<384x128xf32> to vector<384x128xbf16>
    %c1_42 = arith.constant 1 : index
    %c0_43 = arith.constant 0 : index
    %c0_44 = arith.constant 0 : index
    %c0_45 = arith.constant 0 : index
    %43 = vector.load %arg4[%c1_42, %c0_43, %c0_44, %c0_45] : memref<3x3x128x128xbf16, #tpu.memory_space<vmem>>, vector<1x1x128x128xbf16>
    %44 = vector.shape_cast %43 : vector<1x1x128x128xbf16> to vector<128x128xbf16>
    %cst_46 = arith.constant dense<0.000000e+00> : vector<384x128xf32>
    %45 = tpu.matmul %42, %44, %cst_46 {dimension_numbers = #tpu.dot_dimension_numbers<[1], [0], [0], [1], [0, 0, 1, 1], [], []>} : vector<384x128xbf16>, vector<128x128xbf16>, vector<384x128xf32> -> vector<384x128xf32>
    %c1_i32_47 = arith.constant 1 : i32
    %46 = tpu.dynamic_rotate %45 by %c1_i32_47 dim 0 : vector<384x128xf32>, i32 -> vector<384x128xf32>
    %c1_48 = arith.constant 1 : index
    %c1_49 = arith.constant 1 : index
    %c0_50 = arith.constant 0 : index
    %c0_51 = arith.constant 0 : index
    %47 = vector.load %arg4[%c1_48, %c1_49, %c0_50, %c0_51] : memref<3x3x128x128xbf16, #tpu.memory_space<vmem>>, vector<1x1x128x128xbf16>
    %48 = vector.shape_cast %47 : vector<1x1x128x128xbf16> to vector<128x128xbf16>
    %cst_52 = arith.constant dense<0.000000e+00> : vector<384x128xf32>
    %49 = tpu.matmul %42, %48, %cst_52 {dimension_numbers = #tpu.dot_dimension_numbers<[1], [0], [0], [1], [0, 0, 1, 1], [], []>} : vector<384x128xbf16>, vector<128x128xbf16>, vector<384x128xf32> -> vector<384x128xf32>
    %50 = arith.addf %46, %49 : vector<384x128xf32>
    %c1_53 = arith.constant 1 : index
    %c2_54 = arith.constant 2 : index
    %c0_55 = arith.constant 0 : index
    %c0_56 = arith.constant 0 : index
    %51 = vector.load %arg4[%c1_53, %c2_54, %c0_55, %c0_56] : memref<3x3x128x128xbf16, #tpu.memory_space<vmem>>, vector<1x1x128x128xbf16>
    %52 = vector.shape_cast %51 : vector<1x1x128x128xbf16> to vector<128x128xbf16>
    %cst_57 = arith.constant dense<0.000000e+00> : vector<384x128xf32>
    %53 = tpu.matmul %42, %52, %cst_57 {dimension_numbers = #tpu.dot_dimension_numbers<[1], [0], [0], [1], [0, 0, 1, 1], [], []>} : vector<384x128xbf16>, vector<128x128xbf16>, vector<384x128xf32> -> vector<384x128xf32>
    %c383_i32_58 = arith.constant 383 : i32
    %54 = tpu.dynamic_rotate %53 by %c383_i32_58 dim 0 : vector<384x128xf32>, i32 -> vector<384x128xf32>
    %55 = arith.addf %50, %54 : vector<384x128xf32>
    %c0_59 = arith.constant 0 : index
    %c0_60 = arith.constant 0 : index
    %c0_61 = arith.constant 0 : index
    %56 = vector.load %arg10[%c0_59, %c0_60, %c0_61] : memref<16x24x128xf32, #tpu.memory_space<vmem>>, vector<16x24x128xf32>
    %57 = vector.shape_cast %55 : vector<384x128xf32> to vector<16x24x128xf32>
    %58 = arith.addf %56, %57 : vector<16x24x128xf32>
    %c0_62 = arith.constant 0 : index
    %c0_63 = arith.constant 0 : index
    %c0_64 = arith.constant 0 : index
    %59 = vector.load %arg10[%c0_62, %c0_63, %c0_64] : memref<16x24x128xf32, #tpu.memory_space<vmem>>, vector<16x24x128xf32>
    tpu.vector_store %arg10[%c0_62, %c0_63, %c0_64], %58 {strides = array<i32>} : memref<16x24x128xf32, #tpu.memory_space<vmem>>, vector<16x24x128xf32>,
    %c2_65 = arith.constant 2 : index
    %c0_66 = arith.constant 0 : index
    %c0_67 = arith.constant 0 : index
    %60 = vector.load %arg9[%c2_65, %c0_66, %c0_67] : memref<18x24x128xf32, #tpu.memory_space<vmem>>, vector<16x24x128xf32>
    %61 = vector.shape_cast %60 : vector<16x24x128xf32> to vector<384x128xf32>
    %62 = arith.truncf %61 : vector<384x128xf32> to vector<384x128xbf16>
    %c2_68 = arith.constant 2 : index
    %c0_69 = arith.constant 0 : index
    %c0_70 = arith.constant 0 : index
    %c0_71 = arith.constant 0 : index
    %63 = vector.load %arg4[%c2_68, %c0_69, %c0_70, %c0_71] : memref<3x3x128x128xbf16, #tpu.memory_space<vmem>>, vector<1x1x128x128xbf16>
    %64 = vector.shape_cast %63 : vector<1x1x128x128xbf16> to vector<128x128xbf16>
    %cst_72 = arith.constant dense<0.000000e+00> : vector<384x128xf32>
    %65 = tpu.matmul %62, %64, %cst_72 {dimension_numbers = #tpu.dot_dimension_numbers<[1], [0], [0], [1], [0, 0, 1, 1], [], []>} : vector<384x128xbf16>, vector<128x128xbf16>, vector<384x128xf32> -> vector<384x128xf32>
    %c1_i32_73 = arith.constant 1 : i32
    %66 = tpu.dynamic_rotate %65 by %c1_i32_73 dim 0 : vector<384x128xf32>, i32 -> vector<384x128xf32>
    %c2_74 = arith.constant 2 : index
    %c1_75 = arith.constant 1 : index
    %c0_76 = arith.constant 0 : index
    %c0_77 = arith.constant 0 : index
    %67 = vector.load %arg4[%c2_74, %c1_75, %c0_76, %c0_77] : memref<3x3x128x128xbf16, #tpu.memory_space<vmem>>, vector<1x1x128x128xbf16>
    %68 = vector.shape_cast %67 : vector<1x1x128x128xbf16> to vector<128x128xbf16>
    %cst_78 = arith.constant dense<0.000000e+00> : vector<384x128xf32>
    %69 = tpu.matmul %62, %68, %cst_78 {dimension_numbers = #tpu.dot_dimension_numbers<[1], [0], [0], [1], [0, 0, 1, 1], [], []>} : vector<384x128xbf16>, vector<128x128xbf16>, vector<384x128xf32> -> vector<384x128xf32>
    %70 = arith.addf %66, %69 : vector<384x128xf32>
    %c2_79 = arith.constant 2 : index
    %c2_80 = arith.constant 2 : index
    %c0_81 = arith.constant 0 : index
    %c0_82 = arith.constant 0 : index
    %71 = vector.load %arg4[%c2_79, %c2_80, %c0_81, %c0_82] : memref<3x3x128x128xbf16, #tpu.memory_space<vmem>>, vector<1x1x128x128xbf16>
    %72 = vector.shape_cast %71 : vector<1x1x128x128xbf16> to vector<128x128xbf16>
    %cst_83 = arith.constant dense<0.000000e+00> : vector<384x128xf32>
    %73 = tpu.matmul %62, %72, %cst_83 {dimension_numbers = #tpu.dot_dimension_numbers<[1], [0], [0], [1], [0, 0, 1, 1], [], []>} : vector<384x128xbf16>, vector<128x128xbf16>, vector<384x128xf32> -> vector<384x128xf32>
    %c383_i32_84 = arith.constant 383 : i32
    %74 = tpu.dynamic_rotate %73 by %c383_i32_84 dim 0 : vector<384x128xf32>, i32 -> vector<384x128xf32>
    %75 = arith.addf %70, %74 : vector<384x128xf32>
    %c0_85 = arith.constant 0 : index
    %c0_86 = arith.constant 0 : index
    %c0_87 = arith.constant 0 : index
    %76 = vector.load %arg10[%c0_85, %c0_86, %c0_87] : memref<16x24x128xf32, #tpu.memory_space<vmem>>, vector<16x24x128xf32>
    %77 = vector.shape_cast %75 : vector<384x128xf32> to vector<16x24x128xf32>
    %78 = arith.addf %76, %77 : vector<16x24x128xf32>
    %c0_88 = arith.constant 0 : index
    %c0_89 = arith.constant 0 : index
    %c0_90 = arith.constant 0 : index
    %79 = vector.load %arg10[%c0_88, %c0_89, %c0_90] : memref<16x24x128xf32, #tpu.memory_space<vmem>>, vector<16x24x128xf32>
    tpu.vector_store %arg10[%c0_88, %c0_89, %c0_90], %78 {strides = array<i32>} : memref<16x24x128xf32, #tpu.memory_space<vmem>>, vector<16x24x128xf32>,
    %c0_91 = arith.constant 0 : index
    %c0_92 = arith.constant 0 : index
    %c0_93 = arith.constant 0 : index
    %80 = vector.load %arg10[%c0_91, %c0_92, %c0_93] : memref<16x24x128xf32, #tpu.memory_space<vmem>>, vector<16x16x128xf32>
    %81 = vector.shape_cast %80 : vector<16x16x128xf32> to vector<256x128xf32>
    %c0_94 = arith.constant 0 : index
    %c0_95 = arith.constant 0 : index
    %82 = vector.load %arg5[%c0_94, %c0_95] : memref<1x128xf32, #tpu.memory_space<vmem>>, vector<1x128xf32>
    %83 = vector.broadcast %82 : vector<1x128xf32> to vector<256x128xf32>
    %84 = arith.addf %81, %83 : vector<256x128xf32>
    %cst_96 = arith.constant 0.000000e+00 : f32
    %85 = vector.broadcast %cst_96 : f32 to vector<256x128xf32>
    %86 = arith.maximumf %84, %85 : vector<256x128xf32>
    %87 = arith.truncf %86 : vector<256x128xf32> to vector<256x128xbf16>
    %c0_97 = arith.constant 0 : index
    %c0_98 = arith.constant 0 : index
    %88 = vector.load %arg6[%c0_97, %c0_98] : memref<128x16xbf16, #tpu.memory_space<vmem>>, vector<128x16xbf16>
    %cst_99 = arith.constant dense<0.000000e+00> : vector<256x16xf32>
    %89 = tpu.matmul %87, %88, %cst_99 {dimension_numbers = #tpu.dot_dimension_numbers<[1], [0], [0], [1], [0, 0, 1, 1], [], []>} : vector<256x128xbf16>, vector<128x16xbf16>, vector<256x16xf32> -> vector<256x16xf32>
    %c0_100 = arith.constant 0 : index
    %c0_101 = arith.constant 0 : index
    %c0_102 = arith.constant 0 : index
    %c0_103 = arith.constant 0 : index
    %90 = vector.load %arg1[%c0_100, %c0_101, %c0_102, %c0_103] : memref<1x16x16x16xf32, #tpu.memory_space<vmem>>, vector<1x16x16x16xf32>
    %91 = vector.shape_cast %90 : vector<1x16x16x16xf32> to vector<16x16x16xf32>
    %92 = vector.shape_cast %91 : vector<16x16x16xf32> to vector<256x16xf32>
    %c0_104 = arith.constant 0 : index
    %c0_105 = arith.constant 0 : index
    %93 = vector.load %arg7[%c0_104, %c0_105] : memref<1x16xf32, #tpu.memory_space<vmem>>, vector<1x16xf32>
    %94 = vector.broadcast %93 : vector<1x16xf32> to vector<256x16xf32>
    %95 = arith.addf %89, %94 : vector<256x16xf32>
    %96 = arith.addf %95, %92 : vector<256x16xf32>
    %cst_106 = arith.constant 0.000000e+00 : f32
    %97 = vector.broadcast %cst_106 : f32 to vector<256x16xf32>
    %98 = arith.maximumf %96, %97 : vector<256x16xf32>
    %99 = vector.shape_cast %98 : vector<256x16xf32> to vector<16x16x16xf32>
    %c0_107 = arith.constant 0 : index
    %c0_108 = arith.constant 0 : index
    %c0_109 = arith.constant 0 : index
    %c0_110 = arith.constant 0 : index
    %100 = vector.load %arg8[%c0_107, %c0_108, %c0_109, %c0_110] : memref<1x16x16x16xf32, #tpu.memory_space<vmem>>, vector<1x16x16x16xf32>
    %101 = vector.shape_cast %100 : vector<1x16x16x16xf32> to vector<16x16x16xf32>
    %102 = vector.shape_cast %99 : vector<16x16x16xf32> to vector<1x16x16x16xf32>
    tpu.vector_store %arg8[%c0_107, %c0_108, %c0_109, %c0_110], %102 {strides = array<i32>} : memref<1x16x16x16xf32, #tpu.memory_space<vmem>>, vector<1x16x16x16xf32>,
    return
  }
  func.func @transform_0(%arg0: i32) -> (i32, i32, i32, i32) {
    %c0_i32 = arith.constant 0 : i32
    %c0_i32_0 = arith.constant 0 : i32
    %c0_i32_1 = arith.constant 0 : i32
    %c0_i32_2 = arith.constant 0 : i32
    return %arg0, %c0_i32, %c0_i32_0, %c0_i32_1 : i32, i32, i32, i32
  }
  func.func @transform_1(%arg0: i32) -> (i32, i32) {
    %c0_i32 = arith.constant 0 : i32
    %c0_i32_0 = arith.constant 0 : i32
    %c0_i32_1 = arith.constant 0 : i32
    return %c0_i32, %c0_i32_0 : i32, i32
  }
  func.func @transform_2(%arg0: i32) -> (i32, i32) {
    %c0_i32 = arith.constant 0 : i32
    %c0_i32_0 = arith.constant 0 : i32
    %c0_i32_1 = arith.constant 0 : i32
    return %c0_i32, %c0_i32_0 : i32, i32
  }
  func.func @transform_3(%arg0: i32) -> (i32, i32, i32, i32) {
    %c0_i32 = arith.constant 0 : i32
    %c0_i32_0 = arith.constant 0 : i32
    %c0_i32_1 = arith.constant 0 : i32
    %c0_i32_2 = arith.constant 0 : i32
    %c0_i32_3 = arith.constant 0 : i32
    return %c0_i32, %c0_i32_0, %c0_i32_1, %c0_i32_2 : i32, i32, i32, i32
  }
  func.func @transform_4(%arg0: i32) -> (i32, i32) {
    %c0_i32 = arith.constant 0 : i32
    %c0_i32_0 = arith.constant 0 : i32
    %c0_i32_1 = arith.constant 0 : i32
    return %c0_i32, %c0_i32_0 : i32, i32
  }
  func.func @transform_5(%arg0: i32) -> (i32, i32) {
    %c0_i32 = arith.constant 0 : i32
    %c0_i32_0 = arith.constant 0 : i32
    %c0_i32_1 = arith.constant 0 : i32
    return %c0_i32, %c0_i32_0 : i32, i32
  }
  func.func @transform_6(%arg0: i32) -> (i32, i32) {
    %c0_i32 = arith.constant 0 : i32
    %c0_i32_0 = arith.constant 0 : i32
    %c0_i32_1 = arith.constant 0 : i32
    return %c0_i32, %c0_i32_0 : i32, i32
  }
  func.func @transform_7(%arg0: i32) -> (i32, i32, i32, i32) {
    %c0_i32 = arith.constant 0 : i32
    %c0_i32_0 = arith.constant 0 : i32
    %c0_i32_1 = arith.constant 0 : i32
    %c0_i32_2 = arith.constant 0 : i32
    return %arg0, %c0_i32, %c0_i32_0, %c0_i32_1 : i32, i32, i32, i32
  }
}

</mosaic_0001>

<bundles_post_ra>
// kernel: tpu_custom_call.1
= control target key start
LH: loop header
LB: loop body
LE: loop exit
PB: predicated region body
PF: predicated region fallthrough
CT: control target
= control target key end

     0   :  { %12 = vsyncpa [#allocation5], 0  ;;  %s8446_s0 = inlined_call_operand.hbm [shape: f32[2,16,16,16], index: 0, kind: input, shape index: {}]   ;;  %s8447_s1 = inlined_call_operand.vmem [shape: bf16[16,128], index: 1, kind: input, shape index: {}]   ;;  %s8448_s2 = inlined_call_operand.vmem [shape: f32[1,128], index: 2, kind: input, shape index: {}]   ;;  %s8449_s3 = inlined_call_operand.hbm [shape: bf16[3,3,128,128], index: 3, kind: input, shape index: {}]   ;;  %s8450_s4 = inlined_call_operand.vmem [shape: f32[1,128], index: 4, kind: input, shape index: {}]   ;;  %s8451_s5 = inlined_call_operand.vmem [shape: bf16[128,16], index: 5, kind: input, shape index: {}]   ;;  %s8452_s6 = inlined_call_operand.vmem [shape: f32[1,16], index: 6, kind: input, shape index: {}]   ;;  %s8453_s7 = inlined_call_operand.hbm [shape: f32[2,16,16,16], index: 7, kind: output, shape index: {}]  }
   0x1   :  { %14 = vsyncpa [#allocation5 + $0x1], 0 }
   0x2   :  { %15 = vsyncpa [#allocation8], 0 }
   0x3   :  { %16 = vsyncpa [#allocation6], 0 }
   0x4   :  { %18 = vsyncpa [#allocation6 + $0x1], 0  ;;  %s6712_s24 = smov 0   ;;  %s6714_s25 = smov 0  }
   0x5   :  { %s6716_s26 = smov 0   ;;  %s6718_s27 = smov 0  }
   0x6 LB: > { %s6733_s28 = sadd.s32 4294967295, %s6659_s27   ;;  %s5280_s29 = sadd.s32 4294967294, %s6659_s27   ;;  %s6659_s27 = sphi %s6718_s27, %s8626_s27   ;;  %s6655_s26 = sphi %s6716_s26, %s8625_s26   ;;  %s6651_s25 = sphi %s6714_s25, %s8624_s25   ;;  %s6647_s24 = sphi %s6712_s24, %s8623_s24  }
   0x7   : > { %p44_p0 = scmp.ne.s32.totalorder %s6651_s25, %s6647_s24  ;;  %p8454_p1 = scmp.eq.s32.totalorder %s6733_s28, 0 }
   0x8   : > { %p200_p3 = scmp.eq.s32.totalorder %s5280_s29, 1  ;;  %p5281_p5 = scmp.ge.s32.totalorder %s6659_s27, 1 }
   0x9   : > { %p6742_p4 = por %p8454_p1, %p44_p0  ;;  %p207_p7 = scmp.lt.s32.totalorder %s6659_s27, 3 }
   0xa   : > { %p6747_p6 = por %p200_p3, %p44_p0  ;;  %s6661_s10 = smov [#allocation7]  }
   0xb   : > { %s8473_s30 = scalar_select %p6742_p4, 1, 0 }
   0xc   : > { %s8474_s8 = scalar_select %p6747_p6, 1, 0 }
   0xd   : > { %p6752_p8 = pnand %p5281_p5, %p207_p7  ;;  %s225_s11 = sshll.u32 %s6661_s10, 4  ;;  %s6756_s11 = int_to_ptr.vmem [resolvable:$true] %s225_s11 }
   0xe   : > { %s6768_s13 = sadd.s32 1, %s6659_s27   ;;  %s31_s14 = sadd.s32 1, %s6655_s26 }
   0xf   : > { %s8475_s9 = scalar_select %p6752_p8, 1, 0 }
  0x10   : > { %p6393_p9 = pneg %p6752_p8  ;;  %s28_s15 = ssub.s32 %s6659_s27, %s6768_s13 }
  0x11   : > { %s6531_s18 = scalar_lea.hbm %s8449_s3, 9216 }
  0x12   : > { %p6763_p11 = pnand %p6393_p9, %p8454_p1  ;;  %p6532_p12 = scmp.ne.s32.totalorder %s8449_s3, %s6531_s18 }
  0x13   : > { %p6538_p5 = scmp.lt.u32.totalorder %s6531_s18, %s8449_s3 }
  0x14   : > { %p6533_p13 = pneg %p6763_p11 }
  0x16   : > { %p6534_p0 = pnand %p6533_p13, %p6532_p12 }
  0x18   : > { %p6535_p3 = pneg %p6534_p0 }
  0x1a   : > { %p6540_p7 = pnand %p6538_p5, %p6535_p3 }
  0x1c   : > { %6543 = shalt.err (!%p6540_p7)
}
  0x1d   : > { %s6544_s23 = scalar_lea.vmem %s6756_s11, 9216  ;;  %p6552_p2 = scmp.lt.s32.totalorder %s6756_s11, %s6756_s11 }
  0x1e   : > { %p6545_p9 = scmp.ne.s32.totalorder %s6756_s11, %s6544_s23  ;;  %p6553_p6 = scmp.lt.s32.totalorder %s6544_s23, %s6544_s23 }
  0x20   : > { %p6547_p10 = pnand %p6545_p9, %p6533_p13  ;;  %p6554_p4 = por %p6553_p6, %p6552_p2 }
  0x22   : > { %p6548_p1 = pneg %p6547_p10 }
  0x24   : > { %p6555_p8 = pnand %p6554_p4, %p6548_p1 }
  0x26   : > { %6558 = shalt.err (!%p6555_p8)
}
  0x27   : > { %s6662_s29 = smov 64   ;;  %s6663_s10 = smov 4  }
  0x28   : > { %6396 = dma.hbm_to_vmem [thread:$0]  (!%p6763_p11), %s8449_s3, 9216, %s6756_s11, [#allocation8], %s6662_s29, %s6662_s29, %s6663_s10  }
  0x29   : > { %p29_p2 = scmp.eq.s32.totalorder %s28_s15, 0  ;;  %p38_p1 = scmp.ne.s32.totalorder %s6655_s26, %s6651_s25 }
  0x2a   : > { %p39_p4 = scmp.eq.s32.totalorder %s6659_s27, 0  ;;  %p6406_p6 = scmp.lt.s32.totalorder %s6659_s27, 2 }
  0x2b   : > { %s6799_s18 = scalar_select %p29_p2, %s6655_s26, %s31_s14  }
  0x2c   : > { %p40_p8 = por %p39_p4, %p38_p1  ;;  %p8477_p10 = scmp.eq.s32.totalorder %s6733_s28, 1 }
  0x2d   : > { %s248_s20 = sand.u32 1, %s6655_s26   ;;  %s5396_s21 = sshll.u32 %s6659_s27, 12 }
  0x2e   : > { %p6803_p12 = por %p8477_p10, %p38_p1  ;;  %s5284_s22 = sshll.u32 %s248_s20, 8 }
  0x2f   : > { %s6812_s16 = scalar_lea.hbm %s8446_s0, %s5396_s21  ;;  %s252_s11 = scalar_lea.vmem [#allocation4], %s5284_s22 }
  0x30   : > { %s259_s14 = sshll.u32 %s252_s11, 4  ;;  %p6814_p11 = pnand %p6406_p6, %p40_p8  ;;  %s6818_s14 = int_to_ptr.vmem [resolvable:$true] %s259_s14 }
  0x31   : > { %s6820_s29 = scalar_lea.sflag [#allocation5], %s248_s20  ;;  %s6559_s10 = scalar_lea.hbm %s6812_s16, 4096 }
  0x32   : > { %p6560_p13 = scmp.ne.s32.totalorder %s6812_s16, %s6559_s10  ;;  %p6561_p0 = pneg %p6814_p11 }
  0x33   : > { %s6564_s22 = scalar_lea.hbm %s8446_s0, 8192  ;;  %p6565_p7 = scmp.lt.u32.totalorder %s6812_s16, %s8446_s0 }
  0x34   : > { %p6562_p3 = pnand %p6561_p0, %p6560_p13  ;;  %p6566_p9 = scmp.lt.u32.totalorder %s6564_s22, %s6559_s10 }
  0x35   : > { %p6568_p1 = scmp.lt.u32.totalorder %s6559_s10, %s6812_s16 }
  0x36   : > { %p6563_p5 = pneg %p6562_p3  ;;  %p6567_p2 = por %p6566_p9, %p6565_p7 }
  0x38   : > { %p6569_p4 = por %p6568_p1, %p6567_p2 }
  0x3a   : > { %p6570_p6 = pnand %p6569_p4, %p6563_p5 }
  0x3c   : > { %6573 = shalt.err (!%p6570_p6)
}
  0x3d   : > { %s6574_s20 = scalar_lea.vmem %s6818_s14, 4096  ;;  %s6664_s11 = smov [#allocation4]  }
  0x3e   : > { %p6575_p8 = scmp.ne.s32.totalorder %s6818_s14, %s6574_s20  ;;  %s6579_s17 = sshll.u32 %s6664_s11, 4  ;;  %s6580_s17 = int_to_ptr.vmem [resolvable:$false] %s6579_s17 }
  0x3f   : > { %s6581_s21 = scalar_lea.vmem %s6580_s17, 8192  ;;  %p6582_p3 = scmp.lt.s32.totalorder %s6818_s14, %s6580_s17 }
  0x40   : > { %p6577_p10 = pnand %p6575_p8, %p6561_p0  ;;  %p6583_p7 = scmp.lt.s32.totalorder %s6581_s21, %s6574_s20 }
  0x42   : > { %p6578_p13 = pneg %p6577_p10  ;;  %p6584_p9 = por %p6583_p7, %p6582_p3 }
  0x44   : > { %p6585_p2 = pnand %p6584_p9, %p6578_p13 }
  0x46   : > { %6588 = shalt.err (!%p6585_p2)
}
  0x47   : > { %s6665_s10 = smov 128   ;;  %s6666_s22 = smov 8  }
  0x48   : > { %6400 = dma.hbm_to_vmem [thread:$0]  (!%p6814_p11), %s6812_s16, 4096, %s6818_s14, %s6820_s29, %s6665_s10, %s6665_s10, %s6666_s22  }
  0x49   : > { %p8480_p0 = scmp.ne.s32.totalorder %s8475_s9, 0 }
  0x4b   : > { %271 = sbr.rel (%p8480_p0) target bundleno = 1249 (0x4e1), region = 48 }
  0x52   : > { %s6851_s12 = sand.u32 1, %s6651_s25   ;;  %p8481_p5 = scmp.ne.s32.totalorder %s8473_s30, 0 }
  0x53   : > { %s5288_s23 = sshll.u32 %s6851_s12, 8  ;;  %s274_s20 = scalar_lea.sflag [#allocation5], %s6851_s12 }
  0x54   : > { %s6857_s11 = scalar_lea.vmem [#allocation4], %s5288_s23 }
  0x55   : > { %6634 = dma.done.wait (%p8481_p5), %s274_s20, 4096  }
  0x56   : > { %6636 = vsyncadd (%p8481_p5), %s274_s20, 4294963200  ;;  %p8482_p11 = scmp.eq.s32.totalorder %s6733_s28, 0 }
  0x58   : > { %6638 = dma.done.wait (%p8482_p11), [#allocation8], 9216   ;;  %p8483_p1 = pmov %p8482_p11 }
  0x59   : > { %v6450_v0 = vld [vmem:[%s8447_s1] sm:$0xff]   ;;  %v314_v2 = vld [vmem:[%s6857_s11 + $0x8] sm:$0xff]  ;;  %vm376_vm0 = vcmask 130048   ;;  %v315_v3 = vld [vmem:[%s6857_s11 + $0x10] sm:$0xff]  ;;  %s8273_s30 = scalar_lea.vmem [#allocation9], %s5288_s23  ;;  %s5397_s23 = sshll.u32 %s6733_s28, 12 }
  0x5a   : > { %6640 = vsyncadd (%p8483_p1), [#allocation8], 4294958080  ;;  %v313_v1 = vld [vmem:[%s6857_s11] sm:$0xff]  ;;  %5727 = vmatprep.subr.bf16.mxu0 %v6450_v0  ;;  %v316_v5 = vld [vmem:[%s6857_s11 + $0x18] sm:$0xff]  ;;  %s5197_s14 = sshll.u32 %s8273_s30, 4  ;;  %s5184_s28 = scalar_lea.sflag [#allocation6], %s6851_s12  ;;  %s8396_s14 = int_to_ptr.vmem [resolvable:$true] %s5197_s14 }
  0x5b   : > { %v345_v4 = vpack.c.bf16 %v314_v2, %v313_v1  ;;  %v317_v6 = vld [vmem:[%s6857_s11 + $0x20] sm:$0xff]  ;;  %v318_v7 = vld [vmem:[%s6857_s11 + $0x28] sm:$0xff]  ;;  %5728 = vmatpush3.bf16.msra.mxu0 %v6450_v0  ;;  %v346_v8 = vpack.c.bf16 %v316_v5, %v315_v3  ;;  %v319_v10 = vld [vmem:[%s6857_s11 + $0x30] sm:$0xff]  ;;  %v8457_v1 = vmov 0.0|0.0   ;;  %s6589_s17 = scalar_lea.vmem %s8396_s14, 4096  ;;  %s6669_s21 = smov [#allocation9]  }
  0x5c   : > { %v347_v9 = vpack.c.bf16 %v318_v7, %v317_v6  ;;  %v320_v11 = vld [vmem:[%s6857_s11 + $0x38] sm:$0xff]  ;;  %v321_v12 = vld [vmem:[%s6857_s11 + $0x40] sm:$0xff]  ;;  %v322_v13 = vld [vmem:[%s6857_s11 + $0x48] sm:$0xff]  ;;  %5777 = vmatprep.mubr.bf16.mxu1 %v8457_v1  ;;  %p6590_p4 = scmp.ne.s32.totalorder %s8396_s14, %s6589_s17  ;;  %s6593_s10 = sshll.u32 %s6669_s21, 4  ;;  %s6594_s10 = int_to_ptr.vmem [resolvable:$false] %s6593_s10 }
  0x5d   : > { %5729 = vmatprep.mubr.msk.bf16.mxu0 %vm376_vm0, %v345_v4  ;;  %v348_v14 = vpack.c.bf16 %v320_v11, %v319_v10  ;;  %v349_v15 = vpack.c.bf16 %v322_v13, %v321_v12  ;;  %v6451_v16 = vld [vmem:[#allocation7] sm:$0xff]   ;;  %v323_v17 = vld [vmem:[%s6857_s11 + $0x50] sm:$0xff]  ;;  %v324_v18 = vld [vmem:[%s6857_s11 + $0x58] sm:$0xff]  ;;  %s6595_s22 = scalar_lea.vmem %s6594_s10, 8192  ;;  %p6596_p10 = scmp.lt.s32.totalorder %s8396_s14, %s6594_s10 }
  0x5e   : > { %5730 = vmatmul.mubr.msk.bf16.vlgmr.msra.gmra.mrb[0].mxu0 %vm376_vm0, %v346_v8  ;;  %v6452_v19 = vld [vmem:[#allocation7 + $0x40] sm:$0xff]   ;;  %v326_v21 = vld [vmem:[%s6857_s11 + $0x68] sm:$0xff]  ;;  %5761 = vmatprep.subr.bf16.mxu1 %v6451_v16  ;;  %v6455_v24 = vld [vmem:[#allocation7 + $0x10] sm:$0xff]   ;;  %v350_v25 = vpack.c.bf16 %v324_v18, %v323_v17  ;;  %p6591_p6 = pnand %p6590_p4, %p6803_p12  ;;  %p6597_p13 = scmp.lt.s32.totalorder %s6595_s22, %s6589_s17 }
  0x5f   : > { %5733 = vmatprep.mubr.msk.bf16.mxu0 %vm376_vm0, %v347_v9  ;;  %v325_v20 = vld [vmem:[%s6857_s11 + $0x60] sm:$0xff]  ;;  %v6453_v22 = vld [vmem:[#allocation7 + $0x8] sm:$0xff]   ;;  %5762 = vmatpush3.bf16.msra.mxu1 %v6451_v16  ;;  %v6456_v26 = vld [vmem:[#allocation7 + $0x50] sm:$0xff]  }
  0x60   : > { %v6454_v23 = vld [vmem:[#allocation7 + $0x48] sm:$0xff]   ;;  %5825 = vmatprep.subr.bf16.mxu0 %v6452_v19  ;;  %5763 = vmatprep.subr.bf16.mxu1 %v6453_v22  ;;  %v351_v27 = vpack.c.bf16 %v326_v21, %v325_v20  ;;  %v6457_v28 = vld [vmem:[#allocation7 + $0x18] sm:$0xff]   ;;  %v327_v29 = vld [vmem:[%s6857_s11 + $0x70] sm:$0xff]  ;;  %p6592_p8 = pneg %p6591_p6  ;;  %p6598_p3 = por %p6597_p13, %p6596_p10 }
  0x61   : > { %5826 = vmatpush3.bf16.msra.mxu0 %v6452_v19  ;;  %v328_v30 = vld [vmem:[%s6857_s11 + $0x78] sm:$0xff]  ;;  %v329_v31 = vld [vmem:[%s6857_s11 + $0x80] sm:$0xff]  ;;  %v330_v32 = vld [vmem:[%s6857_s11 + $0x88] sm:$0xff] }
  0x62   : > { %5827 = vmatprep.subr.bf16.mxu0 %v6454_v23  ;;  %v6458_v33 = vld [vmem:[#allocation7 + $0x58] sm:$0xff]   ;;  %v6459_v34 = vld [vmem:[#allocation7 + $0x20] sm:$0xff]   ;;  %v352_v36 = vpack.c.bf16 %v328_v30, %v327_v29  ;;  %v6461_v37 = vld [vmem:[#allocation7 + $0x28] sm:$0xff]   ;;  %v353_v38 = vpack.c.bf16 %v330_v32, %v329_v31  ;;  %p6599_p7 = pnand %p6598_p3, %p6592_p8 }
  0x63   : > { %5764 = vmatpush3.bf16.msra.mxu1 %v6453_v22  ;;  %v6460_v35 = vld [vmem:[#allocation7 + $0x60] sm:$0xff]   ;;  %v6462_v39 = vld [vmem:[#allocation7 + $0x68] sm:$0xff]   ;;  %v331_v40 = vld [vmem:[%s6857_s11 + $0x90] sm:$0xff] }
  0x64   : > { %5765 = vmatprep.subr.bf16.mxu1 %v6455_v24  ;;  %v332_v41 = vld [vmem:[%s6857_s11 + $0x98] sm:$0xff]  ;;  %v333_v42 = vld [vmem:[%s6857_s11 + $0xa0] sm:$0xff]  ;;  %v334_v43 = vld [vmem:[%s6857_s11 + $0xa8] sm:$0xff] }
  0x65   : > { %5828 = vmatpush3.bf16.msra.mxu0 %v6454_v23  ;;  %v6463_v44 = vld [vmem:[#allocation7 + $0x30] sm:$0xff]   ;;  %v354_v45 = vpack.c.bf16 %v332_v41, %v331_v40  ;;  %v355_v46 = vpack.c.bf16 %v334_v43, %v333_v42  ;;  %v336_v48 = vld [vmem:[%s6857_s11 + $0xb8] sm:$0xff]  ;;  %v337_v49 = vld [vmem:[%s6857_s11 + $0xc0] sm:$0xff] }
  0x66   : > { %5734 = vmatmul.mubr.msk.bf16.gmra.mrb[4].mxu0 %vm376_vm0, %v348_v14  ;;  %5829 = vmatprep.subr.bf16.mxu0 %v6456_v26  ;;  %v335_v47 = vld [vmem:[%s6857_s11 + $0xb0] sm:$0xff]  ;;  %v338_v50 = vld [vmem:[%s6857_s11 + $0xc8] sm:$0xff]  ;;  %v340_v54 = vld [vmem:[%s6857_s11 + $0xd8] sm:$0xff] }
  0x67   : > { %5737 = vmatprep.mubr.msk.bf16.mxu0 %vm376_vm0, %v349_v15  ;;  %5766 = vmatpush3.bf16.msra.mxu1 %v6455_v24  ;;  %v356_v51 = vpack.c.bf16 %v336_v48, %v335_v47  ;;  %v357_v52 = vpack.c.bf16 %v338_v50, %v337_v49  ;;  %v339_v53 = vld [vmem:[%s6857_s11 + $0xd0] sm:$0xff]  ;;  %v341_v55 = vld [vmem:[%s6857_s11 + $0xe0] sm:$0xff]  ;;  %v342_v56 = vld [vmem:[%s6857_s11 + $0xe8] sm:$0xff]  ;;  %v6668_v15 = vmov 0.0  }
  0x68   : > { %5767 = vmatprep.subr.bf16.mxu1 %v6457_v28  ;;  %v358_v57 = vpack.c.bf16 %v340_v54, %v339_v53  ;;  %v359_v58 = vpack.c.bf16 %v342_v56, %v341_v55  ;;  %v343_v59 = vld [vmem:[%s6857_s11 + $0xf0] sm:$0xff]  ;;  %v344_v60 = vld [vmem:[%s6857_s11 + $0xf8] sm:$0xff]  ;;  %v6467_v2 = vld [vmem:[#allocation7 + $0x80] sm:$0xff]  }
  0x69   : > { %5830 = vmatpush3.bf16.msra.mxu0 %v6456_v26  ;;  %v360_v61 = vpack.c.bf16 %v344_v60, %v343_v59  ;;  %v6464_v62 = vld [vmem:[#allocation7 + $0x70] sm:$0xff]   ;;  %v6465_v63 = vld [vmem:[#allocation7 + $0x38] sm:$0xff]   ;;  %v6473_v3 = vld [vmem:[#allocation7 + $0xc0] sm:$0xff]  }
  0x6a   : > { %5831 = vmatprep.subr.bf16.mxu0 %v6458_v33  ;;  %v6466_v0 = vld [vmem:[#allocation7 + $0x78] sm:$0xff]   ;;  %v6923_v4 = vld [vmem:[%s8448_s2] ss:$0 sm:$0xff]  ;;  %v6468_v22 = vld [vmem:[#allocation7 + $0x88] sm:$0xff]  }
  0x6b   : > { %5768 = vmatpush3.bf16.msra.mxu1 %v6457_v28  ;;  %v6474_v23 = vld [vmem:[#allocation7 + $0xc8] sm:$0xff]   ;;  %v6469_v31 = vld [vmem:[#allocation7 + $0x90] sm:$0xff]   ;;  %v6471_v55 = vld [vmem:[#allocation7 + $0xa0] sm:$0xff]  }
  0x6c   : > { %5769 = vmatprep.subr.bf16.mxu1 %v6459_v34  ;;  %v6476_v32 = vld [vmem:[#allocation7 + $0xd0] sm:$0xff]   ;;  %v6478_v56 = vld [vmem:[#allocation7 + $0xe0] sm:$0xff]  }
  0x6d   : > { %5832 = vmatpush3.bf16.msra.mxu0 %v6458_v33 }
  0x6e   : > { %5738 = vmatmul.mubr.msk.bf16.gmra.mrb[8].mxu0 %vm376_vm0, %v350_v25  ;;  %5833 = vmatprep.subr.bf16.mxu0 %v6460_v35 }
  0x6f   : > { %5741 = vmatprep.mubr.msk.bf16.mxu0 %vm376_vm0, %v351_v27  ;;  %5770 = vmatpush3.bf16.msra.mxu1 %v6459_v34 }
  0x70   : > { %5771 = vmatprep.subr.bf16.mxu1 %v6461_v37 }
  0x71   : > { %5834 = vmatpush3.bf16.msra.mxu0 %v6460_v35 }
  0x72   : > { %5835 = vmatprep.subr.bf16.mxu0 %v6462_v39 }
  0x73   : > { %5772 = vmatpush3.bf16.msra.mxu1 %v6461_v37 }
  0x74   : > { %5773 = vmatprep.subr.bf16.mxu1 %v6463_v44 }
  0x75   : > { %5836 = vmatpush3.bf16.msra.mxu0 %v6462_v39 }
  0x76   : > { %5742 = vmatmul.mubr.msk.bf16.gmra.mrb[12].mxu0 %vm376_vm0, %v352_v36  ;;  %5837 = vmatprep.subr.bf16.mxu0 %v6464_v62 }
  0x77   : > { %5745 = vmatprep.mubr.msk.bf16.mxu0 %vm376_vm0, %v353_v38  ;;  %5774 = vmatpush3.bf16.msra.mxu1 %v6463_v44  ;;  %v6470_v44 = vld [vmem:[#allocation7 + $0x98] sm:$0xff]  }
  0x78   : > { %5775 = vmatprep.subr.bf16.mxu1 %v6465_v63 }
  0x79   : > { %5838 = vmatpush3.bf16.msra.mxu0 %v6464_v62 }
  0x7a   : > { %5839 = vmatprep.subr.bf16.mxu0 %v6466_v0 }
  0x7b   : > { %5776 = vmatpush3.bf16.msra.mxu1 %v6465_v63 }
  0x7c   : > { %5889 = vmatprep.subr.bf16.mxu1 %v6467_v2 }
  0x7d   : > { %5840 = vmatpush3.bf16.msra.mxu0 %v6466_v0 }
  0x7e   : > { %5746 = vmatmul.mubr.msk.bf16.gmra.mrb[16].mxu0 %vm376_vm0, %v354_v45  ;;  %5953 = vmatprep.subr.bf16.mxu0 %v6473_v3  ;;  %v6477_v45 = vld [vmem:[#allocation7 + $0xd8] sm:$0xff]  }
  0x7f   : > { %5749 = vmatprep.mubr.msk.bf16.mxu0 %vm376_vm0, %v355_v46 }
  0x86   : > { %5750 = vmatmul.mubr.msk.bf16.gmra.mrb[20].mxu0 %vm376_vm0, %v356_v51 }
  0x87   : > { %5753 = vmatprep.mubr.msk.bf16.mxu0 %vm376_vm0, %v357_v52 }
  0x8e   : > { %5754 = vmatmul.mubr.msk.bf16.gmra.mrb[24].mxu0 %vm376_vm0, %v358_v57 }
  0x8f   : > { %5757 = vmatprep.mubr.msk.bf16.mxu0 %vm376_vm0, %v359_v58 }
  0x96   : > { %5758 = vmatmul.mubr.msk.bf16.gmra.mrb[28].mxu0 %vm376_vm0, %v360_v61 }
  0x97   : > { %5841 = vmatprep.mubr.bf16.mxu0 %v8457_v1 }
 0x131   : > { %v5731_v5 = vpop.f32.mrb[0].mxu0 }
 0x132   : > { %v468_v6 = vadd.f32 %v5731_v5, %v6923_v4  ;;  %v459_v7 = vpop.f32.mrb[1].mxu0 }
 0x133   : > { %v460_v8 = vadd.f32 %v6923_v4, %v459_v7  ;;  %v5732_v9 = vpop.f32.mrb[2].mxu0 }
 0x134   : > { %v588_v10 = vmax.f32 %v468_v6, 0.0  ;;  %v471_v11 = vadd.f32 %v5732_v9, %v6923_v4  ;;  %v462_v12 = vpop.f32.mrb[3].mxu0 }
 0x135   : > { %v586_v13 = vmax.f32 %v460_v8, 0.0  ;;  %v463_v14 = vadd.f32 %v6923_v4, %v462_v12 }
 0x136   : > { %v6930_v16 = vpack.c.bf16 %v588_v10, %v6668_v15  ;;  %v589_v17 = vmax.f32 %v471_v11, 0.0 }
 0x137   : > { %v6933_v18 = vpack.c.bf16 %v586_v13, %v6668_v15  ;;  %v587_v19 = vmax.f32 %v463_v14, 0.0  ;;  %v6475_v14 = vld [vmem:[#allocation7 + $0xb0] sm:$0xff]  }
 0x138   : > { %v6935_v20 = vpack.c.bf16 %v589_v17, %v588_v10  ;;  %v6938_v21 = vpack.c.bf16 %v6668_v15, %v589_v17  ;;  %v6481_v17 = vld [vmem:[#allocation7 + $0xf0] sm:$0xff]  }
 0x139   : > { %v6941_v24 = vpack.c.bf16 %v6668_v15, %v587_v19  ;;  %v6943_v25 = vpack.c.bf16 %v587_v19, %v586_v13  ;;  %5778 = vmatmul.mubr.bf16.vlgmr.msra.gmra.mrb[0].mxu1 %v6933_v18  ;;  %5842 = vmatmul.mubr.bf16.vlgmr.msra.gmra.mrb[32].mxu0 %v6933_v18  ;;  %v5735_v26 = vpop.f32.mrb[4].mxu0 }
 0x13a   : > { %8484 = vst [vmem:[#allocation13_spill] sm:$0xff] %v6935_v20  ;;  %5890 = vmatpush3.bf16.msra.mxu1 %v6467_v2  ;;  %v484_v27 = vadd.f32 %v5735_v26, %v6923_v4  ;;  %v475_v28 = vpop.f32.mrb[5].mxu0  ;;  %5954 = vmatpush3.bf16.msra.mxu0 %v6473_v3  ;;  %v6472_v2 = vld [vmem:[#allocation7 + $0xa8] sm:$0xff]  }
 0x13b   : > { %5781 = vmatprep.mubr.bf16.mxu1 %v6941_v24  ;;  %5845 = vmatprep.mubr.bf16.mxu0 %v6941_v24  ;;  %v476_v29 = vadd.f32 %v6923_v4, %v475_v28  ;;  %v5736_v30 = vpop.f32.mrb[6].mxu0  ;;  %v6480_v3 = vld [vmem:[#allocation7 + $0xe8] sm:$0xff]  }
 0x13c   : > { %v592_v33 = vmax.f32 %v484_v27, 0.0  ;;  %v487_v34 = vadd.f32 %v5736_v30, %v6923_v4  ;;  %v478_v35 = vpop.f32.mrb[7].mxu0  ;;  %5891 = vmatprep.subr.bf16.mxu1 %v6468_v22  ;;  %5955 = vmatprep.subr.bf16.mxu0 %v6474_v23 }
 0x13d   : > { %v590_v36 = vmax.f32 %v476_v29, 0.0  ;;  %v479_v37 = vadd.f32 %v6923_v4, %v478_v35 }
 0x13e   : > { %v6954_v38 = vpack.c.bf16 %v592_v33, %v6668_v15  ;;  %v593_v39 = vmax.f32 %v487_v34, 0.0  ;;  %5892 = vmatpush3.bf16.msra.mxu1 %v6468_v22  ;;  %5956 = vmatpush3.bf16.msra.mxu0 %v6474_v23 }
 0x13f   : > { %v6957_v40 = vpack.c.bf16 %v590_v36, %v6668_v15  ;;  %v591_v41 = vmax.f32 %v479_v37, 0.0  ;;  %5893 = vmatprep.subr.bf16.mxu1 %v6469_v31  ;;  %5957 = vmatprep.subr.bf16.mxu0 %v6476_v32 }
 0x140   : > { %v6959_v42 = vpack.c.bf16 %v593_v39, %v592_v33  ;;  %v6962_v43 = vpack.c.bf16 %v6668_v15, %v593_v39  ;;  %v6482_v33 = vld [vmem:[#allocation7 + $0xf8] sm:$0xff]  }
 0x141   : > { %v6964_v46 = vpack.c.bf16 %v591_v41, %v590_v36  ;;  %5782 = vmatmul.mubr.bf16.gmra.mrb[4].mxu1 %v6935_v20  ;;  %5846 = vmatmul.mubr.bf16.gmra.mrb[36].mxu0 %v6935_v20  ;;  %v5739_v47 = vpop.f32.mrb[8].mxu0  ;;  %v6978_v61 = vpack.c.bf16 %v6668_v15, %v591_v41 }
 0x142   : > { %v500_v48 = vadd.f32 %v5739_v47, %v6923_v4  ;;  %5785 = vmatprep.mubr.bf16.mxu1 %v6957_v40  ;;  %5849 = vmatprep.mubr.bf16.mxu0 %v6957_v40  ;;  %v491_v49 = vpop.f32.mrb[9].mxu0 }
 0x143   : > { %v492_v50 = vadd.f32 %v6923_v4, %v491_v49  ;;  %v5740_v51 = vpop.f32.mrb[10].mxu0  ;;  %5894 = vmatpush3.bf16.msra.mxu1 %v6469_v31  ;;  %5958 = vmatpush3.bf16.msra.mxu0 %v6476_v32  ;;  %v6479_v32 = vld [vmem:[#allocation7 + $0xb8] sm:$0xff]  }
 0x144   : > { %v596_v52 = vmax.f32 %v500_v48, 0.0  ;;  %v503_v53 = vadd.f32 %v5740_v51, %v6923_v4  ;;  %v494_v54 = vpop.f32.mrb[11].mxu0  ;;  %5895 = vmatprep.subr.bf16.mxu1 %v6470_v44  ;;  %5959 = vmatprep.subr.bf16.mxu0 %v6477_v45  ;;  %v7018_v48 = vld [vmem:[#allocation7 + $0x100] sm:$0xff]  }
 0x145   : > { %v594_v57 = vmax.f32 %v492_v50, 0.0  ;;  %v495_v58 = vadd.f32 %v6923_v4, %v494_v54 }
 0x146   : > { %v6975_v59 = vpack.c.bf16 %v596_v52, %v6668_v15  ;;  %v597_v60 = vmax.f32 %v503_v53, 0.0 }
 0x147   : > { %v595_v62 = vmax.f32 %v495_v58, 0.0  ;;  %5896 = vmatpush3.bf16.msra.mxu1 %v6470_v44  ;;  %5960 = vmatpush3.bf16.msra.mxu0 %v6477_v45  ;;  %v6995_v19 = vpack.c.bf16 %v594_v57, %v6668_v15 }
 0x148   : > { %v6980_v63 = vpack.c.bf16 %v597_v60, %v596_v52  ;;  %v6983_v0 = vpack.c.bf16 %v6668_v15, %v597_v60  ;;  %5897 = vmatprep.subr.bf16.mxu1 %v6471_v55  ;;  %5961 = vmatprep.subr.bf16.mxu0 %v6478_v56 }
 0x149   : > { %v6985_v5 = vpack.c.bf16 %v595_v62, %v594_v57  ;;  %5786 = vmatmul.mubr.bf16.gmra.mrb[8].mxu1 %v6978_v61  ;;  %5850 = vmatmul.mubr.bf16.gmra.mrb[40].mxu0 %v6978_v61  ;;  %v5743_v6 = vpop.f32.mrb[12].mxu0  ;;  %v7002_v29 = vpack.c.bf16 %v6668_v15, %v595_v62  ;;  %v7033_v57 = vld [vmem:[#allocation7 + $0x140] sm:$0xff]  }
 0x14a   : > { %8485 = vst [vmem:[#allocation14_spill] sm:$0xff] %v6980_v63  ;;  %5789 = vmatprep.mubr.bf16.mxu1 %v6959_v42  ;;  %5853 = vmatprep.mubr.bf16.mxu0 %v6959_v42  ;;  %v516_v7 = vadd.f32 %v5743_v6, %v6923_v4  ;;  %v507_v8 = vpop.f32.mrb[13].mxu0 }
 0x14b   : > { %v508_v9 = vadd.f32 %v6923_v4, %v507_v8  ;;  %v5744_v10 = vpop.f32.mrb[14].mxu0  ;;  %5898 = vmatpush3.bf16.msra.mxu1 %v6471_v55  ;;  %5962 = vmatpush3.bf16.msra.mxu0 %v6478_v56 }
 0x14c   : > { %v600_v11 = vmax.f32 %v516_v7, 0.0  ;;  %v519_v12 = vadd.f32 %v5744_v10, %v6923_v4  ;;  %v510_v13 = vpop.f32.mrb[15].mxu0  ;;  %5899 = vmatprep.subr.bf16.mxu1 %v6472_v2  ;;  %5963 = vmatprep.subr.bf16.mxu0 %v6480_v3 }
 0x14d   : > { %v598_v22 = vmax.f32 %v508_v9, 0.0  ;;  %v511_v23 = vadd.f32 %v6923_v4, %v510_v13 }
 0x14e   : > { %v6999_v26 = vpack.c.bf16 %v600_v11, %v6668_v15  ;;  %v601_v27 = vmax.f32 %v519_v12, 0.0 }
 0x14f   : > { %v599_v28 = vmax.f32 %v511_v23, 0.0  ;;  %5900 = vmatpush3.bf16.msra.mxu1 %v6472_v2  ;;  %5964 = vmatpush3.bf16.msra.mxu0 %v6480_v3  ;;  %v7022_v51 = vpack.c.bf16 %v598_v22, %v6668_v15 }
 0x150   : > { %v7004_v30 = vpack.c.bf16 %v601_v27, %v600_v11  ;;  %v7007_v31 = vpack.c.bf16 %v6668_v15, %v601_v27  ;;  %5901 = vmatprep.subr.bf16.mxu1 %v6475_v14  ;;  %5965 = vmatprep.subr.bf16.mxu0 %v6481_v17 }
 0x151   : > { %5790 = vmatmul.mubr.bf16.gmra.mrb[12].mxu1 %v6995_v19  ;;  %5854 = vmatmul.mubr.bf16.gmra.mrb[44].mxu0 %v6995_v19  ;;  %v7011_v34 = vpack.c.bf16 %v599_v28, %v598_v22  ;;  %v5747_v35 = vpop.f32.mrb[16].mxu0  ;;  %8486 = vst [vmem:[#allocation15_spill] sm:$0xff] %v7022_v51 }
 0x152   : > { %5793 = vmatprep.mubr.bf16.mxu1 %v7002_v29  ;;  %5857 = vmatprep.mubr.bf16.mxu0 %v7002_v29  ;;  %v532_v36 = vadd.f32 %v5747_v35, %v6923_v4  ;;  %v523_v37 = vpop.f32.mrb[17].mxu0 }
 0x153   : > { %v524_v39 = vadd.f32 %v6923_v4, %v523_v37  ;;  %v5748_v41 = vpop.f32.mrb[18].mxu0  ;;  %5902 = vmatpush3.bf16.msra.mxu1 %v6475_v14  ;;  %5966 = vmatpush3.bf16.msra.mxu0 %v6481_v17  ;;  %v7050_v14 = vpack.c.bf16 %v6668_v15, %v599_v28 }
 0x154   : > { %v604_v44 = vmax.f32 %v532_v36, 0.0  ;;  %v535_v45 = vadd.f32 %v5748_v41, %v6923_v4  ;;  %v526_v47 = vpop.f32.mrb[19].mxu0  ;;  %5903 = vmatprep.subr.bf16.mxu1 %v6479_v32  ;;  %5967 = vmatprep.subr.bf16.mxu0 %v6482_v33 }
 0x155   : > { %v602_v49 = vmax.f32 %v524_v39, 0.0  ;;  %v527_v50 = vadd.f32 %v6923_v4, %v526_v47  ;;  %8487 = vst [vmem:[#allocation16_spill] sm:$0xff] %v7050_v14 }
 0x156   : > { %v7025_v52 = vpack.c.bf16 %v604_v44, %v6668_v15  ;;  %v605_v53 = vmax.f32 %v535_v45, 0.0 }
 0x157   : > { %v603_v54 = vmax.f32 %v527_v50, 0.0  ;;  %5904 = vmatpush3.bf16.msra.mxu1 %v6479_v32  ;;  %5968 = vmatpush3.bf16.msra.mxu0 %v6482_v33  ;;  %v7070_v45 = vpack.c.bf16 %v602_v49, %v6668_v15 }
 0x158   : > { %v7027_v55 = vpack.c.bf16 %v605_v53, %v604_v44  ;;  %v7030_v56 = vpack.c.bf16 %v6668_v15, %v605_v53  ;;  %6017 = vmatprep.subr.bf16.mxu1 %v7018_v48  ;;  %6081 = vmatprep.subr.bf16.mxu0 %v7033_v57 }
 0x159   : > { %5794 = vmatmul.mubr.bf16.gmra.mrb[16].mxu1 %v6980_v63  ;;  %5858 = vmatmul.mubr.bf16.gmra.mrb[48].mxu0 %v6980_v63  ;;  %v7037_v58 = vpack.c.bf16 %v603_v54, %v602_v49  ;;  %v5751_v60 = vpop.f32.mrb[20].mxu0 }
 0x15a   : > { %5797 = vmatprep.mubr.bf16.mxu1 %v7022_v51  ;;  %5861 = vmatprep.mubr.bf16.mxu0 %v7022_v51  ;;  %v548_v62 = vadd.f32 %v5751_v60, %v6923_v4  ;;  %v539_v2 = vpop.f32.mrb[21].mxu0 }
 0x15b   : > { %v540_v3 = vadd.f32 %v6923_v4, %v539_v2  ;;  %v5752_v6 = vpop.f32.mrb[22].mxu0 }
 0x15c   : > { %v608_v7 = vmax.f32 %v548_v62, 0.0  ;;  %v551_v8 = vadd.f32 %v5752_v6, %v6923_v4  ;;  %v542_v9 = vpop.f32.mrb[23].mxu0 }
 0x15d   : > { %v606_v10 = vmax.f32 %v540_v3, 0.0  ;;  %v543_v11 = vadd.f32 %v6923_v4, %v542_v9  ;;  %v7080_v3 = vpack.c.bf16 %v6668_v15, %v603_v54 }
 0x15e   : > { %v7047_v12 = vpack.c.bf16 %v608_v7, %v6668_v15  ;;  %v609_v13 = vmax.f32 %v551_v8, 0.0 }
 0x15f   : > { %v607_v17 = vmax.f32 %v543_v11, 0.0 }
 0x160   : > { %v7052_v22 = vpack.c.bf16 %v609_v13, %v608_v7  ;;  %v7055_v23 = vpack.c.bf16 %v6668_v15, %v609_v13 }
 0x161   : > { %5798 = vmatmul.mubr.bf16.gmra.mrb[20].mxu1 %v7050_v14  ;;  %5862 = vmatmul.mubr.bf16.gmra.mrb[52].mxu0 %v7050_v14  ;;  %v7060_v27 = vpack.c.bf16 %v6668_v15, %v607_v17  ;;  %v7062_v32 = vpack.c.bf16 %v607_v17, %v606_v10  ;;  %v5755_v33 = vpop.f32.mrb[24].mxu0 }
 0x162   : > { %5801 = vmatprep.mubr.bf16.mxu1 %v7004_v30  ;;  %5865 = vmatprep.mubr.bf16.mxu0 %v7004_v30  ;;  %v564_v28 = vadd.f32 %v5755_v33, %v6923_v4  ;;  %v555_v35 = vpop.f32.mrb[25].mxu0 }
 0x163   : > { %8488 = vst [vmem:[#allocation17_spill] sm:$0xff] %v7060_v27  ;;  %v556_v36 = vadd.f32 %v6923_v4, %v555_v35  ;;  %v5756_v37 = vpop.f32.mrb[26].mxu0 }
 0x164   : > { %v612_v39 = vmax.f32 %v564_v28, 0.0  ;;  %v567_v41 = vadd.f32 %v5756_v37, %v6923_v4  ;;  %v558_v44 = vpop.f32.mrb[27].mxu0 }
 0x165   : > { %v610_v47 = vmax.f32 %v556_v36, 0.0  ;;  %v559_v50 = vadd.f32 %v6923_v4, %v558_v44 }
 0x166   : > { %v7074_v53 = vpack.c.bf16 %v612_v39, %v6668_v15  ;;  %v613_v60 = vmax.f32 %v567_v41, 0.0 }
 0x167   : > { %v7077_v62 = vpack.c.bf16 %v610_v47, %v6668_v15  ;;  %v611_v2 = vmax.f32 %v559_v50, 0.0 }
 0x168   : > { %v7082_v6 = vpack.c.bf16 %v613_v60, %v612_v39  ;;  %v7085_v7 = vpack.c.bf16 %v6668_v15, %v613_v60  ;;  %v7101_v39 = vpack.c.bf16 %v606_v10, %v6668_v15 }
 0x169   : > { %5802 = vmatmul.mubr.bf16.gmra.mrb[24].mxu1 %v7070_v45  ;;  %5866 = vmatmul.mubr.bf16.gmra.mrb[56].mxu0 %v7070_v45  ;;  %v7090_v49 = vpack.c.bf16 %v6668_v15, %v611_v2  ;;  %v7092_v8 = vpack.c.bf16 %v611_v2, %v610_v47  ;;  %v5759_v9 = vpop.f32.mrb[28].mxu0 }
 0x16a   : > { %5805 = vmatprep.mubr.bf16.mxu1 %v7080_v3  ;;  %5869 = vmatprep.mubr.bf16.mxu0 %v7080_v3  ;;  %v580_v54 = vadd.f32 %v5759_v9, %v6923_v4  ;;  %v571_v11 = vpop.f32.mrb[29].mxu0  ;;  %8489 = vst [vmem:[#allocation18_spill] sm:$0xff] %v7101_v39  ;;  %v6490_v9 = vld [vmem:[#allocation7 + $0x148] sm:$0xff]  }
 0x16b   : > { %v572_v13 = vadd.f32 %v6923_v4, %v571_v11  ;;  %v5760_v17 = vpop.f32.mrb[30].mxu0  ;;  %v6492_v11 = vld [vmem:[#allocation7 + $0x150] sm:$0xff]  }
 0x16c   : > { %v616_v33 = vmax.f32 %v580_v54, 0.0  ;;  %v583_v28 = vadd.f32 %v5760_v17, %v6923_v4  ;;  %v574_v35 = vpop.f32.mrb[31].mxu0  ;;  %v6485_v54 = vld [vmem:[#allocation7 + $0x110] sm:$0xff]   ;;  %v6496_v17 = vld [vmem:[#allocation7 + $0x168] sm:$0xff]  }
 0x16d   : > { %v614_v36 = vmax.f32 %v572_v13, 0.0  ;;  %v575_v37 = vadd.f32 %v6923_v4, %v574_v35  ;;  %v6486_v13 = vld [vmem:[#allocation7 + $0x118] sm:$0xff]  }
 0x16e   : > { %v7104_v41 = vpack.c.bf16 %v616_v33, %v6668_v15  ;;  %v617_v44 = vmax.f32 %v583_v28, 0.0  ;;  %v6497_v28 = vld [vmem:[#allocation7 + $0x170] sm:$0xff]   ;;  %v6495_v35 = vld [vmem:[#allocation7 + $0x138] sm:$0xff]  }
 0x16f   : > { %v7107_v47 = vpack.c.bf16 %v614_v36, %v6668_v15  ;;  %v615_v50 = vmax.f32 %v575_v37, 0.0  ;;  %v6499_v37 = vld [vmem:[#allocation7 + $0x180] sm:$0xff]  }
 0x170   : > { %v7110_v60 = vpack.c.bf16 %v6668_v15, %v617_v44  ;;  %v7112_v2 = vpack.c.bf16 %v617_v44, %v616_v33  ;;  %v6491_v33 = vld [vmem:[#allocation7 + $0x130] sm:$0xff]   ;;  %v6505_v44 = vld [vmem:[#allocation7 + $0x1c0] sm:$0xff]  }
 0x171   : > { %8490 = vst [vmem:[#allocation19_spill] sm:$0xff] %v7107_v47  ;;  %5806 = vmatmul.mubr.bf16.gmra.mrb[28].mxu1 %v7027_v55  ;;  %5870 = vmatmul.mubr.bf16.gmra.mrb[60].mxu0 %v7027_v55  ;;  %v7117_v4 = vpack.c.bf16 %v6668_v15, %v615_v50  ;;  %v7119_v10 = vpack.c.bf16 %v615_v50, %v614_v36  ;;  %v6484_v15 = vld [vmem:[#allocation7 + $0x108] sm:$0xff]   ;;  %v6498_v36 = vld [vmem:[#allocation7 + $0x178] sm:$0xff]  }
 0x172   : > { %8491 = vst [vmem:[#allocation20_spill] sm:$0xff] %v7112_v2  ;;  %5809 = vmatprep.mubr.bf16.mxu1 %v7101_v39  ;;  %5873 = vmatprep.mubr.bf16.mxu0 %v7101_v39  ;;  %v6500_v50 = vld [vmem:[#allocation7 + $0x188] sm:$0xff]  }
 0x173   : > { %8492 = vst [vmem:[#allocation21_spill] sm:$0xff] %v7117_v4 }
 0x179   : > { %5810 = vmatmul.mubr.bf16.gmra.mrb[32].mxu1 %v7060_v27  ;;  %5874 = vmatmul.mubr.bf16.gmra.mrb[64].mxu0 %v7060_v27 }
 0x17a   : > { %5813 = vmatprep.mubr.bf16.mxu1 %v7052_v22  ;;  %5877 = vmatprep.mubr.bf16.mxu0 %v7052_v22 }
 0x181   : > { %5814 = vmatmul.mubr.bf16.gmra.mrb[36].mxu1 %v7077_v62  ;;  %5878 = vmatmul.mubr.bf16.gmra.mrb[68].mxu0 %v7077_v62 }
 0x182   : > { %5817 = vmatprep.mubr.bf16.mxu1 %v7090_v49  ;;  %5881 = vmatprep.mubr.bf16.mxu0 %v7090_v49 }
 0x189   : > { %5818 = vmatmul.mubr.bf16.gmra.mrb[40].mxu1 %v7082_v6  ;;  %5882 = vmatmul.mubr.bf16.gmra.mrb[72].mxu0 %v7082_v6 }
 0x18a   : > { %5821 = vmatprep.mubr.bf16.mxu1 %v7107_v47  ;;  %5885 = vmatprep.mubr.bf16.mxu0 %v7107_v47 }
 0x191   : > { %5822 = vmatmul.mubr.bf16.gmra.mrb[44].mxu1 %v7117_v4  ;;  %5886 = vmatmul.mubr.bf16.gmra.mrb[76].mxu0 %v7117_v4 }
 0x192   : > { %5969 = vmatprep.mubr.bf16.mxu0 %v6943_v25  ;;  %5905 = vmatprep.mubr.bf16.mxu1 %v8457_v1 }
 0x199   : > { %5906 = vmatmul.mubr.bf16.vlgmr.msra.gmra.mrb[48].mxu1 %v6933_v18  ;;  %5970 = vmatmul.mubr.bf16.vlgmr.msra.gmra.mrb[80].mxu0 %v6930_v16  ;;  %v6493_v18 = vld [vmem:[#allocation7 + $0x158] sm:$0xff]  }
 0x19a   : > { %6018 = vmatpush3.bf16.msra.mxu1 %v7018_v48  ;;  %5909 = vmatprep.mubr.bf16.mxu1 %v6941_v24  ;;  %v6487_v24 = vld [vmem:[#allocation7 + $0x120] sm:$0xff]  }
 0x19b   : > { %5973 = vmatprep.mubr.bf16.mxu0 %v6938_v21  ;;  %6019 = vmatprep.subr.bf16.mxu1 %v6484_v15  ;;  %v6494_v48 = vld [vmem:[#allocation7 + $0x160] sm:$0xff]  }
 0x19c   : > { %6082 = vmatpush3.bf16.msra.mxu0 %v7033_v57  ;;  %v6488_v57 = vld [vmem:[#allocation7 + $0x128] sm:$0xff]  }
 0x19d   : > { %6083 = vmatprep.subr.bf16.mxu0 %v6490_v9 }
 0x19e   : > { %6020 = vmatpush3.bf16.msra.mxu1 %v6484_v15  ;;  %v6506_v15 = vld [vmem:[#allocation7 + $0x1c8] sm:$0xff]  }
 0x19f   : > { %6021 = vmatprep.subr.bf16.mxu1 %v6485_v54 }
 0x1a0   : > { %6084 = vmatpush3.bf16.msra.mxu0 %v6490_v9  ;;  %v6501_v9 = vld [vmem:[#allocation7 + $0x190] sm:$0xff]  }
 0x1a1   : > { %5910 = vmatmul.mubr.bf16.gmra.mrb[52].mxu1 %v6935_v20  ;;  %5974 = vmatmul.mubr.bf16.gmra.mrb[84].mxu0 %v6964_v46 }
 0x1a2   : > { %5913 = vmatprep.mubr.bf16.mxu1 %v6957_v40  ;;  %5977 = vmatprep.mubr.bf16.mxu0 %v6954_v38 }
 0x1a3   : > { %6022 = vmatpush3.bf16.msra.mxu1 %v6485_v54  ;;  %6085 = vmatprep.subr.bf16.mxu0 %v6492_v11  ;;  %v6508_v54 = vld [vmem:[#allocation7 + $0x1d0] sm:$0xff]  }
 0x1a4   : > { %6023 = vmatprep.subr.bf16.mxu1 %v6486_v13  ;;  %6086 = vmatpush3.bf16.msra.mxu0 %v6492_v11  ;;  %v6502_v11 = vld [vmem:[#allocation7 + $0x198] sm:$0xff]  }
 0x1a5   : > { %6087 = vmatprep.subr.bf16.mxu0 %v6493_v18 }
 0x1a7   : > { %6024 = vmatpush3.bf16.msra.mxu1 %v6486_v13  ;;  %v6510_v13 = vld [vmem:[#allocation7 + $0x1e0] sm:$0xff]  }
 0x1a8   : > { %6025 = vmatprep.subr.bf16.mxu1 %v6487_v24  ;;  %6088 = vmatpush3.bf16.msra.mxu0 %v6493_v18  ;;  %v6504_v18 = vld [vmem:[#allocation7 + $0x1a8] sm:$0xff]  }
 0x1a9   : > { %5914 = vmatmul.mubr.bf16.gmra.mrb[56].mxu1 %v6978_v61  ;;  %5978 = vmatmul.mubr.bf16.gmra.mrb[88].mxu0 %v6962_v43 }
 0x1aa   : > { %5917 = vmatprep.mubr.bf16.mxu1 %v6959_v42  ;;  %5981 = vmatprep.mubr.bf16.mxu0 %v6985_v5 }
 0x1ab   : > { %6026 = vmatpush3.bf16.msra.mxu1 %v6487_v24  ;;  %6089 = vmatprep.subr.bf16.mxu0 %v6494_v48 }
 0x1ac   : > { %6027 = vmatprep.subr.bf16.mxu1 %v6488_v57  ;;  %6090 = vmatpush3.bf16.msra.mxu0 %v6494_v48 }
 0x1ad   : > { %6091 = vmatprep.subr.bf16.mxu0 %v6496_v17 }
 0x1af   : > { %6028 = vmatpush3.bf16.msra.mxu1 %v6488_v57  ;;  %v6507_v57 = vld [vmem:[#allocation7 + $0x1b0] sm:$0xff]  }
 0x1b0   : > { %6029 = vmatprep.subr.bf16.mxu1 %v6491_v33  ;;  %6092 = vmatpush3.bf16.msra.mxu0 %v6496_v17 }
 0x1b1   : > { %5918 = vmatmul.mubr.bf16.gmra.mrb[60].mxu1 %v6995_v19  ;;  %5982 = vmatmul.mubr.bf16.gmra.mrb[92].mxu0 %v6975_v59 }
 0x1b2   : > { %5921 = vmatprep.mubr.bf16.mxu1 %v7002_v29  ;;  %5985 = vmatprep.mubr.bf16.mxu0 %v6983_v0 }
 0x1b3   : > { %6030 = vmatpush3.bf16.msra.mxu1 %v6491_v33  ;;  %6093 = vmatprep.subr.bf16.mxu0 %v6497_v28 }
 0x1b4   : > { %6031 = vmatprep.subr.bf16.mxu1 %v6495_v35  ;;  %6094 = vmatpush3.bf16.msra.mxu0 %v6497_v28 }
 0x1b5   : > { %6095 = vmatprep.subr.bf16.mxu0 %v6498_v36 }
 0x1b7   : > { %6032 = vmatpush3.bf16.msra.mxu1 %v6495_v35 }
 0x1b8   : > { %6096 = vmatpush3.bf16.msra.mxu0 %v6498_v36  ;;  %6145 = vmatprep.subr.bf16.mxu1 %v6499_v37 }
 0x1b9   : > { %5922 = vmatmul.mubr.bf16.gmra.mrb[64].mxu1 %v6980_v63  ;;  %5986 = vmatmul.mubr.bf16.gmra.mrb[96].mxu0 %v7011_v34 }
 0x1ba   : > { %5925 = vmatprep.mubr.bf16.mxu1 %v7022_v51  ;;  %5989 = vmatprep.mubr.bf16.mxu0 %v6999_v26 }
 0x1bb   : > { %6209 = vmatprep.subr.bf16.mxu0 %v6505_v44 }
 0x1c1   : > { %5926 = vmatmul.mubr.bf16.gmra.mrb[68].mxu1 %v7050_v14  ;;  %5990 = vmatmul.mubr.bf16.gmra.mrb[100].mxu0 %v7007_v31 }
 0x1c2   : > { %5929 = vmatprep.mubr.bf16.mxu1 %v7004_v30  ;;  %5993 = vmatprep.mubr.bf16.mxu0 %v7037_v58 }
 0x1c9   : > { %5930 = vmatmul.mubr.bf16.gmra.mrb[72].mxu1 %v7070_v45  ;;  %5994 = vmatmul.mubr.bf16.gmra.mrb[104].mxu0 %v7025_v52 }
 0x1ca   : > { %5933 = vmatprep.mubr.bf16.mxu1 %v7080_v3  ;;  %5997 = vmatprep.mubr.bf16.mxu0 %v7030_v56 }
 0x1d1   : > { %5934 = vmatmul.mubr.bf16.gmra.mrb[76].mxu1 %v7027_v55  ;;  %5998 = vmatmul.mubr.bf16.gmra.mrb[108].mxu0 %v7062_v32 }
 0x1d2   : > { %5937 = vmatprep.mubr.bf16.mxu1 %v7101_v39  ;;  %6001 = vmatprep.mubr.bf16.mxu0 %v7047_v12 }
 0x1d9   : > { %5938 = vmatmul.mubr.bf16.gmra.mrb[80].mxu1 %v7060_v27  ;;  %6002 = vmatmul.mubr.bf16.gmra.mrb[112].mxu0 %v7055_v23 }
 0x1da   : > { %5941 = vmatprep.mubr.bf16.mxu1 %v7052_v22  ;;  %6005 = vmatprep.mubr.bf16.mxu0 %v7092_v8 }
 0x1e1   : > { %5942 = vmatmul.mubr.bf16.gmra.mrb[84].mxu1 %v7077_v62  ;;  %6006 = vmatmul.mubr.bf16.gmra.mrb[116].mxu0 %v7074_v53 }
 0x1e2   : > { %5945 = vmatprep.mubr.bf16.mxu1 %v7090_v49  ;;  %6009 = vmatprep.mubr.bf16.mxu0 %v7085_v7 }
 0x1e9   : > { %5946 = vmatmul.mubr.bf16.gmra.mrb[88].mxu1 %v7082_v6  ;;  %6010 = vmatmul.mubr.bf16.gmra.mrb[120].mxu0 %v7119_v10 }
 0x1ea   : > { %5949 = vmatprep.mubr.bf16.mxu1 %v7107_v47  ;;  %6013 = vmatprep.mubr.bf16.mxu0 %v7104_v41 }
 0x1f1   : > { %5950 = vmatmul.mubr.bf16.gmra.mrb[92].mxu1 %v7117_v4  ;;  %6014 = vmatmul.mubr.bf16.gmra.mrb[124].mxu0 %v7110_v60 }
 0x1f2   : > { %6033 = vmatprep.mubr.bf16.mxu1 %v6943_v25  ;;  %6097 = vmatprep.mubr.bf16.mxu0 %v6943_v25  ;;  %v1083_v25 = vlaneseq }
 0x1f9   : > { %6034 = vmatmul.mubr.bf16.vlgmr.msra.gmra.mrb[96].mxu1 %v6930_v16  ;;  %6098 = vmatmul.mubr.bf16.vlgmr.msra.gmra.mrb[128].mxu0 %v6930_v16  ;;  %v6509_v16 = vld [vmem:[#allocation7 + $0x1d8] sm:$0xff]  }
 0x1fa   : > { %6146 = vmatpush3.bf16.msra.mxu1 %v6499_v37  ;;  %6037 = vmatprep.mubr.bf16.mxu1 %v6938_v21 }
 0x1fb   : > { %6101 = vmatprep.mubr.bf16.mxu0 %v6938_v21  ;;  %6147 = vmatprep.subr.bf16.mxu1 %v6500_v50  ;;  %v6503_v21 = vld [vmem:[#allocation7 + $0x1a0] sm:$0xff]  }
 0x1fc   : > { %6210 = vmatpush3.bf16.msra.mxu0 %v6505_v44  ;;  %v6513_v44 = vld [vmem:[#allocation7 + $0x1f0] sm:$0xff]  }
 0x1fd   : > { %6211 = vmatprep.subr.bf16.mxu0 %v6506_v15 }
 0x1fe   : > { %6148 = vmatpush3.bf16.msra.mxu1 %v6500_v50 }
 0x1ff   : > { %6149 = vmatprep.subr.bf16.mxu1 %v6501_v9 }
 0x200   : > { %6212 = vmatpush3.bf16.msra.mxu0 %v6506_v15 }
 0x201   : > { %6038 = vmatmul.mubr.bf16.gmra.mrb[100].mxu1 %v6964_v46  ;;  %6102 = vmatmul.mubr.bf16.gmra.mrb[132].mxu0 %v6964_v46  ;;  %v6512_v46 = vld [vmem:[#allocation7 + $0x1e8] sm:$0xff]  }
 0x202   : > { %6041 = vmatprep.mubr.bf16.mxu1 %v6954_v38  ;;  %6105 = vmatprep.mubr.bf16.mxu0 %v6954_v38  ;;  %v7201_v38 = vshrl.u32 %v1083_v25, 7 }
 0x203   : > { %6150 = vmatpush3.bf16.msra.mxu1 %v6501_v9  ;;  %6213 = vmatprep.subr.bf16.mxu0 %v6508_v54  ;;  %v6511_v9 = vld [vmem:[#allocation7 + $0x1b8] sm:$0xff]  }
 0x204   : > { %6151 = vmatprep.subr.bf16.mxu1 %v6502_v11  ;;  %6214 = vmatpush3.bf16.msra.mxu0 %v6508_v54  ;;  %vm1085_vm1 = vcmp.lt.s32.totalorder %v7201_v38, 1  ;;  %vm1810_vm2 = vcmp.lt.s32.totalorder %v7201_v38, 7 }
 0x205   : > { %6215 = vmatprep.subr.bf16.mxu0 %v6509_v16 }
 0x207   : > { %6152 = vmatpush3.bf16.msra.mxu1 %v6502_v11  ;;  %v6514_v11 = vld [vmem:[#allocation7 + $0x1f8] sm:$0xff]  }
 0x208   : > { %6153 = vmatprep.subr.bf16.mxu1 %v6503_v21  ;;  %6216 = vmatpush3.bf16.msra.mxu0 %v6509_v16 }
 0x209   : > { %6042 = vmatmul.mubr.bf16.gmra.mrb[104].mxu1 %v6962_v43  ;;  %6106 = vmatmul.mubr.bf16.gmra.mrb[136].mxu0 %v6962_v43 }
 0x20a   : > { %6045 = vmatprep.mubr.bf16.mxu1 %v6985_v5  ;;  %6109 = vmatprep.mubr.bf16.mxu0 %v6985_v5 }
 0x20b   : > { %6154 = vmatpush3.bf16.msra.mxu1 %v6503_v21  ;;  %6217 = vmatprep.subr.bf16.mxu0 %v6510_v13 }
 0x20c   : > { %v5779_v24 = vpop.f32.mrb[0].mxu1  ;;  %v5843_v48 = vpop.f32.mrb[32].mxu0  ;;  %6155 = vmatprep.subr.bf16.mxu1 %v6504_v18  ;;  %6218 = vmatpush3.bf16.msra.mxu0 %v6510_v13 }
 0x20d   : > { %v7203_v17 = vpop.f32.mrb[1].mxu1  ;;  %v7205_v33 = vpop.f32.mrb[33].mxu0  ;;  %6219 = vmatprep.subr.bf16.mxu0 %v6512_v46  ;;  %v1037_v35 = vrot.slane %v5779_v24, 7 }
 0x20e   : > { %v5780_v43 = vpop.f32.mrb[2].mxu1  ;;  %v5844_v28 = vpop.f32.mrb[34].mxu0  ;;  %v8459_v50 = vrot.slane %v7203_v17, 7 }
 0x20f   : > { %v1038_v5 = vrot.slane %v5780_v43, 7  ;;  %v847_v36 = vpop.f32.mrb[3].mxu1  ;;  %v1236_v37 = vpop.f32.mrb[35].mxu0  ;;  %6156 = vmatpush3.bf16.msra.mxu1 %v6504_v18 }
 0x210   : > { %v1036_v15 = vrot.slane %v847_v36, 7  ;;  %6157 = vmatprep.subr.bf16.mxu1 %v6507_v57  ;;  %6220 = vmatpush3.bf16.msra.mxu0 %v6512_v46 }
 0x211   : > { %v1130_v54 = vsel %vm1085_vm1, %v1037_v35, %v1038_v5  ;;  %6046 = vmatmul.mubr.bf16.gmra.mrb[108].mxu1 %v6975_v59  ;;  %6110 = vmatmul.mubr.bf16.gmra.mrb[140].mxu0 %v6975_v59  ;;  %v7223_v59 = vld [vmem:[#allocation7 + $0x200] sm:$0xff]  }
 0x212   : > { %v7213_v16 = vadd.f32 %v5844_v28, %v1130_v54  ;;  %v1132_v21 = vsel %vm1085_vm1, %v8459_v50, %v1036_v15  ;;  %6049 = vmatprep.mubr.bf16.mxu1 %v6983_v0  ;;  %6113 = vmatprep.mubr.bf16.mxu0 %v6983_v0 }
 0x213   : > { %v7221_v25 = vadd.f32 %v1236_v37, %v1132_v21  ;;  %6158 = vmatpush3.bf16.msra.mxu1 %v6507_v57  ;;  %6221 = vmatprep.subr.bf16.mxu0 %v6513_v44 }
 0x214   : > { %v5783_v13 = vpop.f32.mrb[4].mxu1  ;;  %v5847_v18 = vpop.f32.mrb[36].mxu0  ;;  %6159 = vmatprep.subr.bf16.mxu1 %v6511_v9  ;;  %6222 = vmatpush3.bf16.msra.mxu0 %v6513_v44 }
 0x215   : > { %v860_v46 = vpop.f32.mrb[5].mxu1  ;;  %v1249_v24 = vpop.f32.mrb[37].mxu0  ;;  %6223 = vmatprep.subr.bf16.mxu0 %v6514_v11  ;;  %v1041_v35 = vrot.slane %v5783_v13, 7 }
 0x216   : > { %v1039_v48 = vrot.slane %v860_v46, 7  ;;  %v5784_v43 = vpop.f32.mrb[6].mxu1  ;;  %v5848_v28 = vpop.f32.mrb[38].mxu0 }
 0x217   : > { %v1042_v36 = vrot.slane %v5784_v43, 7  ;;  %v863_v15 = vpop.f32.mrb[7].mxu1  ;;  %v1252_v0 = vpop.f32.mrb[39].mxu0  ;;  %6160 = vmatpush3.bf16.msra.mxu1 %v6511_v9 }
 0x218   : > { %v1129_v57 = vsel %vm1085_vm1, %v1038_v5, %v1039_v48  ;;  %v1040_v37 = vrot.slane %v863_v15, 7  ;;  %6224 = vmatpush3.bf16.msra.mxu0 %v6514_v11  ;;  %6273 = vmatprep.subr.bf16.mxu1 %v7223_v59 }
 0x219   : > { %v7228_v44 = vadd.f32 %v1249_v24, %v1129_v57  ;;  %v1126_v54 = vsel %vm1085_vm1, %v1041_v35, %v1042_v36  ;;  %6050 = vmatmul.mubr.bf16.gmra.mrb[112].mxu1 %v7011_v34  ;;  %6114 = vmatmul.mubr.bf16.gmra.mrb[144].mxu0 %v7011_v34 }
 0x21a   : > { %v7234_v21 = vadd.f32 %v5848_v28, %v1126_v54  ;;  %v1127_v9 = vsel %vm1085_vm1, %v1040_v37, %v1041_v35  ;;  %6053 = vmatprep.mubr.bf16.mxu1 %v6999_v26  ;;  %6117 = vmatprep.mubr.bf16.mxu0 %v6999_v26 }
 0x21b   : > { %v7240_v5 = vadd.f32 %v5847_v18, %v1127_v9 }
 0x21c   : > { %v5787_v11 = vpop.f32.mrb[8].mxu1  ;;  %v5851_v13 = vpop.f32.mrb[40].mxu0 }
 0x21d   : > { %v876_v46 = vpop.f32.mrb[9].mxu1  ;;  %v1265_v24 = vpop.f32.mrb[41].mxu0  ;;  %v1045_v34 = vrot.slane %v5787_v11, 7 }
 0x21e   : > { %v5788_v48 = vpop.f32.mrb[10].mxu1  ;;  %v5852_v43 = vpop.f32.mrb[42].mxu0  ;;  %v1043_v28 = vrot.slane %v876_v46, 7 }
 0x21f   : > { %v879_v36 = vpop.f32.mrb[11].mxu1  ;;  %v1268_v15 = vpop.f32.mrb[43].mxu0  ;;  %v1046_v46 = vrot.slane %v5788_v48, 7 }
 0x220   : > { %v1044_v0 = vrot.slane %v879_v36, 7 }
 0x221   : > { %6054 = vmatmul.mubr.bf16.gmra.mrb[116].mxu1 %v7007_v31  ;;  %6118 = vmatmul.mubr.bf16.gmra.mrb[148].mxu0 %v7007_v31 }
 0x222   : > { %v1123_v26 = vsel %vm1085_vm1, %v1044_v0, %v1045_v34  ;;  %v1124_v18 = vsel %vm1085_vm1, %v1043_v28, %v1044_v0  ;;  %6057 = vmatprep.mubr.bf16.mxu1 %v7037_v58  ;;  %6121 = vmatprep.mubr.bf16.mxu0 %v7037_v58 }
 0x223   : > { %v7250_v35 = vadd.f32 %v5851_v13, %v1123_v26  ;;  %v7252_v57 = vadd.f32 %v1268_v15, %v1124_v18 }
 0x224   : > { %v5791_v37 = vpop.f32.mrb[12].mxu1  ;;  %v5855_v54 = vpop.f32.mrb[44].mxu0 }
 0x225   : > { %v892_v9 = vpop.f32.mrb[13].mxu1  ;;  %v1281_v11 = vpop.f32.mrb[45].mxu0  ;;  %v1049_v36 = vrot.slane %v5791_v37, 7 }
 0x226   : > { %v1047_v31 = vrot.slane %v892_v9, 7  ;;  %v5792_v24 = vpop.f32.mrb[14].mxu1  ;;  %v5856_v43 = vpop.f32.mrb[46].mxu0 }
 0x227   : > { %v1050_v34 = vrot.slane %v5792_v24, 7  ;;  %v895_v1 = vpop.f32.mrb[15].mxu1  ;;  %v1284_v28 = vpop.f32.mrb[47].mxu0 }
 0x228   : > { %v1121_v0 = vsel %vm1085_vm1, %v1046_v46, %v1047_v31  ;;  %v1048_v58 = vrot.slane %v895_v1, 7 }
 0x229   : > { %v7256_v13 = vadd.f32 %v1281_v11, %v1121_v0  ;;  %v1118_v15 = vsel %vm1085_vm1, %v1049_v36, %v1050_v34  ;;  %6058 = vmatmul.mubr.bf16.gmra.mrb[120].mxu1 %v7025_v52  ;;  %6122 = vmatmul.mubr.bf16.gmra.mrb[152].mxu0 %v7025_v52 }
 0x22a   : > { %v7262_v48 = vadd.f32 %v5856_v43, %v1118_v15  ;;  %v1120_v26 = vsel %vm1085_vm1, %v1047_v31, %v1048_v58  ;;  %6061 = vmatprep.mubr.bf16.mxu1 %v7030_v56  ;;  %6125 = vmatprep.mubr.bf16.mxu0 %v7030_v56 }
 0x22b   : > { %v7268_v18 = vadd.f32 %v1284_v28, %v1120_v26 }
 0x22c   : > { %v5795_v1 = vpop.f32.mrb[16].mxu1  ;;  %v5859_v37 = vpop.f32.mrb[48].mxu0 }
 0x22d   : > { %v908_v54 = vpop.f32.mrb[17].mxu1  ;;  %v1297_v9 = vpop.f32.mrb[49].mxu0  ;;  %v1053_v36 = vrot.slane %v5795_v1, 7 }
 0x22e   : > { %v1051_v11 = vrot.slane %v908_v54, 7  ;;  %v5796_v46 = vpop.f32.mrb[18].mxu1  ;;  %v5860_v24 = vpop.f32.mrb[50].mxu0 }
 0x22f   : > { %v1054_v52 = vrot.slane %v5796_v46, 7  ;;  %v911_v43 = vpop.f32.mrb[19].mxu1  ;;  %v1300_v0 = vpop.f32.mrb[51].mxu0 }
 0x230   : > { %v1117_v31 = vsel %vm1085_vm1, %v1050_v34, %v1051_v11  ;;  %v1052_v58 = vrot.slane %v911_v43, 7 }
 0x231   : > { %v7272_v15 = vadd.f32 %v1297_v9, %v1117_v31  ;;  %v1114_v56 = vsel %vm1085_vm1, %v1053_v36, %v1054_v52  ;;  %6062 = vmatmul.mubr.bf16.gmra.mrb[124].mxu1 %v7062_v32  ;;  %6126 = vmatmul.mubr.bf16.gmra.mrb[156].mxu0 %v7062_v32 }
 0x232   : > { %v7278_v28 = vadd.f32 %v5860_v24, %v1114_v56  ;;  %v1115_v26 = vsel %vm1085_vm1, %v1052_v58, %v1053_v36  ;;  %6065 = vmatprep.mubr.bf16.mxu1 %v7047_v12  ;;  %6129 = vmatprep.mubr.bf16.mxu0 %v7047_v12 }
 0x233   : > { %v7284_v34 = vadd.f32 %v5859_v37, %v1115_v26 }
 0x234   : > { %v5799_v1 = vpop.f32.mrb[20].mxu1  ;;  %v5863_v54 = vpop.f32.mrb[52].mxu0 }
 0x235   : > { %v924_v9 = vpop.f32.mrb[21].mxu1  ;;  %v1313_v11 = vpop.f32.mrb[53].mxu0  ;;  %v1057_v32 = vrot.slane %v5799_v1, 7 }
 0x236   : > { %v5800_v46 = vpop.f32.mrb[22].mxu1  ;;  %v5864_v52 = vpop.f32.mrb[54].mxu0  ;;  %v1055_v24 = vrot.slane %v924_v9, 7 }
 0x237   : > { %v927_v43 = vpop.f32.mrb[23].mxu1  ;;  %v1316_v0 = vpop.f32.mrb[55].mxu0  ;;  %v1058_v11 = vrot.slane %v5800_v46, 7 }
 0x238   : > { %v1056_v31 = vrot.slane %v927_v43, 7 }
 0x239   : > { %6066 = vmatmul.mubr.bf16.gmra.mrb[128].mxu1 %v7055_v23  ;;  %6130 = vmatmul.mubr.bf16.gmra.mrb[160].mxu0 %v7055_v23 }
 0x23a   : > { %v1111_v12 = vsel %vm1085_vm1, %v1056_v31, %v1057_v32  ;;  %v1112_v37 = vsel %vm1085_vm1, %v1055_v24, %v1056_v31  ;;  %6069 = vmatprep.mubr.bf16.mxu1 %v7092_v8  ;;  %6133 = vmatprep.mubr.bf16.mxu0 %v7092_v8 }
 0x23b   : > { %v7294_v36 = vadd.f32 %v5863_v54, %v1111_v12  ;;  %v7296_v58 = vadd.f32 %v1316_v0, %v1112_v37 }
 0x23c   : > { %v5803_v56 = vpop.f32.mrb[24].mxu1  ;;  %v5867_v26 = vpop.f32.mrb[56].mxu0 }
 0x23d   : > { %v940_v1 = vpop.f32.mrb[25].mxu1  ;;  %v1329_v9 = vpop.f32.mrb[57].mxu0  ;;  %v1061_v32 = vrot.slane %v5803_v56, 7 }
 0x23e   : > { %v1059_v23 = vrot.slane %v940_v1, 7  ;;  %v5804_v52 = vpop.f32.mrb[26].mxu1  ;;  %v5868_v43 = vpop.f32.mrb[58].mxu0 }
 0x23f   : > { %v1062_v50 = vrot.slane %v5804_v52, 7  ;;  %v943_v2 = vpop.f32.mrb[27].mxu1  ;;  %v1332_v24 = vpop.f32.mrb[59].mxu0 }
 0x240   : > { %v1109_v31 = vsel %vm1085_vm1, %v1058_v11, %v1059_v23  ;;  %v1060_v8 = vrot.slane %v943_v2, 7 }
 0x241   : > { %v7300_v54 = vadd.f32 %v1329_v9, %v1109_v31  ;;  %v1106_v0 = vsel %vm1085_vm1, %v1061_v32, %v1062_v50  ;;  %6070 = vmatmul.mubr.bf16.gmra.mrb[132].mxu1 %v7074_v53  ;;  %6134 = vmatmul.mubr.bf16.gmra.mrb[164].mxu0 %v7074_v53 }
 0x242   : > { %v7306_v46 = vadd.f32 %v5868_v43, %v1106_v0  ;;  %v1108_v12 = vsel %vm1085_vm1, %v1059_v23, %v1060_v8  ;;  %6073 = vmatprep.mubr.bf16.mxu1 %v7085_v7  ;;  %6137 = vmatprep.mubr.bf16.mxu0 %v7085_v7 }
 0x243   : > { %v7312_v37 = vadd.f32 %v1332_v24, %v1108_v12 }
 0x244   : > { %v5807_v2 = vpop.f32.mrb[28].mxu1  ;;  %v5871_v56 = vpop.f32.mrb[60].mxu0 }
 0x245   : > { %v956_v26 = vpop.f32.mrb[29].mxu1  ;;  %v1345_v1 = vpop.f32.mrb[61].mxu0  ;;  %v1065_v32 = vrot.slane %v5807_v2, 7 }
 0x246   : > { %v1063_v9 = vrot.slane %v956_v26, 7  ;;  %v5808_v11 = vpop.f32.mrb[30].mxu1  ;;  %v5872_v52 = vpop.f32.mrb[62].mxu0 }
 0x247   : > { %v1066_v53 = vrot.slane %v5808_v11, 7  ;;  %v959_v43 = vpop.f32.mrb[31].mxu1  ;;  %v1348_v31 = vpop.f32.mrb[63].mxu0 }
 0x248   : > { %v1105_v23 = vsel %vm1085_vm1, %v1062_v50, %v1063_v9  ;;  %v1064_v8 = vrot.slane %v959_v43, 7 }
 0x249   : > { %v7316_v0 = vadd.f32 %v1345_v1, %v1105_v23  ;;  %v1102_v7 = vsel %vm1085_vm1, %v1065_v32, %v1066_v53  ;;  %6074 = vmatmul.mubr.bf16.gmra.mrb[136].mxu1 %v7119_v10  ;;  %6138 = vmatmul.mubr.bf16.gmra.mrb[168].mxu0 %v7119_v10 }
 0x24a   : > { %v7322_v24 = vadd.f32 %v5872_v52, %v1102_v7  ;;  %v1103_v12 = vsel %vm1085_vm1, %v1064_v8, %v1065_v32  ;;  %6077 = vmatprep.mubr.bf16.mxu1 %v7104_v41  ;;  %6141 = vmatprep.mubr.bf16.mxu0 %v7104_v41 }
 0x24b   : > { %8493 = vst [vmem:[#allocation22_spill] sm:$0xff] %v7316_v0  ;;  %v7328_v50 = vadd.f32 %v5871_v56, %v1103_v12 }
 0x24c   : > { %8494 = vst [vmem:[#allocation23_spill] sm:$0xff] %v7322_v24  ;;  %v5811_v2 = vpop.f32.mrb[32].mxu1  ;;  %v5875_v26 = vpop.f32.mrb[64].mxu0 }
 0x24d   : > { %v972_v1 = vpop.f32.mrb[33].mxu1  ;;  %v1361_v9 = vpop.f32.mrb[65].mxu0  ;;  %v1069_v10 = vrot.slane %v5811_v2, 7 }
 0x24e   : > { %v5812_v11 = vpop.f32.mrb[34].mxu1  ;;  %v5876_v53 = vpop.f32.mrb[66].mxu0  ;;  %v1067_v52 = vrot.slane %v972_v1, 7 }
 0x24f   : > { %v975_v43 = vpop.f32.mrb[35].mxu1  ;;  %v1364_v31 = vpop.f32.mrb[67].mxu0  ;;  %v1070_v9 = vrot.slane %v5812_v11, 7 }
 0x250   : > { %v1068_v23 = vrot.slane %v975_v43, 7 }
 0x251   : > { %6078 = vmatmul.mubr.bf16.gmra.mrb[140].mxu1 %v7110_v60  ;;  %6142 = vmatmul.mubr.bf16.gmra.mrb[172].mxu0 %v7110_v60 }
 0x252   : > { %v1099_v41 = vsel %vm1085_vm1, %v1068_v23, %v1069_v10  ;;  %v1100_v56 = vsel %vm1085_vm1, %v1067_v52, %v1068_v23  ;;  %6161 = vmatprep.mubr.bf16.mxu1 %v6935_v20  ;;  %6225 = vmatprep.mubr.bf16.mxu0 %v6935_v20  ;;  %v6516_v23 = vld [vmem:[#allocation7 + $0x208] sm:$0xff]  }
 0x253   : > { %v7338_v32 = vadd.f32 %v5875_v26, %v1099_v41  ;;  %v7340_v8 = vadd.f32 %v1364_v31, %v1100_v56 }
 0x254   : > { %v5815_v7 = vpop.f32.mrb[36].mxu1  ;;  %v5879_v12 = vpop.f32.mrb[68].mxu0 }
 0x255   : > { %v988_v2 = vpop.f32.mrb[37].mxu1  ;;  %v1377_v1 = vpop.f32.mrb[69].mxu0  ;;  %v1073_v10 = vrot.slane %v5815_v7, 7 }
 0x256   : > { %v1071_v60 = vrot.slane %v988_v2, 7  ;;  %v5816_v53 = vpop.f32.mrb[38].mxu1  ;;  %v5880_v43 = vpop.f32.mrb[70].mxu0 }
 0x257   : > { %v1074_v24 = vrot.slane %v5816_v53, 7  ;;  %v991_v0 = vpop.f32.mrb[39].mxu1  ;;  %v1380_v52 = vpop.f32.mrb[71].mxu0 }
 0x258   : > { %v1097_v20 = vsel %vm1085_vm1, %v1070_v9, %v1071_v60  ;;  %v1072_v26 = vrot.slane %v991_v0, 7 }
 0x259   : > { %v7344_v41 = vadd.f32 %v1377_v1, %v1097_v20  ;;  %v1094_v31 = vsel %vm1085_vm1, %v1073_v10, %v1074_v24  ;;  %6162 = vmatmul.mubr.bf16.vlgmr.msra.gmra.mrb[144].mxu1 %v6957_v40  ;;  %6226 = vmatmul.mubr.bf16.vlgmr.msra.gmra.mrb[176].mxu0 %v6957_v40  ;;  %v6517_v20 = vld [vmem:[#allocation7 + $0x210] sm:$0xff]  }
 0x25a   : > { %v7350_v11 = vadd.f32 %v5880_v43, %v1094_v31  ;;  %v1096_v56 = vsel %vm1085_vm1, %v1071_v60, %v1072_v26  ;;  %6274 = vmatpush3.bf16.msra.mxu1 %v7223_v59  ;;  %6165 = vmatprep.mubr.bf16.mxu1 %v6978_v61 }
 0x25b   : > { %v7356_v7 = vadd.f32 %v1380_v52, %v1096_v56  ;;  %6229 = vmatprep.mubr.bf16.mxu0 %v6978_v61  ;;  %6275 = vmatprep.subr.bf16.mxu1 %v6516_v23  ;;  %v6518_v56 = vld [vmem:[#allocation7 + $0x218] sm:$0xff]  }
 0x25c   : > { %8495 = vst [vmem:[#allocation24_spill] sm:$0xff] %v7350_v11  ;;  %v5819_v0 = vpop.f32.mrb[40].mxu1  ;;  %v5883_v12 = vpop.f32.mrb[72].mxu0 }
 0x25d   : > { %8496 = vst [vmem:[#allocation25_spill] sm:$0xff] %v7356_v7  ;;  %v1004_v2 = vpop.f32.mrb[41].mxu1  ;;  %v1393_v1 = vpop.f32.mrb[73].mxu0  ;;  %v1077_v10 = vrot.slane %v5819_v0, 7 }
 0x25e   : > { %v1075_v9 = vrot.slane %v1004_v2, 7  ;;  %v5820_v53 = vpop.f32.mrb[42].mxu1  ;;  %v5884_v43 = vpop.f32.mrb[74].mxu0  ;;  %6276 = vmatpush3.bf16.msra.mxu1 %v6516_v23 }
 0x25f   : > { %v1078_v60 = vrot.slane %v5820_v53, 7  ;;  %v1007_v26 = vpop.f32.mrb[43].mxu1  ;;  %v1396_v59 = vpop.f32.mrb[75].mxu0  ;;  %6277 = vmatprep.subr.bf16.mxu1 %v6517_v20 }
 0x260   : > { %v1093_v52 = vsel %vm1085_vm1, %v1074_v24, %v1075_v9  ;;  %v1076_v31 = vrot.slane %v1007_v26, 7  ;;  %v6519_v9 = vld [vmem:[#allocation7 + $0x220] sm:$0xff]  }
 0x261   : > { %v7361_v11 = vadd.f32 %v1393_v1, %v1093_v52  ;;  %v1090_v7 = vsel %vm1085_vm1, %v1077_v10, %v1078_v60  ;;  %6166 = vmatmul.mubr.bf16.gmra.mrb[148].mxu1 %v6959_v42  ;;  %6230 = vmatmul.mubr.bf16.gmra.mrb[180].mxu0 %v6959_v42 }
 0x262   : > { %v7367_v23 = vadd.f32 %v5884_v43, %v1090_v7  ;;  %v1091_v0 = vsel %vm1085_vm1, %v1076_v31, %v1077_v10  ;;  %6169 = vmatprep.mubr.bf16.mxu1 %v6995_v19  ;;  %6233 = vmatprep.mubr.bf16.mxu0 %v6995_v19 }
 0x263   : > { %8497 = vst [vmem:[#allocation26_spill] sm:$0xff] %v7361_v11  ;;  %v7373_v24 = vadd.f32 %v5883_v12, %v1091_v0  ;;  %6278 = vmatpush3.bf16.msra.mxu1 %v6517_v20  ;;  %v6520_v11 = vld [vmem:[#allocation7 + $0x228] sm:$0xff]   ;;  %v8499_v12 = vrot.slane %v7203_v17, 7 }
 0x264   : > { %8498 = vst [vmem:[#allocation27_spill] sm:$0xff] %v7367_v23  ;;  %v5823_v2 = vpop.f32.mrb[44].mxu1  ;;  %v5887_v1 = vpop.f32.mrb[76].mxu0  ;;  %6279 = vmatprep.subr.bf16.mxu1 %v6518_v56 }
 0x265   : > { %v1020_v53 = vpop.f32.mrb[45].mxu1  ;;  %v1409_v60 = vpop.f32.mrb[77].mxu0  ;;  %v1081_v10 = vrot.slane %v5823_v2, 7 }
 0x266   : > { %v5824_v26 = vpop.f32.mrb[46].mxu1  ;;  %v5888_v59 = vpop.f32.mrb[78].mxu0  ;;  %v1079_v31 = vrot.slane %v1020_v53, 7 }
 0x267   : > { %v1082_v7 = vrot.slane %v5824_v26, 7  ;;  %v1023_v43 = vpop.f32.mrb[47].mxu1  ;;  %v1412_v52 = vpop.f32.mrb[79].mxu0  ;;  %6280 = vmatpush3.bf16.msra.mxu1 %v6518_v56  ;;  %v6521_v59 = vld [vmem:[#allocation7 + $0x230] sm:$0xff]  }
 0x268   : > { %v1080_v23 = vrot.slane %v1023_v43, 7  ;;  %6281 = vmatprep.subr.bf16.mxu1 %v6519_v9 }
 0x269   : > { %v1133_v20 = vsel %vm1085_vm1, %v1082_v7, %v8499_v12  ;;  %6170 = vmatmul.mubr.bf16.gmra.mrb[152].mxu1 %v7002_v29  ;;  %6234 = vmatmul.mubr.bf16.gmra.mrb[184].mxu0 %v7002_v29 }
 0x26a   : > { %v1424_v0 = vadd.f32 %v7205_v33, %v1133_v20  ;;  %v1087_v60 = vsel %vm1085_vm1, %v1080_v23, %v1081_v10  ;;  %v1088_v56 = vsel %vm1085_vm1, %v1079_v31, %v1080_v23  ;;  %6173 = vmatprep.mubr.bf16.mxu1 %v6980_v63  ;;  %6237 = vmatprep.mubr.bf16.mxu0 %v6980_v63 }
 0x26b   : > { %v7388_v17 = vadd.f32 %v5887_v1, %v1087_v60  ;;  %v7390_v2 = vadd.f32 %v1412_v52, %v1088_v56  ;;  %6282 = vmatpush3.bf16.msra.mxu1 %v6519_v9 }
 0x26c   : > { %v5907_v53 = vpop.f32.mrb[48].mxu1  ;;  %v5971_v26 = vpop.f32.mrb[80].mxu0  ;;  %6283 = vmatprep.subr.bf16.mxu1 %v6520_v11 }
 0x26d   : > { %8500 = vst [vmem:[#allocation28_spill] sm:$0xff] %v7388_v17  ;;  %8501 = vst [vmem:[#allocation29_spill] sm:$0xff] %v7390_v2  ;;  %v1571_v33 = vpop.f32.mrb[49].mxu1  ;;  %v7392_v7 = vpop.f32.mrb[81].mxu0  ;;  %v1764_v12 = vrot.slane %v5907_v53, 1  ;;  %v2319_v23 = vrot.slane %v5971_v26, 7 }
 0x26e   : > { %8502 = vst [vmem:[#allocation30_spill] sm:$0xff] %v7392_v7  ;;  %v5908_v43 = vpop.f32.mrb[50].mxu1  ;;  %v5972_v10 = vpop.f32.mrb[82].mxu0  ;;  %v1762_v52 = vrot.slane %v1571_v33, 1  ;;  %v8466_v9 = vrot.slane %v7392_v7, 7  ;;  %v6522_v2 = vld [vmem:[#allocation7 + $0x238] sm:$0xff]  }
 0x26f   : > { %v2320_v31 = vrot.slane %v5972_v10, 7  ;;  %v1574_v20 = vpop.f32.mrb[51].mxu1  ;;  %v2129_v1 = vpop.f32.mrb[83].mxu0  ;;  %6284 = vmatpush3.bf16.msra.mxu1 %v6520_v11 }
 0x270   : > { %v1763_v60 = vrot.slane %v1574_v20, 1  ;;  %v2318_v56 = vrot.slane %v2129_v1, 7  ;;  %6285 = vmatprep.subr.bf16.mxu1 %v6521_v59 }
 0x271   : > { %6174 = vmatmul.mubr.bf16.gmra.mrb[156].mxu1 %v7022_v51  ;;  %6238 = vmatmul.mubr.bf16.gmra.mrb[188].mxu0 %v7022_v51  ;;  %v7400_v53 = vsel %vm1085_vm1, %v2319_v23, %v2320_v31 }
 0x272   : > { %8503 = vst [vmem:[#allocation31_spill] sm:$0xff] %v7400_v53  ;;  %v1856_v26 = vsel %vm1810_vm2, %v1763_v60, %v1764_v12  ;;  %v1857_v11 = vsel %vm1810_vm2, %v1762_v52, %v1763_v60  ;;  %6177 = vmatprep.mubr.bf16.mxu1 %v7050_v14  ;;  %6241 = vmatprep.mubr.bf16.mxu0 %v7050_v14  ;;  %v1765_v60 = vrot.slane %v5908_v43, 1 }
 0x273   : > { %v7412_v33 = vsel %vm1085_vm1, %v8466_v9, %v2318_v56  ;;  %v7414_v10 = vadd.f32 %v1857_v11, %v1424_v0  ;;  %v7417_v23 = vadd.f32 %v1856_v26, %v7221_v25  ;;  %6286 = vmatpush3.bf16.msra.mxu1 %v6521_v59 }
 0x274   : > { %v5911_v12 = vpop.f32.mrb[52].mxu1  ;;  %v5975_v20 = vpop.f32.mrb[84].mxu0  ;;  %6287 = vmatprep.subr.bf16.mxu1 %v6522_v2 }
 0x275   : > { %8504 = vst [vmem:[#allocation32_spill] sm:$0xff] %v7417_v23  ;;  %v1587_v1 = vpop.f32.mrb[53].mxu1  ;;  %v2142_v52 = vpop.f32.mrb[85].mxu0  ;;  %v1768_v17 = vrot.slane %v5911_v12, 1  ;;  %v2323_v7 = vrot.slane %v5975_v20, 7 }
 0x276   : > { %v1766_v51 = vrot.slane %v1587_v1, 1  ;;  %v2321_v14 = vrot.slane %v2142_v52, 7  ;;  %v5912_v53 = vpop.f32.mrb[54].mxu1  ;;  %v5976_v63 = vpop.f32.mrb[86].mxu0 }
 0x277   : > { %v1769_v56 = vrot.slane %v5912_v53, 1  ;;  %v2324_v9 = vrot.slane %v5976_v63, 7  ;;  %v1590_v0 = vpop.f32.mrb[55].mxu1  ;;  %v2145_v11 = vpop.f32.mrb[87].mxu0  ;;  %6288 = vmatpush3.bf16.msra.mxu1 %v6522_v2 }
 0x278   : > { %v1854_v25 = vsel %vm1810_vm2, %v1765_v60, %v1766_v51  ;;  %v1767_v59 = vrot.slane %v1590_v0, 1  ;;  %v2322_v26 = vrot.slane %v2145_v11, 7  ;;  %v7423_v23 = vsel %vm1085_vm1, %v2320_v31, %v2321_v14 }
 0x279   : > { %v7426_v43 = vadd.f32 %v1854_v25, %v7213_v16  ;;  %v1851_v12 = vsel %vm1810_vm2, %v1768_v17, %v1769_v56  ;;  %6178 = vmatmul.mubr.bf16.gmra.mrb[160].mxu1 %v7004_v30  ;;  %6242 = vmatmul.mubr.bf16.gmra.mrb[192].mxu0 %v7004_v30  ;;  %v7434_v63 = vsel %vm1085_vm1, %v2323_v7, %v2324_v9 }
 0x27a   : > { %v7437_v2 = vadd.f32 %v1851_v12, %v7240_v5  ;;  %v1853_v14 = vsel %vm1810_vm2, %v1766_v51, %v1767_v59  ;;  %6181 = vmatprep.mubr.bf16.mxu1 %v7070_v45  ;;  %6245 = vmatprep.mubr.bf16.mxu0 %v7070_v45  ;;  %v7445_v16 = vsel %vm1085_vm1, %v2322_v26, %v2323_v7 }
 0x27b   : > { %v7448_v17 = vadd.f32 %v1853_v14, %v7228_v44 }
 0x27c   : > { %v5915_v31 = vpop.f32.mrb[56].mxu1  ;;  %v5979_v9 = vpop.f32.mrb[88].mxu0 }
 0x27d   : > { %v1603_v53 = vpop.f32.mrb[57].mxu1  ;;  %v2158_v20 = vpop.f32.mrb[89].mxu0  ;;  %v1772_v60 = vrot.slane %v5915_v31, 1  ;;  %v2327_v25 = vrot.slane %v5979_v9, 7 }
 0x27e   : > { %v1770_v5 = vrot.slane %v1603_v53, 1  ;;  %v5916_v1 = vpop.f32.mrb[58].mxu1  ;;  %v5980_v52 = vpop.f32.mrb[90].mxu0  ;;  %v2325_v12 = vrot.slane %v2158_v20, 7 }
 0x27f   : > { %v1773_v51 = vrot.slane %v5916_v1, 1  ;;  %v1606_v0 = vpop.f32.mrb[59].mxu1  ;;  %v2161_v11 = vpop.f32.mrb[91].mxu0 }
 0x280   : > { %v1850_v59 = vsel %vm1810_vm2, %v1769_v56, %v1770_v5  ;;  %v1771_v7 = vrot.slane %v1606_v0, 1  ;;  %v2326_v26 = vrot.slane %v2161_v11, 7 }
 0x281   : > { %v7453_v44 = vadd.f32 %v1850_v59, %v7234_v21  ;;  %v1847_v14 = vsel %vm1810_vm2, %v1772_v60, %v1773_v51  ;;  %6182 = vmatmul.mubr.bf16.gmra.mrb[164].mxu1 %v7080_v3  ;;  %6246 = vmatmul.mubr.bf16.gmra.mrb[196].mxu0 %v7080_v3 }
 0x282   : > { %v7460_v31 = vadd.f32 %v1847_v14, %v7250_v35  ;;  %v1848_v9 = vsel %vm1810_vm2, %v1771_v7, %v1772_v60  ;;  %6185 = vmatprep.mubr.bf16.mxu1 %v7027_v55  ;;  %6249 = vmatprep.mubr.bf16.mxu0 %v7027_v55  ;;  %v7468_v21 = vsel %vm1085_vm1, %v2326_v26, %v2327_v25  ;;  %v2328_v60 = vrot.slane %v5980_v52, 7 }
 0x283   : > { %8505 = vst [vmem:[#allocation33_spill] sm:$0xff] %v7453_v44  ;;  %v7471_v56 = vadd.f32 %v1848_v9, %v7252_v57  ;;  %v7475_v53 = vsel %vm1085_vm1, %v2325_v12, %v2326_v26 }
 0x284   : > { %8506 = vst [vmem:[#allocation34_spill] sm:$0xff] %v7460_v31  ;;  %v5919_v35 = vpop.f32.mrb[60].mxu1  ;;  %v5983_v20 = vpop.f32.mrb[92].mxu0 }
 0x285   : > { %v1619_v5 = vpop.f32.mrb[61].mxu1  ;;  %v2174_v1 = vpop.f32.mrb[93].mxu0  ;;  %v1776_v59 = vrot.slane %v5919_v35, 1  ;;  %v2331_v7 = vrot.slane %v5983_v20, 7 }
 0x286   : > { %v2329_v51 = vrot.slane %v2174_v1, 7  ;;  %v5920_v0 = vpop.f32.mrb[62].mxu1  ;;  %v5984_v11 = vpop.f32.mrb[94].mxu0  ;;  %v1774_v44 = vrot.slane %v1619_v5, 1 }
 0x287   : > { %v2332_v14 = vrot.slane %v5984_v11, 7  ;;  %v1622_v25 = vpop.f32.mrb[63].mxu1  ;;  %v2177_v31 = vpop.f32.mrb[95].mxu0 }
 0x288   : > { %v1775_v57 = vrot.slane %v1622_v25, 1  ;;  %v2330_v9 = vrot.slane %v2177_v31, 7  ;;  %v7479_v26 = vsel %vm1085_vm1, %v2328_v60, %v2329_v51 }
 0x289   : > { %8507 = vst [vmem:[#allocation35_spill] sm:$0xff] %v7479_v26  ;;  %6186 = vmatmul.mubr.bf16.gmra.mrb[168].mxu1 %v7101_v39  ;;  %6250 = vmatmul.mubr.bf16.gmra.mrb[200].mxu0 %v7101_v39  ;;  %v7485_v52 = vsel %vm1085_vm1, %v2331_v7, %v2332_v14  ;;  %v1777_v7 = vrot.slane %v5920_v0, 1 }
 0x28a   : > { %8508 = vst [vmem:[#allocation36_spill] sm:$0xff] %v7485_v52  ;;  %v1844_v12 = vsel %vm1810_vm2, %v1775_v57, %v1776_v59  ;;  %v1845_v35 = vsel %vm1810_vm2, %v1774_v44, %v1775_v57  ;;  %6189 = vmatprep.mubr.bf16.mxu1 %v7060_v27  ;;  %6253 = vmatprep.mubr.bf16.mxu0 %v7060_v27 }
 0x28b   : > { %v7495_v31 = vsel %vm1085_vm1, %v2329_v51, %v2330_v9  ;;  %v7498_v20 = vadd.f32 %v1845_v35, %v7256_v13  ;;  %v7501_v5 = vadd.f32 %v1844_v12, %v7268_v18 }
 0x28c   : > { %8509 = vst [vmem:[#allocation37_spill] sm:$0xff] %v7495_v31  ;;  %v5923_v1 = vpop.f32.mrb[64].mxu1  ;;  %v5987_v60 = vpop.f32.mrb[96].mxu0 }
 0x28d   : > { %v1635_v11 = vpop.f32.mrb[65].mxu1  ;;  %v2190_v59 = vpop.f32.mrb[97].mxu0  ;;  %v1780_v27 = vrot.slane %v5923_v1, 1  ;;  %v2335_v52 = vrot.slane %v5987_v60, 7 }
 0x28e   : > { %v1778_v44 = vrot.slane %v1635_v11, 1  ;;  %v2333_v25 = vrot.slane %v2190_v59, 7  ;;  %v5924_v57 = vpop.f32.mrb[66].mxu1  ;;  %v5988_v39 = vpop.f32.mrb[98].mxu0 }
 0x28f   : > { %v1781_v26 = vrot.slane %v5924_v57, 1  ;;  %v2336_v51 = vrot.slane %v5988_v39, 7  ;;  %v1638_v9 = vpop.f32.mrb[67].mxu1  ;;  %v2193_v31 = vpop.f32.mrb[99].mxu0 }
 0x290   : > { %v1842_v13 = vsel %vm1810_vm2, %v1777_v7, %v1778_v44  ;;  %v1779_v18 = vrot.slane %v1638_v9, 1  ;;  %v2334_v12 = vrot.slane %v2193_v31, 7  ;;  %v7507_v35 = vsel %vm1085_vm1, %v2332_v14, %v2333_v25 }
 0x291   : > { %v7510_v0 = vadd.f32 %v1842_v13, %v7262_v48  ;;  %v1839_v1 = vsel %vm1810_vm2, %v1780_v27, %v1781_v26  ;;  %6190 = vmatmul.mubr.bf16.gmra.mrb[172].mxu1 %v7052_v22  ;;  %6254 = vmatmul.mubr.bf16.gmra.mrb[204].mxu0 %v7052_v22  ;;  %v7518_v39 = vsel %vm1085_vm1, %v2335_v52, %v2336_v51 }
 0x292   : > { %v7521_v31 = vadd.f32 %v1839_v1, %v7284_v34  ;;  %v1841_v14 = vsel %vm1810_vm2, %v1778_v44, %v1779_v18  ;;  %6193 = vmatprep.mubr.bf16.mxu1 %v7077_v62  ;;  %6257 = vmatprep.mubr.bf16.mxu0 %v7077_v62  ;;  %v7529_v27 = vsel %vm1085_vm1, %v2334_v12, %v2335_v52 }
 0x293   : > { %v7532_v48 = vadd.f32 %v1841_v14, %v7272_v15 }
 0x294   : > { %v5927_v60 = vpop.f32.mrb[68].mxu1  ;;  %v5991_v11 = vpop.f32.mrb[100].mxu0 }
 0x295   : > { %8510 = vst [vmem:[#allocation38_spill] sm:$0xff] %v7532_v48  ;;  %v1651_v59 = vpop.f32.mrb[69].mxu1  ;;  %v2206_v7 = vpop.f32.mrb[101].mxu0  ;;  %v1784_v51 = vrot.slane %v5927_v60, 1  ;;  %v2339_v18 = vrot.slane %v5991_v11, 7 }
 0x296   : > { %v1782_v34 = vrot.slane %v1651_v59, 1  ;;  %v5928_v25 = vpop.f32.mrb[70].mxu1  ;;  %v5992_v57 = vpop.f32.mrb[102].mxu0  ;;  %v2337_v14 = vrot.slane %v2206_v7, 7 }
 0x297   : > { %v1785_v44 = vrot.slane %v5928_v25, 1  ;;  %v1654_v9 = vpop.f32.mrb[71].mxu1  ;;  %v2209_v13 = vpop.f32.mrb[103].mxu0  ;;  %v2340_v25 = vrot.slane %v5992_v57, 7 }
 0x298   : > { %v1838_v1 = vsel %vm1810_vm2, %v1781_v26, %v1782_v34  ;;  %v1783_v52 = vrot.slane %v1654_v9, 1  ;;  %v2338_v12 = vrot.slane %v2209_v13, 7 }
 0x299   : > { %v7537_v15 = vadd.f32 %v1838_v1, %v7278_v28  ;;  %v1835_v48 = vsel %vm1810_vm2, %v1784_v51, %v1785_v44  ;;  %6194 = vmatmul.mubr.bf16.gmra.mrb[176].mxu1 %v7090_v49  ;;  %6258 = vmatmul.mubr.bf16.gmra.mrb[208].mxu0 %v7090_v49 }
 0x29a   : > { %v7544_v60 = vadd.f32 %v1835_v48, %v7294_v36  ;;  %v1836_v11 = vsel %vm1810_vm2, %v1783_v52, %v1784_v51  ;;  %6197 = vmatprep.mubr.bf16.mxu1 %v7082_v6  ;;  %6261 = vmatprep.mubr.bf16.mxu0 %v7082_v6  ;;  %v7552_v28 = vsel %vm1085_vm1, %v2338_v12, %v2339_v18 }
 0x29b   : > { %8511 = vst [vmem:[#allocation39_spill] sm:$0xff] %v7537_v15  ;;  %v7555_v26 = vadd.f32 %v1836_v11, %v7296_v58  ;;  %v7559_v59 = vsel %vm1085_vm1, %v2337_v14, %v2338_v12 }
 0x29c   : > { %8512 = vst [vmem:[#allocation40_spill] sm:$0xff] %v7544_v60  ;;  %v5931_v36 = vpop.f32.mrb[72].mxu1  ;;  %v5995_v48 = vpop.f32.mrb[104].mxu0 }
 0x29d   : > { %v1667_v7 = vpop.f32.mrb[73].mxu1  ;;  %v2222_v34 = vpop.f32.mrb[105].mxu0  ;;  %v1788_v13 = vrot.slane %v5931_v36, 1  ;;  %v2343_v1 = vrot.slane %v5995_v48, 7 }
 0x29e   : > { %v2341_v51 = vrot.slane %v2222_v34, 7  ;;  %v5932_v44 = vpop.f32.mrb[74].mxu1  ;;  %v5996_v9 = vpop.f32.mrb[106].mxu0  ;;  %v1786_v15 = vrot.slane %v1667_v7, 1 }
 0x29f   : > { %v2344_v52 = vrot.slane %v5996_v9, 7  ;;  %v1670_v18 = vpop.f32.mrb[75].mxu1  ;;  %v2225_v60 = vpop.f32.mrb[107].mxu0 }
 0x2a0   : > { %v1787_v58 = vrot.slane %v1670_v18, 1  ;;  %v2342_v11 = vrot.slane %v2225_v60, 7  ;;  %v7563_v12 = vsel %vm1085_vm1, %v2340_v25, %v2341_v51 }
 0x2a1   : > { %8513 = vst [vmem:[#allocation41_spill] sm:$0xff] %v7563_v12  ;;  %6198 = vmatmul.mubr.bf16.gmra.mrb[180].mxu1 %v7107_v47  ;;  %6262 = vmatmul.mubr.bf16.gmra.mrb[212].mxu0 %v7107_v47  ;;  %v7569_v57 = vsel %vm1085_vm1, %v2343_v1, %v2344_v52  ;;  %v1789_v1 = vrot.slane %v5932_v44, 1 }
 0x2a2   : > { %8514 = vst [vmem:[#allocation42_spill] sm:$0xff] %v7569_v57  ;;  %v1832_v14 = vsel %vm1810_vm2, %v1787_v58, %v1788_v13  ;;  %v1833_v36 = vsel %vm1810_vm2, %v1786_v15, %v1787_v58  ;;  %6201 = vmatprep.mubr.bf16.mxu1 %v7117_v4  ;;  %6265 = vmatprep.mubr.bf16.mxu0 %v7117_v4 }
 0x2a3   : > { %v7579_v60 = vsel %vm1085_vm1, %v2341_v51, %v2342_v11  ;;  %v7582_v48 = vadd.f32 %v1833_v36, %v7300_v54  ;;  %v7585_v7 = vadd.f32 %v1832_v14, %v7312_v37 }
 0x2a4   : > { %8515 = vst [vmem:[#allocation43_spill] sm:$0xff] %v7579_v60  ;;  %v5935_v34 = vpop.f32.mrb[76].mxu1  ;;  %v5999_v25 = vpop.f32.mrb[108].mxu0 }
 0x2a5   : > { %v1683_v9 = vpop.f32.mrb[77].mxu1  ;;  %v2238_v13 = vpop.f32.mrb[109].mxu0  ;;  %v1792_v4 = vrot.slane %v5935_v34, 1  ;;  %v2347_v57 = vrot.slane %v5999_v25, 7  ;;  %v8517_v25 = vld [vmem:[#allocation20_spill] sm:$0xff] }
 0x2a6   : > { %v1790_v15 = vrot.slane %v1683_v9, 1  ;;  %v2345_v18 = vrot.slane %v2238_v13, 7  ;;  %v5936_v58 = vpop.f32.mrb[78].mxu1  ;;  %v6000_v47 = vpop.f32.mrb[110].mxu0  ;;  %v8520_v9 = vmov 0.0|0.0  }
 0x2a7   : > { %v1793_v12 = vrot.slane %v5936_v58, 1  ;;  %v2348_v51 = vrot.slane %v6000_v47, 7  ;;  %v1686_v11 = vpop.f32.mrb[79].mxu1  ;;  %v2241_v60 = vpop.f32.mrb[111].mxu0 }
 0x2a8   : > { %v1830_v54 = vsel %vm1810_vm2, %v1789_v1, %v1790_v15  ;;  %v1791_v37 = vrot.slane %v1686_v11, 1  ;;  %v2346_v14 = vrot.slane %v2241_v60, 7  ;;  %v7591_v36 = vsel %vm1085_vm1, %v2344_v52, %v2345_v18 }
 0x2a9   : > { %v7594_v44 = vadd.f32 %v1830_v54, %v7306_v46  ;;  %v1827_v34 = vsel %vm1810_vm2, %v1792_v4, %v1793_v12  ;;  %6202 = vmatmul.mubr.bf16.gmra.mrb[184].mxu1 %v8517_v25  ;;  %6266 = vmatmul.mubr.bf16.gmra.mrb[216].mxu0 %v8517_v25  ;;  %v7602_v47 = vsel %vm1085_vm1, %v2347_v57, %v2348_v51  ;;  %v8521_v46 = vld [vmem:[#allocation22_spill] sm:$0xff] }
 0x2aa   : > { %8518 = vst [vmem:[#allocation45_spill] sm:$0xff] %v7602_v47  ;;  %v7605_v60 = vadd.f32 %v1827_v34, %v7328_v50  ;;  %v1829_v52 = vsel %vm1810_vm2, %v1790_v15, %v1791_v37  ;;  %6205 = vmatprep.mubr.bf16.mxu1 %v8520_v9  ;;  %6269 = vmatprep.mubr.bf16.mxu0 %v8520_v9 }
 0x2ab   : > { %8516 = vst [vmem:[#allocation44_spill] sm:$0xff] %v7594_v44  ;;  %v7613_v4 = vsel %vm1085_vm1, %v2346_v14, %v2347_v57  ;;  %v7616_v13 = vadd.f32 %v1829_v52, %v8521_v46  ;;  %v8523_v52 = vld [vmem:[#allocation23_spill] sm:$0xff] }
 0x2ac   : > { %8519 = vst [vmem:[#allocation46_spill] sm:$0xff] %v7605_v60  ;;  %v5939_v1 = vpop.f32.mrb[80].mxu1  ;;  %v6003_v18 = vpop.f32.mrb[112].mxu0 }
 0x2ad   : > { %8522 = vst [vmem:[#allocation22_spill] sm:$0xff] %v7616_v13  ;;  %v1699_v58 = vpop.f32.mrb[81].mxu1  ;;  %v2254_v51 = vpop.f32.mrb[113].mxu0  ;;  %v1796_v34 = vrot.slane %v5939_v1, 1  ;;  %v2351_v15 = vrot.slane %v6003_v18, 7 }
 0x2ae   : > { %v1794_v50 = vrot.slane %v1699_v58, 1  ;;  %v5940_v11 = vpop.f32.mrb[82].mxu1  ;;  %v6004_v54 = vpop.f32.mrb[114].mxu0  ;;  %v2349_v57 = vrot.slane %v2254_v51, 7 }
 0x2af   : > { %v1797_v37 = vrot.slane %v5940_v11, 1  ;;  %v1702_v60 = vpop.f32.mrb[83].mxu1  ;;  %v2257_v44 = vpop.f32.mrb[115].mxu0 }
 0x2b0   : > { %v1826_v25 = vsel %vm1810_vm2, %v1793_v12, %v1794_v50  ;;  %v1795_v14 = vrot.slane %v1702_v60, 1  ;;  %v2350_v47 = vrot.slane %v2257_v44, 7  ;;  %v8526_v12 = vld [vmem:[#allocation13_spill] sm:$0xff]  ;;  %v2352_v50 = vrot.slane %v6004_v54, 7 }
 0x2b1   : > { %v7621_v46 = vadd.f32 %v1826_v25, %v8523_v52  ;;  %v1823_v13 = vsel %vm1810_vm2, %v1796_v34, %v1797_v37  ;;  %6206 = vmatmul.mubr.bf16.gmra.mrb[188].mxu1 %v8520_v9  ;;  %6270 = vmatmul.mubr.bf16.gmra.mrb[220].mxu0 %v8520_v9 }
 0x2b2   : > { %v7628_v1 = vadd.f32 %v1823_v13, %v7338_v32  ;;  %v1824_v18 = vsel %vm1810_vm2, %v1795_v14, %v1796_v34  ;;  %6289 = vmatprep.mubr.bf16.mxu1 %v8526_v12  ;;  %v7635_v44 = vsel %vm1085_vm1, %v2350_v47, %v2351_v15  ;;  %v7639_v25 = vsel %vm1085_vm1, %v2349_v57, %v2350_v47 }
 0x2b3   : > { %8524 = vst [vmem:[#allocation23_spill] sm:$0xff] %v7621_v46  ;;  %8527 = vst [vmem:[#allocation13_spill] sm:$0xff] %v7635_v44  ;;  %v7642_v60 = vadd.f32 %v1824_v18, %v7340_v8 }
 0x2b4   : > { %8525 = vst [vmem:[#allocation47_spill] sm:$0xff] %v7628_v1  ;;  %v5943_v58 = vpop.f32.mrb[84].mxu1  ;;  %v6007_v51 = vpop.f32.mrb[116].mxu0 }
 0x2b5   : > { %v1715_v32 = vpop.f32.mrb[85].mxu1  ;;  %v2270_v13 = vpop.f32.mrb[117].mxu0  ;;  %v1800_v14 = vrot.slane %v5943_v58, 1  ;;  %v2355_v52 = vrot.slane %v6007_v51, 7 }
 0x2b6   : > { %v2353_v11 = vrot.slane %v2270_v13, 7  ;;  %v5944_v34 = vpop.f32.mrb[86].mxu1  ;;  %v6008_v37 = vpop.f32.mrb[118].mxu0  ;;  %v1798_v46 = vrot.slane %v1715_v32, 1 }
 0x2b7   : > { %v2356_v12 = vrot.slane %v6008_v37, 7  ;;  %v1718_v15 = vpop.f32.mrb[87].mxu1  ;;  %v2273_v1 = vpop.f32.mrb[119].mxu0 }
 0x2b8   : > { %v1799_v44 = vrot.slane %v1718_v15, 1  ;;  %v2354_v47 = vrot.slane %v2273_v1, 7  ;;  %v7646_v8 = vsel %vm1085_vm1, %v2352_v50, %v2353_v11 }
 0x2b9   : > { %8528 = vst [vmem:[#allocation48_spill] sm:$0xff] %v7646_v8  ;;  %6290 = vmatmul.mubr.bf16.vlgmr.msra.gmra.mrb[192].mxu1 %v6957_v40  ;;  %v7651_v54 = vsel %vm1085_vm1, %v2355_v52, %v2356_v12  ;;  %v8531_v40 = vld [vmem:[#allocation25_spill] sm:$0xff] }
 0x2ba   : > { %8529 = vst [vmem:[#allocation49_spill] sm:$0xff] %v7651_v54  ;;  %v1820_v57 = vsel %vm1810_vm2, %v1799_v44, %v1800_v14  ;;  %v1821_v18 = vsel %vm1810_vm2, %v1798_v46, %v1799_v44  ;;  %6293 = vmatprep.mubr.bf16.mxu1 %v6978_v61  ;;  %v7660_v1 = vsel %vm1085_vm1, %v2353_v11, %v2354_v47  ;;  %v1801_v14 = vrot.slane %v5944_v34, 1  ;;  %v8532_v34 = vld [vmem:[#allocation24_spill] sm:$0xff] }
 0x2bb   : > { %8530 = vst [vmem:[#allocation50_spill] sm:$0xff] %v7660_v1  ;;  %v7663_v58 = vadd.f32 %v1821_v18, %v7344_v41  ;;  %v7666_v51 = vadd.f32 %v1820_v57, %v8531_v40 }
 0x2bc   : > { %v5947_v32 = vpop.f32.mrb[88].mxu1  ;;  %v6011_v13 = vpop.f32.mrb[120].mxu0 }
 0x2bd   : > { %v1731_v50 = vpop.f32.mrb[89].mxu1  ;;  %v2286_v37 = vpop.f32.mrb[121].mxu0  ;;  %v1804_v61 = vrot.slane %v5947_v32, 1  ;;  %v2359_v54 = vrot.slane %v6011_v13, 7 }
 0x2be   : > { %v1802_v52 = vrot.slane %v1731_v50, 1  ;;  %v2357_v15 = vrot.slane %v2286_v37, 7  ;;  %v5948_v46 = vpop.f32.mrb[90].mxu1  ;;  %v6012_v44 = vpop.f32.mrb[122].mxu0 }
 0x2bf   : > { %v1805_v8 = vrot.slane %v5948_v46, 1  ;;  %v2360_v11 = vrot.slane %v6012_v44, 7  ;;  %v1734_v47 = vpop.f32.mrb[91].mxu1  ;;  %v2289_v1 = vpop.f32.mrb[123].mxu0 }
 0x2c0   : > { %v1818_v41 = vsel %vm1810_vm2, %v1801_v14, %v1802_v52  ;;  %v1803_v57 = vrot.slane %v1734_v47, 1  ;;  %v2358_v18 = vrot.slane %v2289_v1, 7  ;;  %v7672_v40 = vsel %vm1085_vm1, %v2356_v12, %v2357_v15  ;;  %v8535_v14 = vld [vmem:[#allocation26_spill] sm:$0xff] }
 0x2c1   : > { %v7675_v50 = vadd.f32 %v1818_v41, %v8532_v34  ;;  %v1815_v32 = vsel %vm1810_vm2, %v1804_v61, %v1805_v8  ;;  %6294 = vmatmul.mubr.bf16.gmra.mrb[196].mxu1 %v6959_v42  ;;  %v7682_v13 = vsel %vm1085_vm1, %v2359_v54, %v2360_v11 }
 0x2c2   : > { %v7685_v37 = vadd.f32 %v1815_v32, %v7373_v24  ;;  %v1817_v1 = vsel %vm1810_vm2, %v1802_v52, %v1803_v57  ;;  %6297 = vmatprep.mubr.bf16.mxu1 %v6995_v19  ;;  %v7692_v12 = vsel %vm1085_vm1, %v2358_v18, %v2359_v54 }
 0x2c3   : > { %8533 = vst [vmem:[#allocation25_spill] sm:$0xff] %v7675_v50  ;;  %v7695_v15 = vadd.f32 %v1817_v1, %v8535_v14  ;;  %v8537_v14 = vld [vmem:[#allocation27_spill] sm:$0xff] }
 0x2c4   : > { %8534 = vst [vmem:[#allocation24_spill] sm:$0xff] %v7685_v37  ;;  %v5951_v42 = vpop.f32.mrb[92].mxu1  ;;  %v6015_v46 = vpop.f32.mrb[124].mxu0 }
 0x2c5   : > { %8536 = vst [vmem:[#allocation26_spill] sm:$0xff] %v7695_v15  ;;  %v1747_v44 = vpop.f32.mrb[93].mxu1  ;;  %v2302_v61 = vpop.f32.mrb[125].mxu0  ;;  %v1808_v41 = vrot.slane %v5951_v42, 1  ;;  %v2363_v34 = vrot.slane %v6015_v46, 7  ;;  %v8539_v42 = vld [vmem:[#allocation30_spill] sm:$0xff] }
 0x2c6   : > { %v1806_v11 = vrot.slane %v1747_v44, 1  ;;  %v5952_v47 = vpop.f32.mrb[94].mxu1  ;;  %v6016_v24 = vpop.f32.mrb[126].mxu0  ;;  %v2361_v18 = vrot.slane %v2302_v61, 7  ;;  %v8540_v46 = vrot.slane %v8539_v42, 7  ;;  %v8543_v61 = vld [vmem:[#allocation14_spill] sm:$0xff] }
 0x2c7   : > { %v1809_v32 = vrot.slane %v5952_v47, 1  ;;  %v2364_v52 = vrot.slane %v6016_v24, 7  ;;  %v1750_v57 = vpop.f32.mrb[95].mxu1  ;;  %v2305_v19 = vpop.f32.mrb[127].mxu0  ;;  %v8541_v24 = vld [vmem:[#allocation28_spill] sm:$0xff] }
 0x2c8   : > { %v1814_v54 = vsel %vm1810_vm2, %v1805_v8, %v1806_v11  ;;  %v1807_v37 = vrot.slane %v1750_v57, 1  ;;  %v2362_v1 = vrot.slane %v2305_v19, 7 }
 0x2c9   : > { %v7700_v15 = vadd.f32 %v1814_v54, %v8537_v14  ;;  %v1811_v44 = vsel %vm1810_vm2, %v1808_v41, %v1809_v32  ;;  %6298 = vmatmul.mubr.bf16.gmra.mrb[200].mxu1 %v7002_v29  ;;  %v2412_v47 = vsel %vm1085_vm1, %v2364_v52, %v8540_v46  ;;  %v8544_v32 = vld [vmem:[#allocation29_spill] sm:$0xff] }
 0x2ca   : > { %v7710_v50 = vadd.f32 %v1811_v44, %v8541_v24  ;;  %v1812_v8 = vsel %vm1810_vm2, %v1807_v37, %v1808_v41  ;;  %6301 = vmatprep.mubr.bf16.mxu1 %v8543_v61  ;;  %v7717_v11 = vsel %vm1085_vm1, %v2362_v1, %v2363_v34  ;;  %v7721_v29 = vsel %vm1085_vm1, %v2361_v18, %v2362_v1  ;;  %v8546_v41 = vld [vmem:[#allocation31_spill] sm:$0xff] }
 0x2cb   : > { %8538 = vst [vmem:[#allocation27_spill] sm:$0xff] %v7700_v15  ;;  %v7724_v57 = vadd.f32 %v1812_v8, %v8544_v32  ;;  %v8547_v1 = vld [vmem:[#allocation15_spill] sm:$0xff] }
 0x2cc   : > { %8542 = vst [vmem:[#allocation30_spill] sm:$0xff] %v7710_v50  ;;  %v6035_v52 = vpop.f32.mrb[96].mxu1  ;;  %v6099_v19 = vpop.f32.mrb[128].mxu0 }
 0x2cd   : > { %8545 = vst [vmem:[#allocation28_spill] sm:$0xff] %v7724_v57  ;;  %v2512_v54 = vpop.f32.mrb[97].mxu1  ;;  %v2850_v14 = vpop.f32.mrb[129].mxu0  ;;  %v3043_v34 = vrot.slane %v6099_v19, 1 }
 0x2ce   : > { %v2703_v44 = vadd.f32 %v2512_v54, %v2412_v47  ;;  %v6036_v42 = vpop.f32.mrb[98].mxu1  ;;  %v6100_v37 = vpop.f32.mrb[130].mxu0  ;;  %v3041_v50 = vrot.slane %v2850_v14, 1  ;;  %v8548_v47 = vld [vmem:[#allocation16_spill] sm:$0xff] }
 0x2cf   : > { %v2706_v46 = vadd.f32 %v6036_v42, %v8546_v41  ;;  %v2515_v24 = vpop.f32.mrb[99].mxu1  ;;  %v2853_v61 = vpop.f32.mrb[131].mxu0  ;;  %v8549_v14 = vld [vmem:[#allocation32_spill] sm:$0xff] }
 0x2d0   : > { %v2704_v15 = vadd.f32 %v2515_v24, %v7412_v33  ;;  %v3042_v18 = vrot.slane %v2853_v61, 1 }
 0x2d1   : > { %6302 = vmatmul.mubr.bf16.gmra.mrb[204].mxu1 %v8547_v1 }
 0x2d2   : > { %v3134_v8 = vsel %vm1810_vm2, %v3042_v18, %v3043_v34  ;;  %v3135_v32 = vsel %vm1810_vm2, %v3041_v50, %v3042_v18  ;;  %6305 = vmatprep.mubr.bf16.mxu1 %v8548_v47  ;;  %v3044_v34 = vrot.slane %v6100_v37, 1 }
 0x2d3   : > { %v3137_v52 = vadd.f32 %v3135_v32, %v2703_v44  ;;  %v3138_v54 = vadd.f32 %v3134_v8, %v2704_v15 }
 0x2d4   : > { %v6039_v42 = vpop.f32.mrb[100].mxu1  ;;  %v6103_v41 = vpop.f32.mrb[132].mxu0 }
 0x2d5   : > { %v7735_v19 = vadd.f32 %v3137_v52, %v7414_v10  ;;  %v7738_v33 = vadd.f32 %v3138_v54, %v8549_v14  ;;  %v2709_v24 = vadd.f32 %v6039_v42, %v7445_v16  ;;  %v2528_v61 = vpop.f32.mrb[101].mxu1  ;;  %v2866_v1 = vpop.f32.mrb[133].mxu0  ;;  %v3047_v44 = vrot.slane %v6103_v41, 1 }
 0x2d6   : > { %v2707_v57 = vadd.f32 %v2528_v61, %v7423_v23  ;;  %v3045_v50 = vrot.slane %v2866_v1, 1  ;;  %v6040_v18 = vpop.f32.mrb[102].mxu1  ;;  %v6104_v47 = vpop.f32.mrb[134].mxu0 }
 0x2d7   : > { %v2710_v15 = vadd.f32 %v6040_v18, %v7434_v63  ;;  %v3048_v8 = vrot.slane %v6104_v47, 1  ;;  %v2531_v32 = vpop.f32.mrb[103].mxu1  ;;  %v2869_v10 = vpop.f32.mrb[135].mxu0 }
 0x2d8   : > { %v3132_v52 = vsel %vm1810_vm2, %v3044_v34, %v3045_v50  ;;  %v3046_v54 = vrot.slane %v2869_v10, 1 }
 0x2d9   : > { %v3140_v14 = vadd.f32 %v3132_v52, %v2706_v46  ;;  %v3129_v16 = vsel %vm1810_vm2, %v3047_v44, %v3048_v8  ;;  %6306 = vmatmul.mubr.bf16.gmra.mrb[208].mxu1 %v7004_v30 }
 0x2da   : > { %v3143_v23 = vadd.f32 %v3129_v16, %v2709_v24  ;;  %v3131_v37 = vsel %vm1810_vm2, %v3045_v50, %v3046_v54  ;;  %6309 = vmatprep.mubr.bf16.mxu1 %v7070_v45  ;;  %v6523_v45 = vld [vmem:[%s8451_s5] sm:$0xff]  }
 0x2db   : > { %v7752_v63 = vadd.f32 %v3140_v14, %v7426_v43  ;;  %v3141_v42 = vadd.f32 %v3131_v37, %v2707_v57  ;;  %6337 = vmatprep.subr.bf16.mxu0 %v6523_v45  ;;  %v8550_v16 = vld [vmem:[#allocation33_spill] sm:$0xff]  ;;  %v8551_v37 = vld [vmem:[#allocation34_spill] sm:$0xff] }
 0x2dc   : > { %v7755_v41 = vadd.f32 %v3143_v23, %v7437_v2  ;;  %v6043_v61 = vpop.f32.mrb[104].mxu1  ;;  %v6107_v46 = vpop.f32.mrb[136].mxu0  ;;  %6338 = vmatpush3.bf16.msra.mxu0 %v6523_v45 }
 0x2dd   : > { %v7758_v1 = vadd.f32 %v3141_v42, %v7448_v17  ;;  %v2713_v30 = vadd.f32 %v6043_v61, %v7468_v21  ;;  %v2544_v24 = vpop.f32.mrb[105].mxu1  ;;  %v2882_v34 = vpop.f32.mrb[137].mxu0  ;;  %v3051_v57 = vrot.slane %v6107_v46, 1 }
 0x2de   : > { %v3049_v50 = vrot.slane %v2882_v34, 1  ;;  %v6044_v43 = vpop.f32.mrb[106].mxu1  ;;  %v6108_v18 = vpop.f32.mrb[138].mxu0 }
 0x2df   : > { %v3052_v47 = vrot.slane %v6108_v18, 1  ;;  %v2547_v2 = vpop.f32.mrb[107].mxu1  ;;  %v2885_v44 = vpop.f32.mrb[139].mxu0 }
 0x2e0   : > { %v3128_v17 = vsel %vm1810_vm2, %v3048_v8, %v3049_v50  ;;  %v2712_v32 = vadd.f32 %v2547_v2, %v7475_v53  ;;  %v3050_v21 = vrot.slane %v2885_v44, 1  ;;  %v8553_v50 = vld [vmem:[#allocation36_spill] sm:$0xff]  ;;  %v8554_v2 = vld [vmem:[#allocation37_spill] sm:$0xff] }
 0x2e1   : > { %v3144_v10 = vadd.f32 %v3128_v17, %v2710_v15  ;;  %v3125_v52 = vsel %vm1810_vm2, %v3051_v57, %v3052_v47  ;;  %6310 = vmatmul.mubr.bf16.gmra.mrb[212].mxu1 %v7080_v3 }
 0x2e2   : > { %v3147_v54 = vadd.f32 %v3125_v52, %v2713_v30  ;;  %v3126_v14 = vsel %vm1810_vm2, %v3050_v21, %v3051_v57  ;;  %6313 = vmatprep.mubr.bf16.mxu1 %v7027_v55  ;;  %v8552_v30 = vld [vmem:[#allocation35_spill] sm:$0xff] }
 0x2e3   : > { %v7774_v23 = vadd.f32 %v3144_v10, %v8550_v16  ;;  %v3146_v8 = vadd.f32 %v3126_v14, %v2712_v32  ;;  %v8555_v32 = vld [vmem:[#allocation18_spill] sm:$0xff]  ;;  %v8556_v10 = vld [vmem:[#allocation17_spill] sm:$0xff] }
 0x2e4   : > { %v7777_v53 = vadd.f32 %v3147_v54, %v8551_v37  ;;  %v6047_v42 = vpop.f32.mrb[108].mxu1  ;;  %v6111_v15 = vpop.f32.mrb[140].mxu0  ;;  %v6524_v14 = vld [vmem:[%s8451_s5 + $0x8] sm:$0xff]  }
 0x2e5   : > { %v7780_v61 = vadd.f32 %v3146_v8, %v7471_v56  ;;  %v2560_v46 = vpop.f32.mrb[109].mxu1  ;;  %v2898_v3 = vpop.f32.mrb[141].mxu0  ;;  %v3055_v57 = vrot.slane %v6111_v15, 1  ;;  %6339 = vmatprep.subr.bf16.mxu0 %v6524_v14 }
 0x2e6   : > { %v2715_v24 = vadd.f32 %v2560_v46, %v8552_v30  ;;  %v6048_v34 = vpop.f32.mrb[110].mxu1  ;;  %v6112_v45 = vpop.f32.mrb[142].mxu0  ;;  %v3053_v47 = vrot.slane %v2898_v3, 1  ;;  %6340 = vmatpush3.bf16.msra.mxu0 %v6524_v14 }
 0x2e7   : > { %v2718_v55 = vadd.f32 %v6048_v34, %v8553_v50  ;;  %v2563_v43 = vpop.f32.mrb[111].mxu1  ;;  %v2901_v18 = vpop.f32.mrb[143].mxu0  ;;  %v3056_v30 = vrot.slane %v6112_v45, 1 }
 0x2e8   : > { %v2716_v44 = vadd.f32 %v2563_v43, %v8554_v2  ;;  %v3054_v17 = vrot.slane %v2901_v18, 1 }
 0x2e9   : > { %6314 = vmatmul.mubr.bf16.gmra.mrb[216].mxu1 %v8555_v32 }
 0x2ea   : > { %v3122_v56 = vsel %vm1810_vm2, %v3054_v17, %v3055_v57  ;;  %v3123_v21 = vsel %vm1810_vm2, %v3053_v47, %v3054_v17  ;;  %6317 = vmatprep.mubr.bf16.mxu1 %v8556_v10  ;;  %v8557_v10 = vld [vmem:[#allocation38_spill] sm:$0xff] }
 0x2eb   : > { %v3149_v52 = vadd.f32 %v3123_v21, %v2715_v24  ;;  %v3150_v54 = vadd.f32 %v3122_v56, %v2716_v44 }
 0x2ec   : > { %v6051_v16 = vpop.f32.mrb[112].mxu1  ;;  %v6115_v8 = vpop.f32.mrb[144].mxu0 }
 0x2ed   : > { %v7795_v37 = vadd.f32 %v3149_v52, %v7498_v20  ;;  %v7798_v42 = vadd.f32 %v3150_v54, %v7501_v5  ;;  %v2721_v15 = vadd.f32 %v6051_v16, %v7529_v27  ;;  %v2576_v46 = vpop.f32.mrb[113].mxu1  ;;  %v2914_v3 = vpop.f32.mrb[145].mxu0  ;;  %v3059_v18 = vrot.slane %v6115_v8, 1 }
 0x2ee   : > { %v2719_v24 = vadd.f32 %v2576_v46, %v7507_v35  ;;  %v3057_v34 = vrot.slane %v2914_v3, 1  ;;  %v6052_v50 = vpop.f32.mrb[114].mxu1  ;;  %v6116_v43 = vpop.f32.mrb[146].mxu0 }
 0x2ef   : > { %v2722_v57 = vadd.f32 %v6052_v50, %v7518_v39  ;;  %v3060_v20 = vrot.slane %v6116_v43, 1  ;;  %v2579_v47 = vpop.f32.mrb[115].mxu1  ;;  %v2917_v2 = vpop.f32.mrb[147].mxu0 }
 0x2f0   : > { %v3120_v5 = vsel %vm1810_vm2, %v3056_v30, %v3057_v34  ;;  %v3058_v27 = vrot.slane %v2917_v2, 1  ;;  %v8558_v47 = vld [vmem:[#allocation39_spill] sm:$0xff] }
 0x2f1   : > { %v3152_v44 = vadd.f32 %v3120_v5, %v2718_v55  ;;  %v3117_v45 = vsel %vm1810_vm2, %v3059_v18, %v3060_v20  ;;  %6318 = vmatmul.mubr.bf16.gmra.mrb[220].mxu1 %v7052_v22  ;;  %v8559_v5 = vld [vmem:[#allocation40_spill] sm:$0xff] }
 0x2f2   : > { %v3155_v35 = vadd.f32 %v3117_v45, %v2721_v15  ;;  %v3119_v17 = vsel %vm1810_vm2, %v3057_v34, %v3058_v27  ;;  %6321 = vmatprep.mubr.bf16.mxu1 %v7077_v62  ;;  %v6525_v62 = vld [vmem:[%s8451_s5 + $0x10] sm:$0xff]  }
 0x2f3   : > { %v7812_v39 = vadd.f32 %v3152_v44, %v7510_v0  ;;  %v3153_v32 = vadd.f32 %v3119_v17, %v2719_v24  ;;  %6341 = vmatprep.subr.bf16.mxu0 %v6525_v62 }
 0x2f4   : > { %v7815_v56 = vadd.f32 %v3155_v35, %v7521_v31  ;;  %v6055_v21 = vpop.f32.mrb[116].mxu1  ;;  %v6119_v55 = vpop.f32.mrb[148].mxu0  ;;  %6342 = vmatpush3.bf16.msra.mxu0 %v6525_v62  ;;  %v8560_v35 = vld [vmem:[#allocation41_spill] sm:$0xff]  ;;  %v8562_v62 = vld [vmem:[#allocation43_spill] sm:$0xff] }
 0x2f5   : > { %v7818_v52 = vadd.f32 %v3153_v32, %v8557_v10  ;;  %v2725_v22 = vadd.f32 %v6055_v21, %v7552_v28  ;;  %v2592_v54 = vpop.f32.mrb[117].mxu1  ;;  %v2930_v14 = vpop.f32.mrb[149].mxu0  ;;  %v3063_v15 = vrot.slane %v6119_v55, 1  ;;  %v8561_v55 = vld [vmem:[#allocation42_spill] sm:$0xff] }
 0x2f6   : > { %v3061_v16 = vrot.slane %v2930_v14, 1  ;;  %v6056_v0 = vpop.f32.mrb[118].mxu1  ;;  %v6120_v8 = vpop.f32.mrb[150].mxu0 }
 0x2f7   : > { %v3064_v46 = vrot.slane %v6120_v8, 1  ;;  %v2595_v31 = vpop.f32.mrb[119].mxu1  ;;  %v2933_v3 = vpop.f32.mrb[151].mxu0  ;;  %v8563_v8 = vld [vmem:[#allocation19_spill] sm:$0xff] }
 0x2f8   : > { %v3116_v30 = vsel %vm1810_vm2, %v3060_v20, %v3061_v16  ;;  %v2724_v24 = vadd.f32 %v2595_v31, %v7559_v59  ;;  %v3062_v28 = vrot.slane %v2933_v3, 1 }
 0x2f9   : > { %v3156_v34 = vadd.f32 %v3116_v30, %v2722_v57  ;;  %v3113_v50 = vsel %vm1810_vm2, %v3063_v15, %v3064_v46  ;;  %6322 = vmatmul.mubr.bf16.gmra.mrb[224].mxu1 %v7090_v49  ;;  %v8564_v46 = vld [vmem:[#allocation21_spill] sm:$0xff]  ;;  %v6526_v30 = vld [vmem:[%s8451_s5 + $0x18] sm:$0xff]  }
 0x2fa   : > { %v3159_v43 = vadd.f32 %v3113_v50, %v2725_v22  ;;  %v3114_v18 = vsel %vm1810_vm2, %v3062_v28, %v3063_v15  ;;  %6325 = vmatprep.mubr.bf16.mxu1 %v7082_v6  ;;  %6343 = vmatprep.subr.bf16.mxu0 %v6526_v30 }
 0x2fb   : > { %v7834_v2 = vadd.f32 %v3156_v34, %v8558_v47  ;;  %v3158_v20 = vadd.f32 %v3114_v18, %v2724_v24  ;;  %6344 = vmatpush3.bf16.msra.mxu0 %v6526_v30 }
 0x2fc   : > { %v7837_v59 = vadd.f32 %v3159_v43, %v8559_v5  ;;  %v6059_v27 = vpop.f32.mrb[120].mxu1  ;;  %v6123_v57 = vpop.f32.mrb[152].mxu0 }
 0x2fd   : > { %v7840_v44 = vadd.f32 %v3158_v20, %v7555_v26  ;;  %v2608_v45 = vpop.f32.mrb[121].mxu1  ;;  %v2946_v49 = vpop.f32.mrb[153].mxu0  ;;  %v3067_v54 = vrot.slane %v6123_v57, 1 }
 0x2fe   : > { %v2727_v17 = vadd.f32 %v2608_v45, %v8560_v35  ;;  %v6060_v32 = vpop.f32.mrb[122].mxu1  ;;  %v6124_v21 = vpop.f32.mrb[154].mxu0  ;;  %v3065_v14 = vrot.slane %v2946_v49, 1  ;;  %v8565_v35 = vld [vmem:[#allocation45_spill] sm:$0xff] }
 0x2ff   : > { %v2730_v6 = vadd.f32 %v6060_v32, %v8561_v55  ;;  %v2611_v10 = vpop.f32.mrb[123].mxu1  ;;  %v2949_v22 = vpop.f32.mrb[155].mxu0  ;;  %v3068_v20 = vrot.slane %v6124_v21, 1 }
 0x300   : > { %v2728_v16 = vadd.f32 %v2611_v10, %v8562_v62  ;;  %v3066_v0 = vrot.slane %v2949_v22, 1  ;;  %v8566_v22 = vld [vmem:[#allocation20_spill] sm:$0xff] }
 0x301   : > { %6326 = vmatmul.mubr.bf16.gmra.mrb[228].mxu1 %v8563_v8 }
 0x302   : > { %v3110_v26 = vsel %vm1810_vm2, %v3066_v0, %v3067_v54  ;;  %v3111_v15 = vsel %vm1810_vm2, %v3065_v14, %v3066_v0  ;;  %6329 = vmatprep.mubr.bf16.mxu1 %v8564_v46  ;;  %v8567_v14 = vld [vmem:[#allocation44_spill] sm:$0xff]  ;;  %v8568_v0 = vld [vmem:[#allocation46_spill] sm:$0xff] }
 0x303   : > { %v3161_v31 = vadd.f32 %v3111_v15, %v2727_v17  ;;  %v3162_v3 = vadd.f32 %v3110_v26, %v2728_v16  ;;  %v8570_v15 = vld [vmem:[#allocation22_spill] sm:$0xff] }
 0x304   : > { %v6063_v24 = vpop.f32.mrb[124].mxu1  ;;  %v6127_v28 = vpop.f32.mrb[156].mxu0 }
 0x305   : > { %v7855_v34 = vadd.f32 %v3161_v31, %v7582_v48  ;;  %v7858_v50 = vadd.f32 %v3162_v3, %v7585_v7  ;;  %v2733_v43 = vadd.f32 %v6063_v24, %v7613_v4  ;;  %v2624_v18 = vpop.f32.mrb[125].mxu1  ;;  %v2962_v47 = vpop.f32.mrb[157].mxu0  ;;  %v3071_v49 = vrot.slane %v6127_v28, 1  ;;  %v8572_v31 = vld [vmem:[#allocation13_spill] sm:$0xff] }
 0x306   : > { %v2731_v5 = vadd.f32 %v2624_v18, %v7591_v36  ;;  %v3069_v27 = vrot.slane %v2962_v47, 1  ;;  %v6064_v57 = vpop.f32.mrb[126].mxu1  ;;  %v6128_v45 = vpop.f32.mrb[158].mxu0  ;;  %v6527_v28 = vld [vmem:[%s8451_s5 + $0x20] sm:$0xff]  }
 0x307   : > { %v2734_v17 = vadd.f32 %v6064_v57, %v8565_v35  ;;  %v3072_v48 = vrot.slane %v6128_v45, 1  ;;  %v2627_v32 = vpop.f32.mrb[127].mxu1  ;;  %v2965_v55 = vpop.f32.mrb[159].mxu0  ;;  %6345 = vmatprep.subr.bf16.mxu0 %v6527_v28 }
 0x308   : > { %v3108_v7 = vsel %vm1810_vm2, %v3068_v20, %v3069_v27  ;;  %v3070_v4 = vrot.slane %v2965_v55, 1  ;;  %6346 = vmatpush3.bf16.msra.mxu0 %v6527_v28 }
 0x309   : > { %v3164_v10 = vadd.f32 %v3108_v7, %v2730_v6  ;;  %v3105_v21 = vsel %vm1810_vm2, %v3071_v49, %v3072_v48  ;;  %6330 = vmatmul.mubr.bf16.gmra.mrb[232].mxu1 %v8566_v22 }
 0x30a   : > { %v3167_v36 = vadd.f32 %v3105_v21, %v2733_v43  ;;  %v3107_v54 = vsel %vm1810_vm2, %v3069_v27, %v3070_v4  ;;  %6333 = vmatprep.mubr.bf16.mxu1 %v8520_v9 }
 0x30b   : > { %v7872_v62 = vadd.f32 %v3164_v10, %v8567_v14  ;;  %v3165_v16 = vadd.f32 %v3107_v54, %v2731_v5  ;;  %v8573_v10 = vld [vmem:[#allocation23_spill] sm:$0xff] }
 0x30c   : > { %v7875_v8 = vadd.f32 %v3167_v36, %v8568_v0  ;;  %v6067_v26 = vpop.f32.mrb[128].mxu1  ;;  %v6131_v6 = vpop.f32.mrb[160].mxu0  ;;  %v8575_v36 = vld [vmem:[#allocation47_spill] sm:$0xff]  ;;  %v8578_v0 = vld [vmem:[#allocation48_spill] sm:$0xff] }
 0x30d   : > { %v7878_v46 = vadd.f32 %v3165_v16, %v8570_v15  ;;  %v2737_v3 = vadd.f32 %v6067_v26, %v8572_v31  ;;  %v2640_v30 = vpop.f32.mrb[129].mxu1  ;;  %v2978_v24 = vpop.f32.mrb[161].mxu0  ;;  %v3075_v20 = vrot.slane %v6131_v6, 1  ;;  %v8579_v15 = vld [vmem:[#allocation49_spill] sm:$0xff] }
 0x30e   : > { %8569 = vst [vmem:[#allocation14_spill] sm:$0xff] %v7875_v8  ;;  %v3073_v43 = vrot.slane %v2978_v24, 1  ;;  %v6068_v18 = vpop.f32.mrb[130].mxu1  ;;  %v6132_v47 = vpop.f32.mrb[162].mxu0 }
 0x30f   : > { %8571 = vst [vmem:[#allocation29_spill] sm:$0xff] %v7878_v46  ;;  %v3076_v5 = vrot.slane %v6132_v47, 1  ;;  %v2643_v27 = vpop.f32.mrb[131].mxu1  ;;  %v2981_v57 = vpop.f32.mrb[163].mxu0 }
 0x310   : > { %v3104_v45 = vsel %vm1810_vm2, %v3072_v48, %v3073_v43  ;;  %v2736_v49 = vadd.f32 %v2643_v27, %v7639_v25  ;;  %v3074_v35 = vrot.slane %v2981_v57, 1  ;;  %v8580_v43 = vld [vmem:[#allocation50_spill] sm:$0xff] }
 0x311   : > { %v3168_v32 = vadd.f32 %v3104_v45, %v2734_v17  ;;  %v3101_v55 = vsel %vm1810_vm2, %v3075_v20, %v3076_v5  ;;  %6334 = vmatmul.mubr.bf16.gmra.mrb[236].mxu1 %v8520_v9 }
 0x312   : > { %v3171_v7 = vadd.f32 %v3101_v55, %v2737_v3  ;;  %v3102_v4 = vsel %vm1810_vm2, %v3074_v35, %v3075_v20  ;;  %v6529_v35 = vld [vmem:[%s8451_s5 + $0x30] sm:$0xff]  }
 0x313   : > { %v7893_v21 = vadd.f32 %v3168_v32, %v8573_v10  ;;  %v3170_v22 = vadd.f32 %v3102_v4, %v2736_v49 }
 0x314   : > { %v7896_v48 = vadd.f32 %v3171_v7, %v8575_v36  ;;  %v6071_v25 = vpop.f32.mrb[132].mxu1  ;;  %v6135_v54 = vpop.f32.mrb[164].mxu0 }
 0x315   : > { %8574 = vst [vmem:[#allocation31_spill] sm:$0xff] %v7893_v21  ;;  %v7899_v17 = vadd.f32 %v3170_v22, %v7642_v60  ;;  %v2656_v14 = vpop.f32.mrb[133].mxu1  ;;  %v2994_v16 = vpop.f32.mrb[165].mxu0  ;;  %v3079_v24 = vrot.slane %v6135_v54, 1  ;;  %v6528_v60 = vld [vmem:[%s8451_s5 + $0x28] sm:$0xff]  }
 0x316   : > { %8576 = vst [vmem:[#allocation15_spill] sm:$0xff] %v7896_v48  ;;  %v2739_v9 = vadd.f32 %v2656_v14, %v8578_v0  ;;  %v6072_v26 = vpop.f32.mrb[134].mxu1  ;;  %v6136_v6 = vpop.f32.mrb[166].mxu0  ;;  %v3077_v28 = vrot.slane %v2994_v16, 1  ;;  %6347 = vmatprep.subr.bf16.mxu0 %v6528_v60 }
 0x317   : > { %8577 = vst [vmem:[#allocation16_spill] sm:$0xff] %v7899_v17  ;;  %v2742_v31 = vadd.f32 %v6072_v26, %v8579_v15  ;;  %v2659_v3 = vpop.f32.mrb[135].mxu1  ;;  %v2997_v30 = vpop.f32.mrb[167].mxu0  ;;  %6348 = vmatpush3.bf16.msra.mxu0 %v6528_v60  ;;  %v3080_v22 = vrot.slane %v6136_v6, 1  ;;  %v6530_v6 = vld [vmem:[%s8451_s5 + $0x38] sm:$0xff]  }
 0x318   : > { %v2740_v18 = vadd.f32 %v2659_v3, %v8580_v43  ;;  %v3078_v47 = vrot.slane %v2997_v30, 1  ;;  %6349 = vmatprep.subr.bf16.mxu0 %v6529_v35  ;;  %v8583_v30 = vld [vmem:[#allocation25_spill] sm:$0xff]  ;;  %v8585_v43 = vld [vmem:[#allocation24_spill] sm:$0xff] }
 0x31a   : > { %v3098_v20 = vsel %vm1810_vm2, %v3078_v47, %v3079_v24  ;;  %v3099_v5 = vsel %vm1810_vm2, %v3077_v28, %v3078_v47 }
 0x31b   : > { %v3173_v27 = vadd.f32 %v3099_v5, %v2739_v9  ;;  %v3174_v57 = vadd.f32 %v3098_v20, %v2740_v18  ;;  %6350 = vmatpush3.bf16.msra.mxu0 %v6529_v35  ;;  %v8587_v20 = vld [vmem:[#allocation26_spill] sm:$0xff] }
 0x31c   : > { %v6075_v45 = vpop.f32.mrb[136].mxu1  ;;  %v6139_v49 = vpop.f32.mrb[168].mxu0  ;;  %6351 = vmatprep.subr.bf16.mxu0 %v6530_v6 }
 0x31d   : > { %v7915_v32 = vadd.f32 %v3173_v27, %v7663_v58  ;;  %v7918_v55 = vadd.f32 %v3174_v57, %v7666_v51  ;;  %v2745_v7 = vadd.f32 %v6075_v45, %v7692_v12  ;;  %v2672_v4 = vpop.f32.mrb[137].mxu1  ;;  %v3010_v10 = vpop.f32.mrb[169].mxu0  ;;  %v3083_v16 = vrot.slane %v6139_v49, 1 }
 0x31e   : > { %v2743_v36 = vadd.f32 %v2672_v4, %v7672_v40  ;;  %v3081_v25 = vrot.slane %v3010_v10, 1  ;;  %v6076_v54 = vpop.f32.mrb[138].mxu1  ;;  %v6140_v14 = vpop.f32.mrb[170].mxu0 }
 0x31f   : > { %8581 = vst [vmem:[#allocation32_spill] sm:$0xff] %v7915_v32  ;;  %8582 = vst [vmem:[#allocation33_spill] sm:$0xff] %v7918_v55  ;;  %v2746_v0 = vadd.f32 %v6076_v54, %v7682_v13  ;;  %v3084_v9 = vrot.slane %v6140_v14, 1  ;;  %v2675_v58 = vpop.f32.mrb[139].mxu1  ;;  %v3013_v26 = vpop.f32.mrb[171].mxu0  ;;  %6352 = vmatpush3.bf16.msra.mxu0 %v6530_v6  ;;  %v8591_v6 = vld [vmem:[#allocation30_spill] sm:$0xff] }
 0x320   : > { %v3096_v51 = vsel %vm1810_vm2, %v3080_v22, %v3081_v25  ;;  %v3082_v12 = vrot.slane %v3013_v26, 1  ;;  %v8589_v26 = vld [vmem:[#allocation27_spill] sm:$0xff] }
 0x321   : > { %v3176_v40 = vadd.f32 %v3096_v51, %v2742_v31  ;;  %v3093_v15 = vsel %vm1810_vm2, %v3083_v16, %v3084_v9 }
 0x322   : > { %v3179_v3 = vadd.f32 %v3093_v15, %v2745_v7  ;;  %v3095_v13 = vsel %vm1810_vm2, %v3081_v25, %v3082_v12 }
 0x323   : > { %v7933_v24 = vadd.f32 %v3176_v40, %v8583_v30  ;;  %v3177_v28 = vadd.f32 %v3095_v13, %v2743_v36 }
 0x324   : > { %v7936_v18 = vadd.f32 %v3179_v3, %v8585_v43  ;;  %v6079_v47 = vpop.f32.mrb[140].mxu1  ;;  %v6143_v60 = vpop.f32.mrb[172].mxu0  ;;  %v8593_v3 = vld [vmem:[#allocation28_spill] sm:$0xff] }
 0x325   : > { %8584 = vst [vmem:[#allocation34_spill] sm:$0xff] %v7933_v24  ;;  %v7939_v31 = vadd.f32 %v3177_v28, %v8587_v20  ;;  %v2749_v5 = vadd.f32 %v6079_v47, %v7717_v11  ;;  %v2688_v27 = vpop.f32.mrb[141].mxu1  ;;  %v3026_v57 = vpop.f32.mrb[173].mxu0  ;;  %v3087_v7 = vrot.slane %v6143_v60, 1 }
 0x326   : > { %8586 = vst [vmem:[#allocation35_spill] sm:$0xff] %v7936_v18  ;;  %v3085_v45 = vrot.slane %v3026_v57, 1  ;;  %v6080_v49 = vpop.f32.mrb[142].mxu1  ;;  %v6144_v35 = vpop.f32.mrb[174].mxu0 }
 0x327   : > { %8588 = vst [vmem:[#allocation36_spill] sm:$0xff] %v7939_v31  ;;  %v3088_v4 = vrot.slane %v6144_v35, 1  ;;  %v2691_v10 = vpop.f32.mrb[143].mxu1  ;;  %v3029_v22 = vpop.f32.mrb[175].mxu0 }
 0x328   : > { %v3092_v36 = vsel %vm1810_vm2, %v3084_v9, %v3085_v45  ;;  %v2748_v25 = vadd.f32 %v2691_v10, %v7721_v29  ;;  %v3086_v54 = vrot.slane %v3029_v22, 1 }
 0x329   : > { %v3180_v14 = vadd.f32 %v3092_v36, %v2746_v0  ;;  %v3089_v16 = vsel %vm1810_vm2, %v3087_v7, %v3088_v4 }
 0x32a   : > { %v3183_v11 = vadd.f32 %v3089_v16, %v2749_v5  ;;  %v3090_v58 = vsel %vm1810_vm2, %v3086_v54, %v3087_v7 }
 0x32b   : > { %v7950_v51 = vadd.f32 %v3180_v14, %v8589_v26  ;;  %v3182_v12 = vadd.f32 %v3090_v58, %v2748_v25 }
 0x32c   : > { %v7953_v40 = vadd.f32 %v3183_v11, %v8591_v6  ;;  %v6163_v15 = vpop.f32.mrb[144].mxu1  ;;  %v6227_v9 = vpop.f32.mrb[176].mxu0 }
 0x32d   : > { %8590 = vst [vmem:[#allocation37_spill] sm:$0xff] %v7950_v51  ;;  %v7956_v29 = vadd.f32 %v3182_v12, %v8593_v3  ;;  %v7958_v0 = vpop.f32.mrb[145].mxu1  ;;  %v7960_v13 = vpop.f32.mrb[177].mxu0  ;;  %v3694_v43 = vrot.slane %v6163_v15, 7 }
 0x32e   : > { %8592 = vst [vmem:[#allocation18_spill] sm:$0xff] %v7953_v40  ;;  %v6164_v30 = vpop.f32.mrb[146].mxu1  ;;  %v6228_v28 = vpop.f32.mrb[178].mxu0  ;;  %v8472_v5 = vrot.slane %v7958_v0, 7 }
 0x32f   : > { %8594 = vst [vmem:[#allocation17_spill] sm:$0xff] %v7956_v29  ;;  %v3695_v47 = vrot.slane %v6164_v30, 7  ;;  %v3504_v60 = vpop.f32.mrb[147].mxu1  ;;  %v3890_v20 = vpop.f32.mrb[179].mxu0 }
 0x330   : > { %v3693_v27 = vrot.slane %v3504_v60, 7 }
 0x331   : > { %v3784_v57 = vsel %vm1085_vm1, %v3694_v43, %v3695_v47 }
 0x332   : > { %v7965_v45 = vadd.f32 %v6228_v28, %v3784_v57  ;;  %v3786_v49 = vsel %vm1085_vm1, %v8472_v5, %v3693_v27 }
 0x333   : > { %v7971_v35 = vadd.f32 %v3890_v20, %v3786_v49 }
 0x334   : > { %v6167_v7 = vpop.f32.mrb[148].mxu1  ;;  %v6231_v4 = vpop.f32.mrb[180].mxu0 }
 0x335   : > { %v3517_v10 = vpop.f32.mrb[149].mxu1  ;;  %v3903_v22 = vpop.f32.mrb[181].mxu0  ;;  %v3698_v14 = vrot.slane %v6167_v7, 7 }
 0x336   : > { %v3696_v36 = vrot.slane %v3517_v10, 7  ;;  %v6168_v25 = vpop.f32.mrb[150].mxu1  ;;  %v6232_v54 = vpop.f32.mrb[182].mxu0 }
 0x337   : > { %v3699_v16 = vrot.slane %v6168_v25, 7  ;;  %v3520_v11 = vpop.f32.mrb[151].mxu1  ;;  %v3906_v58 = vpop.f32.mrb[183].mxu0 }
 0x338   : > { %v3783_v26 = vsel %vm1085_vm1, %v3695_v47, %v3696_v36  ;;  %v3697_v12 = vrot.slane %v3520_v11, 7 }
 0x339   : > { %v7975_v6 = vadd.f32 %v3903_v22, %v3783_v26  ;;  %v3780_v15 = vsel %vm1085_vm1, %v3698_v14, %v3699_v16 }
 0x33a   : > { %v7979_v9 = vadd.f32 %v6232_v54, %v3780_v15  ;;  %v3781_v3 = vsel %vm1085_vm1, %v3697_v12, %v3698_v14 }
 0x33b   : > { %v7983_v30 = vadd.f32 %v6231_v4, %v3781_v3 }
 0x33c   : > { %v6171_v28 = vpop.f32.mrb[152].mxu1  ;;  %v6235_v43 = vpop.f32.mrb[184].mxu0 }
 0x33d   : > { %v3533_v60 = vpop.f32.mrb[153].mxu1  ;;  %v3919_v20 = vpop.f32.mrb[185].mxu0  ;;  %v3702_v7 = vrot.slane %v6171_v28, 7 }
 0x33e   : > { %v6172_v27 = vpop.f32.mrb[154].mxu1  ;;  %v6236_v57 = vpop.f32.mrb[186].mxu0  ;;  %v3700_v10 = vrot.slane %v3533_v60, 7 }
 0x33f   : > { %v3536_v47 = vpop.f32.mrb[155].mxu1  ;;  %v3922_v49 = vpop.f32.mrb[187].mxu0  ;;  %v3703_v26 = vrot.slane %v6172_v27, 7 }
 0x340   : > { %v3701_v22 = vrot.slane %v3536_v47, 7 }
 0x342   : > { %v3777_v36 = vsel %vm1085_vm1, %v3701_v22, %v3702_v7  ;;  %v3778_v25 = vsel %vm1085_vm1, %v3700_v10, %v3701_v22 }
 0x343   : > { %v7989_v54 = vadd.f32 %v6235_v43, %v3777_v36  ;;  %v7991_v4 = vadd.f32 %v3922_v49, %v3778_v25 }
 0x344   : > { %v6175_v14 = vpop.f32.mrb[156].mxu1  ;;  %v6239_v16 = vpop.f32.mrb[188].mxu0 }
 0x345   : > { %v3549_v11 = vpop.f32.mrb[157].mxu1  ;;  %v3935_v58 = vpop.f32.mrb[189].mxu0  ;;  %v3706_v28 = vrot.slane %v6175_v14, 7 }
 0x346   : > { %v3704_v12 = vrot.slane %v3549_v11, 7  ;;  %v6176_v15 = vpop.f32.mrb[158].mxu1  ;;  %v6240_v3 = vpop.f32.mrb[190].mxu0 }
 0x347   : > { %v3707_v60 = vrot.slane %v6176_v15, 7  ;;  %v3552_v20 = vpop.f32.mrb[159].mxu1  ;;  %v3938_v57 = vpop.f32.mrb[191].mxu0 }
 0x348   : > { %v3775_v47 = vsel %vm1085_vm1, %v3703_v26, %v3704_v12  ;;  %v3705_v7 = vrot.slane %v3552_v20, 7 }
 0x349   : > { %v7995_v43 = vadd.f32 %v3935_v58, %v3775_v47  ;;  %v3772_v49 = vsel %vm1085_vm1, %v3706_v28, %v3707_v60 }
 0x34a   : > { %v7999_v10 = vadd.f32 %v6240_v3, %v3772_v49  ;;  %v3774_v27 = vsel %vm1085_vm1, %v3704_v12, %v3705_v7 }
 0x34b   : > { %v8003_v22 = vadd.f32 %v3938_v57, %v3774_v27 }
 0x34c   : > { %v6179_v36 = vpop.f32.mrb[160].mxu1  ;;  %v6243_v25 = vpop.f32.mrb[192].mxu0 }
 0x34d   : > { %v3565_v14 = vpop.f32.mrb[161].mxu1  ;;  %v3951_v16 = vpop.f32.mrb[193].mxu0  ;;  %v3710_v20 = vrot.slane %v6179_v36, 7 }
 0x34e   : > { %v3708_v11 = vrot.slane %v3565_v14, 7  ;;  %v6180_v15 = vpop.f32.mrb[162].mxu1  ;;  %v6244_v26 = vpop.f32.mrb[194].mxu0 }
 0x34f   : > { %v3711_v58 = vrot.slane %v6180_v15, 7  ;;  %v3568_v47 = vpop.f32.mrb[163].mxu1  ;;  %v3954_v5 = vpop.f32.mrb[195].mxu0 }
 0x350   : > { %v3771_v3 = vsel %vm1085_vm1, %v3707_v60, %v3708_v11  ;;  %v3709_v28 = vrot.slane %v3568_v47, 7 }
 0x351   : > { %v8007_v49 = vadd.f32 %v3951_v16, %v3771_v3  ;;  %v3768_v12 = vsel %vm1085_vm1, %v3710_v20, %v3711_v58 }
 0x352   : > { %v8011_v57 = vadd.f32 %v6244_v26, %v3768_v12  ;;  %v3769_v7 = vsel %vm1085_vm1, %v3709_v28, %v3710_v20 }
 0x353   : > { %v8015_v27 = vadd.f32 %v6243_v25, %v3769_v7 }
 0x354   : > { %v6183_v36 = vpop.f32.mrb[164].mxu1  ;;  %v6247_v14 = vpop.f32.mrb[196].mxu0 }
 0x355   : > { %v3581_v15 = vpop.f32.mrb[165].mxu1  ;;  %v3967_v5 = vpop.f32.mrb[197].mxu0  ;;  %v3714_v16 = vrot.slane %v6183_v36, 7 }
 0x356   : > { %v6184_v29 = vpop.f32.mrb[166].mxu1  ;;  %v6248_v40 = vpop.f32.mrb[198].mxu0  ;;  %v3712_v47 = vrot.slane %v3581_v15, 7 }
 0x357   : > { %v3584_v60 = vpop.f32.mrb[167].mxu1  ;;  %v3970_v11 = vpop.f32.mrb[199].mxu0  ;;  %v3715_v40 = vrot.slane %v6184_v29, 7 }
 0x358   : > { %v3713_v3 = vrot.slane %v3584_v60, 7 }
 0x35a   : > { %v3765_v26 = vsel %vm1085_vm1, %v3713_v3, %v3714_v16  ;;  %v3766_v58 = vsel %vm1085_vm1, %v3712_v47, %v3713_v3 }
 0x35b   : > { %v8021_v20 = vadd.f32 %v6247_v14, %v3765_v26  ;;  %v8023_v25 = vadd.f32 %v3970_v11, %v3766_v58 }
 0x35c   : > { %v6187_v28 = vpop.f32.mrb[168].mxu1  ;;  %v6251_v12 = vpop.f32.mrb[200].mxu0 }
 0x35d   : > { %v3597_v7 = vpop.f32.mrb[169].mxu1  ;;  %v3983_v5 = vpop.f32.mrb[201].mxu0  ;;  %v3718_v15 = vrot.slane %v6187_v28, 7 }
 0x35e   : > { %v3716_v51 = vrot.slane %v3597_v7, 7  ;;  %v6188_v31 = vpop.f32.mrb[170].mxu1  ;;  %v6252_v36 = vpop.f32.mrb[202].mxu0 }
 0x35f   : > { %v3719_v60 = vrot.slane %v6188_v31, 7  ;;  %v3600_v18 = vpop.f32.mrb[171].mxu1  ;;  %v3986_v24 = vpop.f32.mrb[203].mxu0 }
 0x360   : > { %v3763_v16 = vsel %vm1085_vm1, %v3715_v40, %v3716_v51  ;;  %v3717_v47 = vrot.slane %v3600_v18, 7 }
 0x361   : > { %v8027_v14 = vadd.f32 %v3983_v5, %v3763_v16  ;;  %v3760_v11 = vsel %vm1085_vm1, %v3718_v15, %v3719_v60 }
 0x362   : > { %v8031_v3 = vadd.f32 %v6252_v36, %v3760_v11  ;;  %v3762_v29 = vsel %vm1085_vm1, %v3716_v51, %v3717_v47 }
 0x363   : > { %v8035_v26 = vadd.f32 %v3986_v24, %v3762_v29 }
 0x364   : > { %v6191_v58 = vpop.f32.mrb[172].mxu1  ;;  %v6255_v31 = vpop.f32.mrb[204].mxu0 }
 0x365   : > { %v3613_v28 = vpop.f32.mrb[173].mxu1  ;;  %v3999_v12 = vpop.f32.mrb[205].mxu0  ;;  %v3722_v18 = vrot.slane %v6191_v58, 7 }
 0x366   : > { %v3720_v7 = vrot.slane %v3613_v28, 7  ;;  %v6192_v55 = vpop.f32.mrb[174].mxu1  ;;  %v6256_v40 = vpop.f32.mrb[206].mxu0 }
 0x367   : > { %v3723_v5 = vrot.slane %v6192_v55, 7  ;;  %v3616_v16 = vpop.f32.mrb[175].mxu1  ;;  %v4002_v32 = vpop.f32.mrb[207].mxu0 }
 0x368   : > { %v3759_v36 = vsel %vm1085_vm1, %v3719_v60, %v3720_v7  ;;  %v3721_v15 = vrot.slane %v3616_v16, 7 }
 0x369   : > { %v8039_v11 = vadd.f32 %v3999_v12, %v3759_v36  ;;  %v3756_v24 = vsel %vm1085_vm1, %v3722_v18, %v3723_v5 }
 0x36a   : > { %v8043_v51 = vadd.f32 %v6256_v40, %v3756_v24  ;;  %v3757_v47 = vsel %vm1085_vm1, %v3721_v15, %v3722_v18 }
 0x36b   : > { %v8047_v29 = vadd.f32 %v6255_v31, %v3757_v47 }
 0x36c   : > { %8595 = vst [vmem:[#allocation38_spill] sm:$0xff] %v8043_v51  ;;  %v6195_v58 = vpop.f32.mrb[176].mxu1  ;;  %v6259_v55 = vpop.f32.mrb[208].mxu0 }
 0x36d   : > { %v3629_v28 = vpop.f32.mrb[177].mxu1  ;;  %v4015_v32 = vpop.f32.mrb[209].mxu0  ;;  %v3726_v12 = vrot.slane %v6195_v58, 7 }
 0x36e   : > { %v6196_v17 = vpop.f32.mrb[178].mxu1  ;;  %v6260_v48 = vpop.f32.mrb[210].mxu0  ;;  %v3724_v16 = vrot.slane %v3629_v28, 7 }
 0x36f   : > { %v3632_v60 = vpop.f32.mrb[179].mxu1  ;;  %v4018_v7 = vpop.f32.mrb[211].mxu0  ;;  %v3727_v48 = vrot.slane %v6196_v17, 7 }
 0x370   : > { %v3725_v36 = vrot.slane %v3632_v60, 7 }
 0x372   : > { %v3753_v40 = vsel %vm1085_vm1, %v3725_v36, %v3726_v12  ;;  %v3754_v5 = vsel %vm1085_vm1, %v3724_v16, %v3725_v36 }
 0x373   : > { %v8053_v18 = vadd.f32 %v6259_v55, %v3753_v40  ;;  %v8055_v31 = vadd.f32 %v4018_v7, %v3754_v5 }
 0x374   : > { %v6199_v15 = vpop.f32.mrb[180].mxu1  ;;  %v6263_v24 = vpop.f32.mrb[212].mxu0 }
 0x375   : > { %8596 = vst [vmem:[#allocation39_spill] sm:$0xff] %v8055_v31  ;;  %v3645_v47 = vpop.f32.mrb[181].mxu1  ;;  %v4031_v32 = vpop.f32.mrb[213].mxu0  ;;  %v3730_v28 = vrot.slane %v6199_v15, 7 }
 0x376   : > { %v3728_v21 = vrot.slane %v3645_v47, 7  ;;  %v6200_v51 = vpop.f32.mrb[182].mxu1  ;;  %v6264_v58 = vpop.f32.mrb[214].mxu0 }
 0x377   : > { %v3731_v60 = vrot.slane %v6200_v51, 7  ;;  %v3648_v46 = vpop.f32.mrb[183].mxu1  ;;  %v4034_v8 = vpop.f32.mrb[215].mxu0 }
 0x378   : > { %v3751_v12 = vsel %vm1085_vm1, %v3727_v48, %v3728_v21  ;;  %v3729_v16 = vrot.slane %v3648_v46, 7 }
 0x379   : > { %v8059_v55 = vadd.f32 %v4031_v32, %v3751_v12  ;;  %v3748_v7 = vsel %vm1085_vm1, %v3730_v28, %v3731_v60 }
 0x37a   : > { %v8063_v36 = vadd.f32 %v6264_v58, %v3748_v7  ;;  %v3750_v17 = vsel %vm1085_vm1, %v3728_v21, %v3729_v16 }
 0x37b   : > { %8597 = vst [vmem:[#allocation40_spill] sm:$0xff] %v8059_v55  ;;  %v8067_v40 = vadd.f32 %v4034_v8, %v3750_v17 }
 0x37c   : > { %8598 = vst [vmem:[#allocation41_spill] sm:$0xff] %v8063_v36  ;;  %v6203_v5 = vpop.f32.mrb[184].mxu1  ;;  %v6267_v51 = vpop.f32.mrb[216].mxu0 }
 0x37d   : > { %8599 = vst [vmem:[#allocation42_spill] sm:$0xff] %v8067_v40  ;;  %v3661_v15 = vpop.f32.mrb[185].mxu1  ;;  %v4047_v24 = vpop.f32.mrb[217].mxu0  ;;  %v3734_v46 = vrot.slane %v6203_v5, 7 }
 0x37e   : > { %v3732_v47 = vrot.slane %v3661_v15, 7  ;;  %v6204_v31 = vpop.f32.mrb[186].mxu1  ;;  %v6268_v48 = vpop.f32.mrb[218].mxu0 }
 0x37f   : > { %v3735_v32 = vrot.slane %v6204_v31, 7  ;;  %v3664_v12 = vpop.f32.mrb[187].mxu1  ;;  %v4050_v55 = vpop.f32.mrb[219].mxu0 }
 0x380   : > { %v3747_v58 = vsel %vm1085_vm1, %v3731_v60, %v3732_v47  ;;  %v3733_v28 = vrot.slane %v3664_v12, 7 }
 0x381   : > { %v8071_v7 = vadd.f32 %v4047_v24, %v3747_v58  ;;  %v3744_v8 = vsel %vm1085_vm1, %v3734_v46, %v3735_v32 }
 0x382   : > { %v8075_v21 = vadd.f32 %v6268_v48, %v3744_v8  ;;  %v3745_v16 = vsel %vm1085_vm1, %v3733_v28, %v3734_v46  ;;  %v8601_v48 = vrot.slane %v7958_v0, 7 }
 0x383   : > { %8600 = vst [vmem:[#allocation43_spill] sm:$0xff] %v8071_v7  ;;  %v8079_v17 = vadd.f32 %v6267_v51, %v3745_v16 }
 0x384   : > { %v6207_v5 = vpop.f32.mrb[188].mxu1  ;;  %v6271_v31 = vpop.f32.mrb[220].mxu0 }
 0x385   : > { %v3677_v15 = vpop.f32.mrb[189].mxu1  ;;  %v4063_v55 = vpop.f32.mrb[221].mxu0  ;;  %v3738_v12 = vrot.slane %v6207_v5, 7 }
 0x386   : > { %v6208_v36 = vpop.f32.mrb[190].mxu1  ;;  %v6272_v40 = vpop.f32.mrb[222].mxu0  ;;  %v3736_v58 = vrot.slane %v3677_v15, 7 }
 0x387   : > { %v3739_v60 = vrot.slane %v6208_v36, 7  ;;  %v3680_v47 = vpop.f32.mrb[191].mxu1  ;;  %v4066_v24 = vpop.f32.mrb[223].mxu0 }
 0x388   : > { %v3737_v7 = vrot.slane %v3680_v47, 7 }
 0x389   : > { %v3787_v32 = vsel %vm1085_vm1, %v3739_v60, %v8601_v48 }
 0x38a   : > { %v4078_v51 = vadd.f32 %v7960_v13, %v3787_v32  ;;  %v3741_v46 = vsel %vm1085_vm1, %v3737_v7, %v3738_v12  ;;  %v3742_v28 = vsel %vm1085_vm1, %v3736_v58, %v3737_v7 }
 0x38b   : > { %v8090_v40 = vadd.f32 %v6271_v31, %v3741_v46  ;;  %v8092_v36 = vadd.f32 %v4066_v24, %v3742_v28  ;;  %v8102_v24 = vld [vmem:[%s8450_s4] ss:$0 sm:$0xff] }
 0x38c   : > { %v6291_v8 = vpop.f32.mrb[192].mxu1 }
 0x38d   : > { %v4225_v16 = vpop.f32.mrb[193].mxu1  ;;  %v4418_v0 = vrot.slane %v6291_v8, 1 }
 0x38e   : > { %v6292_v5 = vpop.f32.mrb[194].mxu1  ;;  %v4416_v55 = vrot.slane %v4225_v16, 1 }
 0x38f   : > { %v4228_v15 = vpop.f32.mrb[195].mxu1  ;;  %v4419_v46 = vrot.slane %v6292_v5, 1 }
 0x390   : > { %v4417_v47 = vrot.slane %v4228_v15, 1 }
 0x392   : > { %v4509_v13 = vsel %vm1810_vm2, %v4417_v47, %v4418_v0  ;;  %v4510_v60 = vsel %vm1810_vm2, %v4416_v55, %v4417_v47 }
 0x393   : > { %v4512_v12 = vadd.f32 %v4510_v60, %v4078_v51  ;;  %v4513_v7 = vadd.f32 %v4509_v13, %v7971_v35 }
 0x394   : > { %v6295_v31 = vpop.f32.mrb[196].mxu1 }
 0x395   : > { %v4608_v58 = vadd.f32 %v4512_v12, %v7735_v19  ;;  %v4609_v48 = vadd.f32 %v4513_v7, %v7738_v33  ;;  %v4241_v32 = vpop.f32.mrb[197].mxu1  ;;  %v4422_v16 = vrot.slane %v6295_v31, 1 }
 0x396   : > { %v4420_v28 = vrot.slane %v4241_v32, 1  ;;  %v6296_v8 = vpop.f32.mrb[198].mxu1 }
 0x397   : > { %v4423_v15 = vrot.slane %v6296_v8, 1  ;;  %v4244_v0 = vpop.f32.mrb[199].mxu1  ;;  %v4743_v51 = vadd.f32 %v8102_v24, %v4608_v58  ;;  %v4744_v35 = vadd.f32 %v8102_v24, %v4609_v48 }
 0x398   : > { %v4507_v55 = vsel %vm1810_vm2, %v4419_v46, %v4420_v28  ;;  %v4421_v47 = vrot.slane %v4244_v0, 1 }
 0x399   : > { %v4515_v13 = vadd.f32 %v4507_v55, %v7965_v45  ;;  %v4504_v19 = vsel %vm1810_vm2, %v4422_v16, %v4423_v15  ;;  %v4775_v33 = vmax.f32 %v4743_v51, 0.0  ;;  %v4776_v5 = vmax.f32 %v4744_v35, 0.0 }
 0x39a   : > { %v4518_v60 = vadd.f32 %v4504_v19, %v7983_v30  ;;  %v4506_v12 = vsel %vm1810_vm2, %v4420_v28, %v4421_v47 }
 0x39b   : > { %v4611_v7 = vadd.f32 %v4515_v13, %v7752_v63  ;;  %v4516_v31 = vadd.f32 %v4506_v12, %v7975_v6  ;;  %v4807_v58 = vpack.c.bf16 %v4776_v5, %v4775_v33 }
 0x39c   : > { %v4614_v48 = vadd.f32 %v4518_v60, %v7755_v41  ;;  %v6299_v32 = vpop.f32.mrb[200].mxu1 }
 0x39d   : > { %v4745_v45 = vadd.f32 %v8102_v24, %v4611_v7  ;;  %v4612_v46 = vadd.f32 %v4516_v31, %v7758_v1  ;;  %v4257_v8 = vpop.f32.mrb[201].mxu1  ;;  %6353 = vmatprep.mubr.bf16.mxu0 %v4807_v58  ;;  %v4426_v51 = vrot.slane %v6299_v32, 1 }
 0x39e   : > { %v4424_v16 = vrot.slane %v4257_v8, 1  ;;  %v6300_v0 = vpop.f32.mrb[202].mxu1 }
 0x39f   : > { %v4746_v30 = vadd.f32 %v8102_v24, %v4612_v46  ;;  %v4427_v28 = vrot.slane %v6300_v0, 1  ;;  %v4260_v35 = vpop.f32.mrb[203].mxu1  ;;  %v4777_v55 = vmax.f32 %v4745_v45, 0.0 }
 0x3a0   : > { %v4503_v63 = vsel %vm1810_vm2, %v4423_v15, %v4424_v16  ;;  %v4425_v6 = vrot.slane %v4260_v35, 1  ;;  %v4747_v15 = vadd.f32 %v8102_v24, %v4614_v48 }
 0x3a1   : > { %v4778_v41 = vmax.f32 %v4746_v30, 0.0  ;;  %v4519_v47 = vadd.f32 %v4503_v63, %v7979_v9  ;;  %v4500_v1 = vsel %vm1810_vm2, %v4426_v51, %v4427_v28 }
 0x3a2   : > { %v4522_v13 = vadd.f32 %v4500_v1, %v7989_v54  ;;  %v4501_v19 = vsel %vm1810_vm2, %v4425_v6, %v4426_v51  ;;  %v4779_v46 = vmax.f32 %v4747_v15, 0.0 }
 0x3a3   : > { %v4615_v33 = vadd.f32 %v4519_v47, %v7774_v23  ;;  %v4521_v5 = vadd.f32 %v4501_v19, %v7991_v4  ;;  %v4808_v60 = vpack.c.bf16 %v4778_v41, %v4777_v55 }
 0x3a4   : > { %v4618_v12 = vadd.f32 %v4522_v13, %v7777_v53  ;;  %v6303_v7 = vpop.f32.mrb[204].mxu1 }
 0x3a5   : > { %v4617_v9 = vadd.f32 %v4521_v5, %v7780_v61  ;;  %v4273_v31 = vpop.f32.mrb[205].mxu1  ;;  %6354 = vmatmul.mubr.bf16.vlgmr.msra.gmra.mrb[224].mxu0 %v4808_v60  ;;  %v4748_v58 = vadd.f32 %v8102_v24, %v4615_v33  ;;  %v4430_v8 = vrot.slane %v6303_v7, 1 }
 0x3a6   : > { %v6304_v54 = vpop.f32.mrb[206].mxu1  ;;  %v4750_v32 = vadd.f32 %v8102_v24, %v4618_v12  ;;  %v4428_v16 = vrot.slane %v4273_v31, 1 }
 0x3a7   : > { %v4276_v45 = vpop.f32.mrb[207].mxu1  ;;  %v4780_v23 = vmax.f32 %v4748_v58, 0.0  ;;  %v4749_v4 = vadd.f32 %v8102_v24, %v4617_v9  ;;  %v4431_v1 = vrot.slane %v6304_v54, 1 }
 0x3a8   : > { %v4429_v48 = vrot.slane %v4276_v45, 1  ;;  %v4782_v0 = vmax.f32 %v4750_v32, 0.0 }
 0x3a9   : > { %v4809_v53 = vpack.c.bf16 %v4780_v23, %v4779_v46  ;;  %v4781_v30 = vmax.f32 %v4749_v4, 0.0 }
 0x3aa   : > { %v4497_v61 = vsel %vm1810_vm2, %v4429_v48, %v4430_v8  ;;  %v4498_v51 = vsel %vm1810_vm2, %v4428_v16, %v4429_v48 }
 0x3ab   : > { %v4524_v28 = vadd.f32 %v4498_v51, %v7995_v43  ;;  %v4525_v35 = vadd.f32 %v4497_v61, %v8003_v22  ;;  %6357 = vmatprep.mubr.bf16.mxu0 %v4809_v53  ;;  %v4810_v63 = vpack.c.bf16 %v4782_v0, %v4781_v30 }
 0x3ac   : > { %v6307_v6 = vpop.f32.mrb[208].mxu1 }
 0x3ad   : > { %v4620_v55 = vadd.f32 %v4524_v28, %v7795_v37  ;;  %v4621_v41 = vadd.f32 %v4525_v35, %v7798_v42  ;;  %v4289_v47 = vpop.f32.mrb[209].mxu1  ;;  %6358 = vmatmul.mubr.bf16.gmra.mrb[228].mxu0 %v4810_v63  ;;  %v4434_v33 = vrot.slane %v6307_v6, 1 }
 0x3ae   : > { %v4432_v13 = vrot.slane %v4289_v47, 1  ;;  %v6308_v19 = vpop.f32.mrb[210].mxu1 }
 0x3af   : > { %v4435_v5 = vrot.slane %v6308_v19, 1  ;;  %v4292_v60 = vpop.f32.mrb[211].mxu1  ;;  %v4751_v15 = vadd.f32 %v8102_v24, %v4620_v55  ;;  %v4752_v43 = vadd.f32 %v8102_v24, %v4621_v41 }
 0x3b0   : > { %v4495_v22 = vsel %vm1810_vm2, %v4431_v1, %v4432_v13  ;;  %v4433_v12 = vrot.slane %v4292_v60, 1 }
 0x3b1   : > { %v4527_v37 = vadd.f32 %v4495_v22, %v7999_v10  ;;  %v4492_v42 = vsel %vm1810_vm2, %v4434_v33, %v4435_v5  ;;  %v4783_v7 = vmax.f32 %v4751_v15, 0.0  ;;  %v4784_v9 = vmax.f32 %v4752_v43, 0.0 }
 0x3b2   : > { %v4530_v31 = vadd.f32 %v4492_v42, %v8015_v27  ;;  %v4494_v58 = vsel %vm1810_vm2, %v4432_v13, %v4433_v12 }
 0x3b3   : > { %v4623_v54 = vadd.f32 %v4527_v37, %v7812_v39  ;;  %v4528_v32 = vadd.f32 %v4494_v58, %v8007_v49  ;;  %v4811_v45 = vpack.c.bf16 %v4784_v9, %v4783_v7 }
 0x3b4   : > { %v4626_v46 = vadd.f32 %v4530_v31, %v7815_v56  ;;  %v6311_v23 = vpop.f32.mrb[212].mxu1 }
 0x3b5   : > { %v4624_v10 = vadd.f32 %v4528_v32, %v7818_v52  ;;  %v4305_v4 = vpop.f32.mrb[213].mxu1  ;;  %6361 = vmatprep.mubr.bf16.mxu0 %v4811_v45  ;;  %v4753_v8 = vadd.f32 %v8102_v24, %v4623_v54  ;;  %v4438_v27 = vrot.slane %v6311_v23, 1 }
 0x3b6   : > { %v4436_v16 = vrot.slane %v4305_v4, 1  ;;  %v6312_v48 = vpop.f32.mrb[214].mxu1  ;;  %v4755_v41 = vadd.f32 %v8102_v24, %v4626_v46 }
 0x3b7   : > { %v4439_v0 = vrot.slane %v6312_v48, 1  ;;  %v4308_v53 = vpop.f32.mrb[215].mxu1  ;;  %v4754_v30 = vadd.f32 %v8102_v24, %v4624_v10  ;;  %v4785_v61 = vmax.f32 %v4753_v8, 0.0 }
 0x3b8   : > { %v4491_v39 = vsel %vm1810_vm2, %v4435_v5, %v4436_v16  ;;  %v4437_v49 = vrot.slane %v4308_v53, 1  ;;  %v4787_v60 = vmax.f32 %v4755_v41, 0.0 }
 0x3b9   : > { %v4531_v56 = vadd.f32 %v4491_v39, %v8011_v57  ;;  %v4488_v52 = vsel %vm1810_vm2, %v4438_v27, %v4439_v0  ;;  %v4786_v51 = vmax.f32 %v4754_v30, 0.0 }
 0x3ba   : > { %v4534_v28 = vadd.f32 %v4488_v52, %v8021_v20  ;;  %v4489_v35 = vsel %vm1810_vm2, %v4437_v49, %v4438_v27 }
 0x3bb   : > { %v4627_v63 = vadd.f32 %v4531_v56, %v7834_v2  ;;  %v4533_v6 = vadd.f32 %v4489_v35, %v8023_v25  ;;  %v4812_v55 = vpack.c.bf16 %v4786_v51, %v4785_v61  ;;  %v8602_v61 = vld [vmem:[#allocation14_spill] sm:$0xff]  ;;  %v8603_v35 = vld [vmem:[#allocation29_spill] sm:$0xff] }
 0x3bc   : > { %v4630_v47 = vadd.f32 %v4534_v28, %v7837_v59  ;;  %v6315_v57 = vpop.f32.mrb[216].mxu1 }
 0x3bd   : > { %v4629_v1 = vadd.f32 %v4533_v6, %v7840_v44  ;;  %v4321_v13 = vpop.f32.mrb[217].mxu1  ;;  %6362 = vmatmul.mubr.bf16.gmra.mrb[232].mxu0 %v4812_v55  ;;  %v4756_v19 = vadd.f32 %v8102_v24, %v4627_v63  ;;  %v4442_v15 = vrot.slane %v6315_v57, 1 }
 0x3be   : > { %v6316_v20 = vpop.f32.mrb[218].mxu1  ;;  %v4758_v33 = vadd.f32 %v8102_v24, %v4630_v47  ;;  %v4440_v43 = vrot.slane %v4321_v13, 1  ;;  %v8604_v13 = vld [vmem:[#allocation38_spill] sm:$0xff] }
 0x3bf   : > { %v4324_v5 = vpop.f32.mrb[219].mxu1  ;;  %v4788_v2 = vmax.f32 %v4756_v19, 0.0  ;;  %v4757_v25 = vadd.f32 %v8102_v24, %v4629_v1  ;;  %v4443_v46 = vrot.slane %v6316_v20, 1 }
 0x3c0   : > { %v4441_v22 = vrot.slane %v4324_v5, 1  ;;  %v4790_v12 = vmax.f32 %v4758_v33, 0.0 }
 0x3c1   : > { %v4813_v59 = vpack.c.bf16 %v4788_v2, %v4787_v60  ;;  %v4789_v37 = vmax.f32 %v4757_v25, 0.0  ;;  %v8605_v25 = vld [vmem:[#allocation31_spill] sm:$0xff] }
 0x3c2   : > { %v4485_v44 = vsel %vm1810_vm2, %v4441_v22, %v4442_v15  ;;  %v4486_v42 = vsel %vm1810_vm2, %v4440_v43, %v4441_v22  ;;  %v8606_v43 = vld [vmem:[#allocation39_spill] sm:$0xff] }
 0x3c3   : > { %v4536_v7 = vadd.f32 %v4486_v42, %v8027_v14  ;;  %v4537_v9 = vadd.f32 %v4485_v44, %v8035_v26  ;;  %6365 = vmatprep.mubr.bf16.mxu0 %v4813_v59  ;;  %v4814_v31 = vpack.c.bf16 %v4790_v12, %v4789_v37  ;;  %v8607_v37 = vld [vmem:[#allocation15_spill] sm:$0xff] }
 0x3c4   : > { %v6319_v58 = vpop.f32.mrb[220].mxu1 }
 0x3c5   : > { %v4632_v54 = vadd.f32 %v4536_v7, %v7855_v34  ;;  %v4633_v32 = vadd.f32 %v4537_v9, %v7858_v50  ;;  %v4337_v45 = vpop.f32.mrb[221].mxu1  ;;  %6366 = vmatmul.mubr.bf16.gmra.mrb[236].mxu0 %v4814_v31  ;;  %v4446_v4 = vrot.slane %v6319_v58, 1  ;;  %v8608_v7 = vld [vmem:[#allocation16_spill] sm:$0xff] }
 0x3c6   : > { %v4444_v23 = vrot.slane %v4337_v45, 1  ;;  %v6320_v10 = vpop.f32.mrb[222].mxu1 }
 0x3c7   : > { %v4447_v8 = vrot.slane %v6320_v10, 1  ;;  %v4340_v16 = vpop.f32.mrb[223].mxu1  ;;  %v4759_v48 = vadd.f32 %v8102_v24, %v4632_v54  ;;  %v4760_v14 = vadd.f32 %v8102_v24, %v4633_v32 }
 0x3c8   : > { %v4483_v26 = vsel %vm1810_vm2, %v4443_v46, %v4444_v23  ;;  %v4445_v27 = vrot.slane %v4340_v16, 1 }
 0x3c9   : > { %v4539_v34 = vadd.f32 %v4483_v26, %v8031_v3  ;;  %v4480_v50 = vsel %vm1810_vm2, %v4446_v4, %v4447_v8  ;;  %v4791_v0 = vmax.f32 %v4759_v48, 0.0  ;;  %v4792_v53 = vmax.f32 %v4760_v14, 0.0 }
 0x3ca   : > { %v4542_v30 = vadd.f32 %v4480_v50, %v8047_v29  ;;  %v4482_v39 = vsel %vm1810_vm2, %v4444_v23, %v4445_v27 }
 0x3cb   : > { %v4635_v49 = vadd.f32 %v4539_v34, %v7872_v62  ;;  %v4540_v56 = vadd.f32 %v4482_v39, %v8039_v11  ;;  %v4815_v52 = vpack.c.bf16 %v4792_v53, %v4791_v0  ;;  %v8609_v34 = vld [vmem:[#allocation40_spill] sm:$0xff]  ;;  %v8610_v0 = vld [vmem:[#allocation42_spill] sm:$0xff] }
 0x3cc   : > { %v4638_v51 = vadd.f32 %v4542_v30, %v8602_v61  ;;  %v6323_v28 = vpop.f32.mrb[224].mxu1 }
 0x3cd   : > { %v4636_v3 = vadd.f32 %v4540_v56, %v8603_v35  ;;  %v4353_v63 = vpop.f32.mrb[225].mxu1  ;;  %6369 = vmatprep.mubr.bf16.mxu0 %v4815_v52  ;;  %v4761_v6 = vadd.f32 %v8102_v24, %v4635_v49  ;;  %v4450_v29 = vrot.slane %v6323_v28, 1  ;;  %v8611_v49 = vld [vmem:[#allocation32_spill] sm:$0xff]  ;;  %v8612_v52 = vld [vmem:[#allocation33_spill] sm:$0xff] }
 0x3ce   : > { %v4448_v55 = vrot.slane %v4353_v63, 1  ;;  %v6324_v41 = vpop.f32.mrb[226].mxu1  ;;  %v4763_v59 = vadd.f32 %v8102_v24, %v4638_v51 }
 0x3cf   : > { %v4451_v47 = vrot.slane %v6324_v41, 1  ;;  %v4356_v57 = vpop.f32.mrb[227].mxu1  ;;  %v4762_v1 = vadd.f32 %v8102_v24, %v4636_v3  ;;  %v4793_v33 = vmax.f32 %v4761_v6, 0.0 }
 0x3d0   : > { %v4479_v62 = vsel %vm1810_vm2, %v4447_v8, %v4448_v55  ;;  %v4449_v11 = vrot.slane %v4356_v57, 1  ;;  %v4795_v45 = vmax.f32 %v4763_v59, 0.0  ;;  %v8617_v59 = vld [vmem:[#allocation36_spill] sm:$0xff] }
 0x3d1   : > { %v4543_v19 = vadd.f32 %v4479_v62, %v8604_v13  ;;  %v4476_v20 = vsel %vm1810_vm2, %v4450_v29, %v4451_v47  ;;  %v4794_v5 = vmax.f32 %v4762_v1, 0.0  ;;  %v8613_v1 = vld [vmem:[#allocation41_spill] sm:$0xff] }
 0x3d2   : > { %v4546_v60 = vadd.f32 %v4476_v20, %v8053_v18  ;;  %v4477_v2 = vsel %vm1810_vm2, %v4449_v11, %v4450_v29 }
 0x3d3   : > { %v4639_v15 = vadd.f32 %v4543_v19, %v8605_v25  ;;  %v4545_v22 = vadd.f32 %v4477_v2, %v8606_v43  ;;  %v4816_v12 = vpack.c.bf16 %v4794_v5, %v4793_v33  ;;  %v8614_v5 = vld [vmem:[#allocation34_spill] sm:$0xff]  ;;  %v8615_v2 = vld [vmem:[#allocation43_spill] sm:$0xff] }
 0x3d4   : > { %v4642_v44 = vadd.f32 %v4546_v60, %v8607_v37  ;;  %v6327_v42 = vpop.f32.mrb[228].mxu1  ;;  %v8616_v43 = vld [vmem:[#allocation35_spill] sm:$0xff] }
 0x3d5   : > { %v4641_v9 = vadd.f32 %v4545_v22, %v8608_v7  ;;  %v4369_v31 = vpop.f32.mrb[229].mxu1  ;;  %6370 = vmatmul.mubr.bf16.gmra.mrb[240].mxu0 %v4816_v12  ;;  %v4764_v58 = vadd.f32 %v8102_v24, %v4639_v15  ;;  %v4454_v10 = vrot.slane %v6327_v42, 1 }
 0x3d6   : > { %v6328_v18 = vpop.f32.mrb[230].mxu1  ;;  %v4766_v54 = vadd.f32 %v8102_v24, %v4642_v44  ;;  %v4452_v4 = vrot.slane %v4369_v31, 1 }
 0x3d7   : > { %v4372_v32 = vpop.f32.mrb[231].mxu1  ;;  %v4796_v46 = vmax.f32 %v4764_v58, 0.0  ;;  %v4765_v23 = vadd.f32 %v8102_v24, %v4641_v9  ;;  %v4455_v28 = vrot.slane %v6328_v18, 1 }
 0x3d8   : > { %v4453_v8 = vrot.slane %v4372_v32, 1  ;;  %v4798_v16 = vmax.f32 %v4766_v54, 0.0 }
 0x3d9   : > { %v4817_v48 = vpack.c.bf16 %v4796_v46, %v4795_v45  ;;  %v4797_v14 = vmax.f32 %v4765_v23, 0.0 }
 0x3da   : > { %v4473_v26 = vsel %vm1810_vm2, %v4453_v8, %v4454_v10  ;;  %v4474_v27 = vsel %vm1810_vm2, %v4452_v4, %v4453_v8 }
 0x3db   : > { %v4548_v50 = vadd.f32 %v4474_v27, %v8609_v34  ;;  %v4549_v53 = vadd.f32 %v4473_v26, %v8610_v0  ;;  %6373 = vmatprep.mubr.bf16.mxu0 %v4817_v48  ;;  %v4818_v30 = vpack.c.bf16 %v4798_v16, %v4797_v14  ;;  %v8618_v16 = vld [vmem:[#allocation37_spill] sm:$0xff]  ;;  %v8619_v34 = vld [vmem:[#allocation18_spill] sm:$0xff] }
 0x3dc   : > { %v6331_v39 = vpop.f32.mrb[232].mxu1 }
 0x3dd   : > { %v4644_v56 = vadd.f32 %v4548_v50, %v8611_v49  ;;  %v4645_v61 = vadd.f32 %v4549_v53, %v8612_v52  ;;  %v4385_v51 = vpop.f32.mrb[233].mxu1  ;;  %6374 = vmatmul.mubr.bf16.gmra.mrb[244].mxu0 %v4818_v30  ;;  %v4458_v63 = vrot.slane %v6331_v39, 1  ;;  %v8620_v50 = vld [vmem:[#allocation17_spill] sm:$0xff] }
 0x3de   : > { %v4456_v35 = vrot.slane %v4385_v51, 1  ;;  %v6332_v3 = vpop.f32.mrb[234].mxu1  ;;  %v4841_v51 = vld [vmem:[%s6857_s11 + $0x10] sm:$0xff] }
 0x3df   : > { %v4459_v6 = vrot.slane %v6332_v3, 1  ;;  %v4388_v55 = vpop.f32.mrb[235].mxu1  ;;  %v4767_v41 = vadd.f32 %v8102_v24, %v4644_v56  ;;  %v4768_v29 = vadd.f32 %v8102_v24, %v4645_v61  ;;  %v8261_v61 = vld [vmem:[%s8452_s6] ss:$0 sm:$0xff] }
 0x3e0   : > { %v4471_v47 = vsel %vm1810_vm2, %v4455_v28, %v4456_v35  ;;  %v4457_v57 = vrot.slane %v4388_v55, 1  ;;  %v4839_v3 = vld [vmem:[%s6857_s11] sm:$0xff] }
 0x3e1   : > { %v4551_v62 = vadd.f32 %v4471_v47, %v8613_v1  ;;  %v4468_v11 = vsel %vm1810_vm2, %v4458_v63, %v4459_v6  ;;  %v4799_v13 = vmax.f32 %v4767_v41, 0.0  ;;  %v4800_v19 = vmax.f32 %v4768_v29, 0.0  ;;  %v4840_v47 = vld [vmem:[%s6857_s11 + $0x8] sm:$0xff] }
 0x3e2   : > { %v4554_v20 = vadd.f32 %v4468_v11, %v8079_v17  ;;  %v4470_v33 = vsel %vm1810_vm2, %v4456_v35, %v4457_v57 }
 0x3e3   : > { %v4647_v60 = vadd.f32 %v4551_v62, %v8614_v5  ;;  %v4552_v25 = vadd.f32 %v4470_v33, %v8615_v2  ;;  %v4819_v15 = vpack.c.bf16 %v4800_v19, %v4799_v13 }
 0x3e4   : > { %v4650_v22 = vadd.f32 %v4554_v20, %v8616_v43  ;;  %v6335_v12 = vpop.f32.mrb[236].mxu1 }
 0x3e5   : > { %v4648_v37 = vadd.f32 %v4552_v25, %v8617_v59  ;;  %v4401_v44 = vpop.f32.mrb[237].mxu1  ;;  %6377 = vmatprep.mubr.bf16.mxu0 %v4819_v15  ;;  %v4769_v42 = vadd.f32 %v8102_v24, %v4647_v60  ;;  %v4462_v17 = vrot.slane %v6335_v12, 1  ;;  %v4845_v60 = vld [vmem:[%s6857_s11 + $0x30] sm:$0xff]  ;;  %v4843_v15 = vld [vmem:[%s6857_s11 + $0x20] sm:$0xff]  ;;  %v4846_v12 = vld [vmem:[%s6857_s11 + $0x38] sm:$0xff] }
 0x3e6   : > { %v4460_v7 = vrot.slane %v4401_v44, 1  ;;  %v6336_v9 = vpop.f32.mrb[238].mxu1  ;;  %v4771_v27 = vadd.f32 %v8102_v24, %v4650_v22 }
 0x3e7   : > { %v4463_v31 = vrot.slane %v6336_v9, 1  ;;  %v4404_v58 = vpop.f32.mrb[239].mxu1  ;;  %v4770_v18 = vadd.f32 %v8102_v24, %v4648_v37  ;;  %v4801_v23 = vmax.f32 %v4769_v42, 0.0  ;;  %v4844_v42 = vld [vmem:[%s6857_s11 + $0x28] sm:$0xff] }
 0x3e8   : > { %v4467_v54 = vsel %vm1810_vm2, %v4459_v6, %v4460_v7  ;;  %v4461_v32 = vrot.slane %v4404_v58, 1  ;;  %v4803_v38 = vmax.f32 %v4771_v27, 0.0  ;;  %v4842_v6 = vld [vmem:[%s6857_s11 + $0x18] sm:$0xff] }
 0x3e9   : > { %v4555_v45 = vadd.f32 %v4467_v54, %v8075_v21  ;;  %v4464_v46 = vsel %vm1810_vm2, %v4462_v17, %v4463_v31  ;;  %v4802_v10 = vmax.f32 %v4770_v18, 0.0 }
 0x3ea   : > { %v4558_v4 = vadd.f32 %v4464_v46, %v8090_v40  ;;  %v4465_v8 = vsel %vm1810_vm2, %v4461_v32, %v4462_v17  ;;  %v4849_v46 = vld [vmem:[%s6857_s11 + $0x50] sm:$0xff] }
 0x3eb   : > { %v4651_v48 = vadd.f32 %v4555_v45, %v8618_v16  ;;  %v4557_v14 = vadd.f32 %v4465_v8, %v8092_v36  ;;  %v4820_v26 = vpack.c.bf16 %v4802_v10, %v4801_v23 }
 0x3ec   : > { %v4654_v21 = vadd.f32 %v4558_v4, %v8619_v34  ;;  %v4847_v4 = vld [vmem:[%s6857_s11 + $0x40] sm:$0xff]  ;;  %v4848_v34 = vld [vmem:[%s6857_s11 + $0x48] sm:$0xff] }
 0x3ed   : > { %v4653_v0 = vadd.f32 %v4557_v14, %v8620_v50  ;;  %6378 = vmatmul.mubr.bf16.gmra.mrb[248].mxu0 %v4820_v26  ;;  %v4772_v53 = vadd.f32 %v8102_v24, %v4651_v48  ;;  %v4850_v48 = vld [vmem:[%s6857_s11 + $0x58] sm:$0xff] }
 0x3ee   : > { %v4774_v40 = vadd.f32 %v8102_v24, %v4654_v21 }
 0x3ef   : > { %v4804_v30 = vmax.f32 %v4772_v53, 0.0  ;;  %v4773_v39 = vadd.f32 %v8102_v24, %v4653_v0 }
 0x3f0   : > { %v4806_v36 = vmax.f32 %v4774_v40, 0.0 }
 0x3f1   : > { %v4821_v49 = vpack.c.bf16 %v4804_v30, %v4803_v38  ;;  %v4805_v56 = vmax.f32 %v4773_v39, 0.0 }
 0x3f3   : > { %6381 = vmatprep.mubr.bf16.mxu0 %v4821_v49  ;;  %v4822_v52 = vpack.c.bf16 %v4806_v36, %v4805_v56  ;;  %v4853_v49 = vld [vmem:[%s6857_s11 + $0x70] sm:$0xff] }
 0x3f5   : > { %6382 = vmatmul.mubr.bf16.gmra.mrb[252].mxu0 %v4822_v52 }
 0x478   : > { %v6355_v28 = vpop.f32.mrb[224].mxu0 }
 0x479   : > { %v4969_v35 = vadd.f32 %v6355_v28, %v8261_v61  ;;  %v4960_v63 = vpop.f32.mrb[225].mxu0 }
 0x47a   : > { %v4961_v24 = vadd.f32 %v8261_v61, %v4960_v63  ;;  %v6356_v55 = vpop.f32.mrb[226].mxu0 }
 0x47b   : > { %v5089_v41 = vadd.f32 %v4969_v35, %v4841_v51  ;;  %v4972_v29 = vadd.f32 %v6356_v55, %v8261_v61  ;;  %v4963_v57 = vpop.f32.mrb[227].mxu0  ;;  %v4851_v51 = vld [vmem:[%s6857_s11 + $0x60] sm:$0xff]  ;;  %v4852_v55 = vld [vmem:[%s6857_s11 + $0x68] sm:$0xff] }
 0x47c   : > { %v5087_v1 = vadd.f32 %v4961_v24, %v4839_v3  ;;  %v4964_v62 = vadd.f32 %v8261_v61, %v4963_v57  ;;  %v4854_v3 = vld [vmem:[%s6857_s11 + $0x78] sm:$0xff] }
 0x47d   : > { %v5121_v11 = vmax.f32 %v5089_v41, 0.0  ;;  %v5090_v13 = vadd.f32 %v4972_v29, %v4842_v6 }
 0x47e   : > { %v5119_v19 = vmax.f32 %v5087_v1, 0.0  ;;  %v5088_v20 = vadd.f32 %v4964_v62, %v4840_v47 }
 0x47f   : > { %5153 = vst.msk [vmem:[%s8273_s30 + $0x10] sm:$0xff] %vm376_vm0, %v5121_v11  ;;  %v5122_v33 = vmax.f32 %v5090_v13, 0.0 }
 0x480   : > { %5151 = vst.msk [vmem:[%s8273_s30] sm:$0xff] %vm376_vm0, %v5119_v19  ;;  %v5120_v5 = vmax.f32 %v5088_v20, 0.0  ;;  %v6359_v2 = vpop.f32.mrb[228].mxu0  ;;  %v4857_v20 = vld [vmem:[%s6857_s11 + $0x90] sm:$0xff] }
 0x481   : > { %5154 = vst.msk [vmem:[%s8273_s30 + $0x18] sm:$0xff] %vm376_vm0, %v5122_v33  ;;  %v4985_v25 = vadd.f32 %v6359_v2, %v8261_v61  ;;  %v4976_v43 = vpop.f32.mrb[229].mxu0 }
 0x482   : > { %5152 = vst.msk [vmem:[%s8273_s30 + $0x8] sm:$0xff] %vm376_vm0, %v5120_v5  ;;  %v4977_v22 = vadd.f32 %v8261_v61, %v4976_v43  ;;  %v6360_v59 = vpop.f32.mrb[230].mxu0 }
 0x483   : > { %v5093_v37 = vadd.f32 %v4985_v25, %v4845_v60  ;;  %v4988_v44 = vadd.f32 %v6360_v59, %v8261_v61  ;;  %v4979_v7 = vpop.f32.mrb[231].mxu0  ;;  %v4855_v60 = vld [vmem:[%s6857_s11 + $0x80] sm:$0xff]  ;;  %v4856_v59 = vld [vmem:[%s6857_s11 + $0x88] sm:$0xff] }
 0x484   : > { %v5091_v9 = vadd.f32 %v4977_v22, %v4843_v15  ;;  %v4980_v17 = vadd.f32 %v8261_v61, %v4979_v7  ;;  %v4858_v15 = vld [vmem:[%s6857_s11 + $0x98] sm:$0xff] }
 0x485   : > { %v5125_v31 = vmax.f32 %v5093_v37, 0.0  ;;  %v5094_v58 = vadd.f32 %v4988_v44, %v4846_v12 }
 0x486   : > { %v5123_v18 = vmax.f32 %v5091_v9, 0.0  ;;  %v5092_v54 = vadd.f32 %v4980_v17, %v4844_v42 }
 0x487   : > { %5157 = vst.msk [vmem:[%s8273_s30 + $0x30] sm:$0xff] %vm376_vm0, %v5125_v31  ;;  %v5126_v32 = vmax.f32 %v5094_v58, 0.0 }
 0x488   : > { %5155 = vst.msk [vmem:[%s8273_s30 + $0x20] sm:$0xff] %vm376_vm0, %v5123_v18  ;;  %v5124_v45 = vmax.f32 %v5092_v54, 0.0  ;;  %v4861_v54 = vld [vmem:[%s6857_s11 + $0xb0] sm:$0xff] }
 0x489   : > { %5158 = vst.msk [vmem:[%s8273_s30 + $0x38] sm:$0xff] %vm376_vm0, %v5126_v32 }
 0x48a   : > { %5156 = vst.msk [vmem:[%s8273_s30 + $0x28] sm:$0xff] %vm376_vm0, %v5124_v45 }
 0x490   : > { %v6363_v23 = vpop.f32.mrb[232].mxu0 }
 0x491   : > { %v5001_v10 = vadd.f32 %v6363_v23, %v8261_v61  ;;  %v4992_v8 = vpop.f32.mrb[233].mxu0 }
 0x492   : > { %v4993_v16 = vadd.f32 %v8261_v61, %v4992_v8  ;;  %v6364_v14 = vpop.f32.mrb[234].mxu0 }
 0x493   : > { %v5097_v26 = vadd.f32 %v5001_v10, %v4849_v46  ;;  %v5004_v27 = vadd.f32 %v6364_v14, %v8261_v61  ;;  %v4995_v21 = vpop.f32.mrb[235].mxu0  ;;  %v4859_v46 = vld [vmem:[%s6857_s11 + $0xa0] sm:$0xff]  ;;  %v4860_v14 = vld [vmem:[%s6857_s11 + $0xa8] sm:$0xff] }
 0x494   : > { %v5095_v50 = vadd.f32 %v4993_v16, %v4847_v4  ;;  %v4996_v0 = vadd.f32 %v8261_v61, %v4995_v21  ;;  %v4862_v4 = vld [vmem:[%s6857_s11 + $0xb8] sm:$0xff] }
 0x495   : > { %v5129_v53 = vmax.f32 %v5097_v26, 0.0  ;;  %v5098_v40 = vadd.f32 %v5004_v27, %v4850_v48 }
 0x496   : > { %v5127_v38 = vmax.f32 %v5095_v50, 0.0  ;;  %v5096_v30 = vadd.f32 %v4996_v0, %v4848_v34 }
 0x497   : > { %5161 = vst.msk [vmem:[%s8273_s30 + $0x50] sm:$0xff] %vm376_vm0, %v5129_v53  ;;  %v5130_v39 = vmax.f32 %v5098_v40, 0.0 }
 0x498   : > { %5159 = vst.msk [vmem:[%s8273_s30 + $0x40] sm:$0xff] %vm376_vm0, %v5127_v38  ;;  %v5128_v36 = vmax.f32 %v5096_v30, 0.0  ;;  %v6367_v56 = vpop.f32.mrb[236].mxu0  ;;  %v4865_v30 = vld [vmem:[%s6857_s11 + $0xd0] sm:$0xff] }
 0x499   : > { %5162 = vst.msk [vmem:[%s8273_s30 + $0x58] sm:$0xff] %vm376_vm0, %v5130_v39  ;;  %v5017_v52 = vadd.f32 %v6367_v56, %v8261_v61  ;;  %v5008_v28 = vpop.f32.mrb[237].mxu0 }
 0x49a   : > { %5160 = vst.msk [vmem:[%s8273_s30 + $0x48] sm:$0xff] %vm376_vm0, %v5128_v36  ;;  %v5009_v35 = vadd.f32 %v8261_v61, %v5008_v28  ;;  %v6368_v63 = vpop.f32.mrb[238].mxu0 }
 0x49b   : > { %v5101_v24 = vadd.f32 %v5017_v52, %v4853_v49  ;;  %v5020_v6 = vadd.f32 %v6368_v63, %v8261_v61  ;;  %v5011_v41 = vpop.f32.mrb[239].mxu0  ;;  %v4863_v49 = vld [vmem:[%s6857_s11 + $0xc0] sm:$0xff]  ;;  %v4864_v63 = vld [vmem:[%s6857_s11 + $0xc8] sm:$0xff] }
 0x49c   : > { %v5099_v29 = vadd.f32 %v5009_v35, %v4851_v51  ;;  %v5012_v47 = vadd.f32 %v8261_v61, %v5011_v41  ;;  %v4866_v51 = vld [vmem:[%s6857_s11 + $0xd8] sm:$0xff] }
 0x49d   : > { %v5133_v57 = vmax.f32 %v5101_v24, 0.0  ;;  %v5102_v1 = vadd.f32 %v5020_v6, %v4854_v3 }
 0x49e   : > { %v5131_v62 = vmax.f32 %v5099_v29, 0.0  ;;  %v5100_v11 = vadd.f32 %v5012_v47, %v4852_v55 }
 0x49f   : > { %5165 = vst.msk [vmem:[%s8273_s30 + $0x70] sm:$0xff] %vm376_vm0, %v5133_v57  ;;  %v5134_v13 = vmax.f32 %v5102_v1, 0.0 }
 0x4a0   : > { %5163 = vst.msk [vmem:[%s8273_s30 + $0x60] sm:$0xff] %vm376_vm0, %v5131_v62  ;;  %v5132_v19 = vmax.f32 %v5100_v11, 0.0  ;;  %v4869_v11 = vld [vmem:[%s6857_s11 + $0xf0] sm:$0xff] }
 0x4a1   : > { %5166 = vst.msk [vmem:[%s8273_s30 + $0x78] sm:$0xff] %vm376_vm0, %v5134_v13 }
 0x4a2   : > { %5164 = vst.msk [vmem:[%s8273_s30 + $0x68] sm:$0xff] %vm376_vm0, %v5132_v19 }
 0x4a8   : > { %v6371_v33 = vpop.f32.mrb[240].mxu0 }
 0x4a9   : > { %v5033_v5 = vadd.f32 %v6371_v33, %v8261_v61  ;;  %v5024_v2 = vpop.f32.mrb[241].mxu0 }
 0x4aa   : > { %v5025_v25 = vadd.f32 %v8261_v61, %v5024_v2  ;;  %v6372_v43 = vpop.f32.mrb[242].mxu0 }
 0x4ab   : > { %v5105_v22 = vadd.f32 %v5033_v5, %v4857_v20  ;;  %v5036_v12 = vadd.f32 %v6372_v43, %v8261_v61  ;;  %v5027_v37 = vpop.f32.mrb[243].mxu0  ;;  %v4867_v20 = vld [vmem:[%s6857_s11 + $0xe0] sm:$0xff]  ;;  %v4868_v43 = vld [vmem:[%s6857_s11 + $0xe8] sm:$0xff] }
 0x4ac   : > { %v5103_v44 = vadd.f32 %v5025_v25, %v4855_v60  ;;  %v5028_v42 = vadd.f32 %v8261_v61, %v5027_v37  ;;  %v4870_v60 = vld [vmem:[%s6857_s11 + $0xf8] sm:$0xff]  ;;  %s8394_s11 = scalar_lea.hbm %s8453_s7, %s5397_s23 }
 0x4ad   : > { %v5137_v7 = vmax.f32 %v5105_v22, 0.0  ;;  %v5106_v9 = vadd.f32 %v5036_v12, %v4858_v15 }
 0x4ae   : > { %v5135_v17 = vmax.f32 %v5103_v44, 0.0  ;;  %v5104_v31 = vadd.f32 %v5028_v42, %v4856_v59 }
 0x4af   : > { %5169 = vst.msk [vmem:[%s8273_s30 + $0x90] sm:$0xff] %vm376_vm0, %v5137_v7  ;;  %v5138_v58 = vmax.f32 %v5106_v9, 0.0 }
 0x4b0   : > { %5167 = vst.msk [vmem:[%s8273_s30 + $0x80] sm:$0xff] %vm376_vm0, %v5135_v17  ;;  %v5136_v18 = vmax.f32 %v5104_v31, 0.0  ;;  %v6375_v32 = vpop.f32.mrb[244].mxu0 }
 0x4b1   : > { %5170 = vst.msk [vmem:[%s8273_s30 + $0x98] sm:$0xff] %vm376_vm0, %v5138_v58  ;;  %v5049_v45 = vadd.f32 %v6375_v32, %v8261_v61  ;;  %v5040_v23 = vpop.f32.mrb[245].mxu0 }
 0x4b2   : > { %5168 = vst.msk [vmem:[%s8273_s30 + $0x88] sm:$0xff] %vm376_vm0, %v5136_v18  ;;  %v5041_v10 = vadd.f32 %v8261_v61, %v5040_v23  ;;  %v6376_v8 = vpop.f32.mrb[246].mxu0 }
 0x4b3   : > { %v5109_v16 = vadd.f32 %v5049_v45, %v4861_v54  ;;  %v5052_v48 = vadd.f32 %v6376_v8, %v8261_v61  ;;  %v5043_v26 = vpop.f32.mrb[247].mxu0 }
 0x4b4   : > { %v5107_v27 = vadd.f32 %v5041_v10, %v4859_v46  ;;  %v5044_v34 = vadd.f32 %v8261_v61, %v5043_v26 }
 0x4b5   : > { %v5141_v21 = vmax.f32 %v5109_v16, 0.0  ;;  %v5110_v50 = vadd.f32 %v5052_v48, %v4862_v4 }
 0x4b6   : > { %v5139_v0 = vmax.f32 %v5107_v27, 0.0  ;;  %v5108_v53 = vadd.f32 %v5044_v34, %v4860_v14 }
 0x4b7   : > { %5173 = vst.msk [vmem:[%s8273_s30 + $0xb0] sm:$0xff] %vm376_vm0, %v5141_v21  ;;  %v5142_v40 = vmax.f32 %v5110_v50, 0.0 }
 0x4b8   : > { %5171 = vst.msk [vmem:[%s8273_s30 + $0xa0] sm:$0xff] %vm376_vm0, %v5139_v0  ;;  %v5140_v38 = vmax.f32 %v5108_v53, 0.0 }
 0x4b9   : > { %5174 = vst.msk [vmem:[%s8273_s30 + $0xb8] sm:$0xff] %vm376_vm0, %v5142_v40 }
 0x4ba   : > { %5172 = vst.msk [vmem:[%s8273_s30 + $0xa8] sm:$0xff] %vm376_vm0, %v5140_v38 }
 0x4c0   : > { %v6379_v39 = vpop.f32.mrb[248].mxu0 }
 0x4c1   : > { %v5065_v36 = vadd.f32 %v6379_v39, %v8261_v61  ;;  %v5056_v56 = vpop.f32.mrb[249].mxu0 }
 0x4c2   : > { %v5057_v52 = vadd.f32 %v8261_v61, %v5056_v56  ;;  %v6380_v28 = vpop.f32.mrb[250].mxu0 }
 0x4c3   : > { %v5113_v35 = vadd.f32 %v5065_v36, %v4865_v30  ;;  %v5068_v3 = vadd.f32 %v6380_v28, %v8261_v61  ;;  %v5059_v24 = vpop.f32.mrb[251].mxu0 }
 0x4c4   : > { %v5111_v6 = vadd.f32 %v5057_v52, %v4863_v49  ;;  %v5060_v55 = vadd.f32 %v8261_v61, %v5059_v24 }
 0x4c5   : > { %v5145_v41 = vmax.f32 %v5113_v35, 0.0  ;;  %v5114_v29 = vadd.f32 %v5068_v3, %v4866_v51 }
 0x4c6   : > { %v5143_v47 = vmax.f32 %v5111_v6, 0.0  ;;  %v5112_v57 = vadd.f32 %v5060_v55, %v4864_v63 }
 0x4c7   : > { %5177 = vst.msk [vmem:[%s8273_s30 + $0xd0] sm:$0xff] %vm376_vm0, %v5145_v41  ;;  %v5146_v1 = vmax.f32 %v5114_v29, 0.0 }
 0x4c8   : > { %5175 = vst.msk [vmem:[%s8273_s30 + $0xc0] sm:$0xff] %vm376_vm0, %v5143_v47  ;;  %v5144_v62 = vmax.f32 %v5112_v57, 0.0  ;;  %v6383_v13 = vpop.f32.mrb[252].mxu0 }
 0x4c9   : > { %5178 = vst.msk [vmem:[%s8273_s30 + $0xd8] sm:$0xff] %vm376_vm0, %v5146_v1  ;;  %v5081_v19 = vadd.f32 %v6383_v13, %v8261_v61  ;;  %v5072_v33 = vpop.f32.mrb[253].mxu0 }
 0x4ca   : > { %5176 = vst.msk [vmem:[%s8273_s30 + $0xc8] sm:$0xff] %vm376_vm0, %v5144_v62  ;;  %v5073_v5 = vadd.f32 %v8261_v61, %v5072_v33  ;;  %v6384_v2 = vpop.f32.mrb[254].mxu0 }
 0x4cb   : > { %v5117_v25 = vadd.f32 %v5081_v19, %v4869_v11  ;;  %v5084_v15 = vadd.f32 %v6384_v2, %v8261_v61  ;;  %v5075_v22 = vpop.f32.mrb[255].mxu0 }
 0x4cc   : > { %v5115_v12 = vadd.f32 %v5073_v5, %v4867_v20  ;;  %v5076_v59 = vadd.f32 %v8261_v61, %v5075_v22 }
 0x4cd   : > { %v5149_v37 = vmax.f32 %v5117_v25, 0.0  ;;  %v5118_v44 = vadd.f32 %v5084_v15, %v4870_v60 }
 0x4ce   : > { %v5147_v42 = vmax.f32 %v5115_v12, 0.0  ;;  %v5116_v7 = vadd.f32 %v5076_v59, %v4868_v43 }
 0x4cf   : > { %5181 = vst.msk [vmem:[%s8273_s30 + $0xf0] sm:$0xff] %vm376_vm0, %v5149_v37  ;;  %v5150_v9 = vmax.f32 %v5118_v44, 0.0 }
 0x4d0   : > { %5179 = vst.msk [vmem:[%s8273_s30 + $0xe0] sm:$0xff] %vm376_vm0, %v5147_v42  ;;  %v5148_v61 = vmax.f32 %v5116_v7, 0.0 }
 0x4d1   : > { %5182 = vst.msk [vmem:[%s8273_s30 + $0xf8] sm:$0xff] %vm376_vm0, %v5150_v9 }
 0x4d2   : > { %5180 = vst.msk [vmem:[%s8273_s30 + $0xe8] sm:$0xff] %vm376_vm0, %v5148_v61 }
 0x4d3   : > { %6602 = shalt.err (!%p6599_p7)
}
 0x4d4   : > { %s6603_s20 = scalar_lea.hbm %s8394_s11, 4096  ;;  %s6607_s30 = scalar_lea.hbm %s8453_s7, 8192 }
 0x4d5   : > { %p6604_p9 = scmp.ne.s32.totalorder %s8394_s11, %s6603_s20  ;;  %p6608_p5 = scmp.lt.u32.totalorder %s8394_s11, %s8453_s7 }
 0x4d6   : > { %p6609_p11 = scmp.lt.u32.totalorder %s6607_s30, %s6603_s20  ;;  %p6611_p4 = scmp.lt.u32.totalorder %s6603_s20, %s8394_s11 }
 0x4d7   : > { %p6605_p2 = pnand %p6604_p9, %p6803_p12 }
 0x4d8   : > { %p6610_p1 = por %p6609_p11, %p6608_p5 }
 0x4d9   : > { %p6606_p0 = pneg %p6605_p2 }
 0x4da   : > { %p6612_p6 = por %p6611_p4, %p6610_p1 }
 0x4dc   : > { %p6613_p8 = pnand %p6612_p6, %p6606_p0 }
 0x4de   : > { %6616 = shalt.err (!%p6613_p8)
}
 0x4df   : > { %s6670_s29 = smov 128   ;;  %s6671_s17 = smov 8  }
 0x4e0   : > { %6391 = dma.vmem_to_hbm [thread:$0]  (%p6803_p12), %s8396_s14, 4096, %s8394_s11, %s5184_s28, %s6670_s29, %s6670_s29, %s6671_s17  }
 0x4e1 PF: > { %s5212_s21 = sand.u32 1, %s6647_s24   ;;  %p8621_p10 = scmp.ne.s32.totalorder %s8474_s8, 0 }
 0x4e2   : > { %p8622_p13 = scmp.ge.s32.totalorder %s6659_s27, 2  ;;  %s5213_s10 = scalar_lea.sflag [#allocation6], %s5212_s21 }
 0x4e4   : > { %p6402_p3 = pnand %p8622_p13, %p8621_p10 }
 0x4e6   : > { %6642 = dma.done.wait (!%p6402_p3), %s5213_s10, 4096  }
 0x4e7   : > { %6644 = vsyncadd (!%p6402_p3), %s5213_s10, 4294963200  ;;  %p21_p7 = scmp.ge.s32.totalorder %s6768_s13, 4   ;;  %s8623_s24 = smov %s6651_s25 }
 0x4e8   : > { %s8624_s25 = smov %s6655_s26  ;;  %s8625_s26 = smov %s6799_s18 }
 0x4e9   : > { %s8626_s27 = smov %s6768_s13  ;;  %23 = sbr.rel (!%p21_p7) target bundleno = 6 (0x6), region = 108 }
 0x4f0   :  { %5218 = vsyncpa [#allocation5], 1 }
 0x4f1   :  { %5220 = vsyncpa [#allocation5 + $0x1], 1 }
 0x4f2   :  { %5221 = vsyncpa [#allocation8], 1 }
 0x4f3   :  { %5222 = vsyncpa [#allocation6], 1 }
 0x4f4   :  { %5224 = vsyncpa [#allocation6 + $0x1], 1 }

</bundles_post_ra>
